<compile_context>
chip_gen: v7x
topology: tpu7x:2x2x1
jax: 0.10.0
libtpu: 0.0.40
codegen_flags: <defaults>
</compile_context>

<pallas_src>
import jax
import jax.numpy as jnp
from jax.experimental import pallas as pl
from jax.experimental.pallas import tpu as pltpu

BN_EPS = 1e-5
LEAKY_SLOPE = 0.2


def _leaky(x):
    return jnp.where(x > 0, x, LEAKY_SLOPE * x)


def _round_up(v, m):
    return (v + m - 1) // m * m


# ---------------------------------------------------------------------------
# The single fused kernel
# ---------------------------------------------------------------------------
def _make_fused_kernel(G, R_out, n_valid, l1_plan):
    C1, C2 = 16, 8  # conv1 / conv2 output channels

    def kernel(xs_ref, w1_ref, b1_ref, mask_ref, w2_ref, gamma_ref, beta_ref,
               w3_ref, p_ref, b3_ref, out_ref, hs2_ref):
        # Zero-init the phase-stacked conv2 input scratch: the zeros double as conv2's
        # spatial zero-padding.
        hs2_ref[...] = jnp.zeros_like(hs2_ref)

        mask = mask_ref[...]            # (R_out, 1): 1 on valid grid rows, 0 on pitch padding
        b1 = b1_ref[...]                # (1, 16)

        # ---- conv1 (k=4, s=2, p=1) + bias + LeakyReLU ---------------------------------
        # One output-parity class at a time; each class is a short sum of shifted,
        # contiguous row-slab GEMMs against the mod-4 space-to-depth input.
        for shift, cblock, groups in l1_plan:
            acc = jnp.zeros((R_out, C1), jnp.float32)
            for g_idx, off in groups:
                acc = acc + jnp.dot(xs_ref[off:off + R_out, :], w1_ref[g_idx],
                                    preferred_element_type=jnp.float32)
            h1 = _leaky(acc + b1) * mask
            # Write into the matching phase block of conv2's (padded) input layout.
            hs2_ref[cblock, shift:shift + R_out, :] = h1

        # ---- conv2 (k=4, s=2, p=1) + BatchNorm(batch stats) + LeakyReLU ---------------
        acc2 = jnp.zeros((R_out, C2), jnp.float32)
        for qh in range(2):
            for qw in range(2):
                off = qh * G + qw
                g = qh * 2 + qw
                for cb in range(4):
                    acc2 = acc2 + jnp.dot(hs2_ref[cb, off:off + R_out, :],
                                          w2_ref[g * 4 + cb],
                                          preferred_element_type=jnp.float32)
        # conv2 bias omitted: it cancels exactly under batch-statistics BatchNorm.
        mean = jnp.sum(acc2 * mask, axis=0, keepdims=True) / n_valid
        cen = acc2 - mean
        var = jnp.sum(cen * cen * mask, axis=0, keepdims=True) / n_valid
        y2 = cen * jax.lax.rsqrt(var + BN_EPS) * gamma_ref[...] + beta_ref[...]
        h2 = _leaky(y2)

        # ---- conv3 (k=4, s=1, p=0: full-window) + Sigmoid ------------------------------
        prod = h2 * w3_ref[...]                 # invalid/padding rows are zeroed by w3_ref
        img = jnp.dot(p_ref[...], prod, preferred_element_type=jnp.float32)   # (N, 8)
        logit = jnp.sum(img, axis=1, keepdims=True) + b3_ref[...]             # (N, 1)
        out_ref[...] = jax.nn.sigmoid(logit)

    return kernel


# ---------------------------------------------------------------------------
# Host wrapper: layout prep (1x-sized glue) + weight repacking + pallas_call
# ---------------------------------------------------------------------------
def resnet_discriminator_forward(x, params):
    """x: (N, C, 16, 16) float32 -> (N, 1, 1, 1) sigmoid output."""
    N, C, H, W = x.shape
    assert H == 16 and W == 16, "fused kernel is specialized to 16x16 inputs"

    G = H // 4 + 1                       # pitch of the per-image phase grids (=5)
    V = H // 4                           # valid extent per axis on that grid   (=4)
    R_out = N * G * G                    # rows of every per-layer row slab     (=50)
    R_in = _round_up(R_out + G + 1, 8)   # allocated rows incl. shift slack     (=56)
    n_valid = N * V * V                  # elements/channel entering BN stats   (=32)

    # ---- conv1 input: pad + mod-4 space-to-depth + flatten to a pitch-G row slab ----
    xp = jnp.pad(x, ((0, 0), (0, 0), (1, 4 * G - H - 1), (1, 4 * G - W - 1)))
    xs = xp.reshape(N, C, G, 4, G, 4)
    xs = jnp.transpose(xs, (0, 2, 4, 3, 5, 1)).reshape(N * G * G, 16 * C)
    xs_flat = jnp.zeros((R_in, 16 * C), jnp.float32).at[:R_out].set(xs)

    # ---- conv1 weights: one GEMM operand per (output parity class, row/col carry) ----
    w1 = params["w1"]                    # (16, C, 4, 4)
    w1_mats, l1_plan = [], []
    for rh in range(2):
        for rw in range(2):
            shift = rh * G + rw
            cblock = (1 - rh) * 2 + (1 - rw)   # phase block of conv2's input it feeds
            groups = []
            for qh in range(rh + 1):
                for qw in range(rw + 1):
                    wg = jnp.zeros((16 * C, 16), jnp.float32)
                    for kh in range(4):
                        if (2 * rh + kh) // 4 != qh:
                            continue
                        ph = (2 * rh + kh) % 4
                        for kw in range(4):
                            if (2 * rw + kw) // 4 != qw:
                                continue
                            pw = (2 * rw + kw) % 4
                            blk = (ph * 4 + pw) * C
                            wg = wg.at[blk:blk + C, :].set(w1[:, :, kh, kw].T)
                    groups.append((len(w1_mats), qh * G + qw))
                    w1_mats.append(wg)
            l1_plan.append((shift, cblock, groups))
    w1_packed = jnp.stack(w1_mats, axis=0)          # (9, 16*C, 16)

    # ---- conv2 weights: per (row/col carry, input phase block) ------------------------
    w2 = params["w2"]                    # (8, 16, 4, 4)
    w2_mats = []
    for qh in range(2):
        for qw in range(2):
            for cb in range(4):
                ph, pw = cb // 2, cb % 2
                w2_mats.append(w2[:, :, 2 * qh + ph, 2 * qw + pw].T)   # (16, 8)
    w2_packed = jnp.stack(w2_mats, axis=0)          # (16, 16, 8)

    # ---- valid-row mask / conv3 folded weights / image selector -----------------------
    ar = jnp.arange(G)
    valid2d = ((ar[:, None] < V) & (ar[None, :] < V)).astype(jnp.float32)   # (G, G)
    mask = jnp.tile(valid2d.reshape(G * G), (N,)).reshape(R_out, 1)

    w3 = params["w3"]                    # (1, 8, 4, 4); kernel window == whole 4x4 map
    w3grid = jnp.zeros((G, G, 8), jnp.float32).at[:V, :V, :].set(
        jnp.transpose(w3[0], (1, 2, 0)))
    w3rows = jnp.tile(w3grid.reshape(G * G, 8), (N, 1))                     # (R_out, 8)
    pmat = jnp.repeat(jnp.eye(N, dtype=jnp.float32), G * G, axis=1)         # (N, R_out)

    b1 = params["b1"].reshape(1, 16)
    gamma = params["gamma"].reshape(1, 8)
    beta = params["beta"].reshape(1, 8)
    b3 = params["b3"].reshape(1, 1)

    vmem = lambda: pl.BlockSpec(memory_space=pltpu.MemorySpace.VMEM)
    kernel = _make_fused_kernel(G, R_out, float(n_valid), l1_plan)
    out = pl.pallas_call(
        kernel,
        out_shape=jax.ShapeDtypeStruct((N, 1), jnp.float32),
        in_specs=[vmem() for _ in range(10)],
        out_specs=vmem(),
        scratch_shapes=[pltpu.VMEM((4, R_in, 16), jnp.float32)],
    )(xs_flat, w1_packed, b1, mask, w2_packed, gamma, beta, w3rows, pmat, b3)
    return out.reshape(N, 1, 1, 1)


# ---------------------------------------------------------------------------
# Parameter init (PyTorch-style) and pure-JAX reference for verification
# ---------------------------------------------------------------------------
def init_params(key, channels=3):
    ks = jax.random.split(key, 6)

    def u(k, shape, fan_in):
        bound = 1.0 / jnp.sqrt(fan_in)
        return jax.random.uniform(k, shape, jnp.float32, -bound, bound)

    return {
        "w1": u(ks[0], (16, channels, 4, 4), channels * 16),
        "b1": u(ks[1], (16,), channels * 16),
        "w2": u(ks[2], (8, 16, 4, 4), 16 * 16),
        "b2": u(ks[3], (8,), 16 * 16),
        "gamma": jnp.ones((8,), jnp.float32),
        "beta": jnp.zeros((8,), jnp.float32),
        "w3": u(ks[4], (1, 8, 4, 4), 8 * 16),
        "b3": u(ks[5], (1,), 8 * 16),
    }


def _ref_forward(x, params):
    def conv(x, w, b, stride, pad):
        y = jax.lax.conv_general_dilated(
            x, w, (stride, stride), [(pad, pad), (pad, pad)],
            dimension_numbers=("NCHW", "OIHW", "NCHW"))
        return y + b[None, :, None, None]

    y = conv(x, params["w1"], params["b1"], 2, 1)
    y = jnp.where(y > 0, y, LEAKY_SLOPE * y)
    y = conv(y, params["w2"], params["b2"], 2, 1)
    mean = jnp.mean(y, axis=(0, 2, 3), keepdims=True)
    var = jnp.mean((y - mean) ** 2, axis=(0, 2, 3), keepdims=True)
    y = (y - mean) * jax.lax.rsqrt(var + BN_EPS)
    y = y * params["gamma"][None, :, None, None] + params["beta"][None, :, None, None]
    y = jnp.where(y > 0, y, LEAKY_SLOPE * y)
    y = conv(y, params["w3"], params["b3"], 1, 0)
    return jax.nn.sigmoid(y)


if __name__ == "__main__":
    key = jax.random.PRNGKey(0)
    k_x, k_p = jax.random.split(key)

    # Small input consistent with the module: batch=2, channels=3, spatial=16.
    x = jax.random.normal(k_x, (2, 3, 16, 16), jnp.float32)
    params = init_params(k_p, channels=3)

    fwd = jax.jit(resnet_discriminator_forward)
    out = jax.block_until_ready(fwd(x, params))

    assert out.shape == (2, 1, 1, 1), out.shape

    ref = jax.block_until_ready(_ref_forward(x, params))
    if not jnp.allclose(out, ref, atol=5e-5, rtol=1e-4):
        raise AssertionError(
            f"Pallas output mismatch vs JAX reference: {out.ravel()} vs {ref.ravel()}")

    print("KERNEL_OK")
</pallas_src>

<mosaic_0001>
module attributes {stable_mosaic.version = 11 : i64} {
  func.func @kernel(%arg0: memref<56x48xf32, #tpu.memory_space<vmem>>, %arg1: memref<9x48x16xf32, #tpu.memory_space<vmem>>, %arg2: memref<1x16xf32, #tpu.memory_space<vmem>>, %arg3: memref<50x1xf32, #tpu.memory_space<vmem>>, %arg4: memref<16x16x8xf32, #tpu.memory_space<vmem>>, %arg5: memref<1x8xf32, #tpu.memory_space<vmem>>, %arg6: memref<1x8xf32, #tpu.memory_space<vmem>>, %arg7: memref<50x8xf32, #tpu.memory_space<vmem>>, %arg8: memref<2x50xf32, #tpu.memory_space<vmem>>, %arg9: memref<1x1xf32, #tpu.memory_space<vmem>>, %arg10: memref<2x1xf32, #tpu.memory_space<vmem>>, %arg11: memref<4x56x16xf32, #tpu.memory_space<vmem>>) attributes {dimension_semantics = [], scalar_prefetch = 0 : i64, scratch_operands = 1 : i64, tpu.core_type = #tpu.core_type<tc>} {
    %cst = arith.constant 0.000000e+00 : f32
    %0 = vector.broadcast %cst : f32 to vector<4x56x16xf32>
    %c0 = arith.constant 0 : index
    %c0_0 = arith.constant 0 : index
    %c0_1 = arith.constant 0 : index
    %1 = vector.load %arg11[%c0, %c0_0, %c0_1] : memref<4x56x16xf32, #tpu.memory_space<vmem>>, vector<4x56x16xf32>
    tpu.vector_store %arg11[%c0, %c0_0, %c0_1], %0 {strides = array<i32>} : memref<4x56x16xf32, #tpu.memory_space<vmem>>, vector<4x56x16xf32>,
    %c0_2 = arith.constant 0 : index
    %c0_3 = arith.constant 0 : index
    %2 = vector.load %arg3[%c0_2, %c0_3] : memref<50x1xf32, #tpu.memory_space<vmem>>, vector<50x1xf32>
    %c0_4 = arith.constant 0 : index
    %c0_5 = arith.constant 0 : index
    %3 = vector.load %arg2[%c0_4, %c0_5] : memref<1x16xf32, #tpu.memory_space<vmem>>, vector<1x16xf32>
    %cst_6 = arith.constant 0.000000e+00 : f32
    %4 = vector.broadcast %cst_6 : f32 to vector<50x16xf32>
    %c0_7 = arith.constant 0 : index
    %c0_8 = arith.constant 0 : index
    %5 = vector.load %arg0[%c0_7, %c0_8] : memref<56x48xf32, #tpu.memory_space<vmem>>, vector<50x48xf32>
    %c0_9 = arith.constant 0 : index
    %c0_10 = arith.constant 0 : index
    %c0_11 = arith.constant 0 : index
    %6 = vector.load %arg1[%c0_9, %c0_10, %c0_11] : memref<9x48x16xf32, #tpu.memory_space<vmem>>, vector<1x48x16xf32>
    %7 = vector.shape_cast %6 : vector<1x48x16xf32> to vector<48x16xf32>
    %cst_12 = arith.constant dense<0.000000e+00> : vector<50x16xf32>
    %8 = tpu.matmul %5, %7, %cst_12 {dimension_numbers = #tpu.dot_dimension_numbers<[1], [0], [0], [1], [0, 0, 1, 1], [], []>} : vector<50x48xf32>, vector<48x16xf32>, vector<50x16xf32> -> vector<50x16xf32>
    %9 = arith.addf %4, %8 : vector<50x16xf32>
    %10 = vector.broadcast %3 : vector<1x16xf32> to vector<50x16xf32>
    %11 = arith.addf %9, %10 : vector<50x16xf32>
    %cst_13 = arith.constant 0.000000e+00 : f32
    %12 = vector.broadcast %cst_13 : f32 to vector<50x16xf32>
    %13 = arith.cmpf ogt, %11, %12 : vector<50x16xf32>
    %cst_14 = arith.constant 2.000000e-01 : f32
    %14 = vector.broadcast %cst_14 : f32 to vector<50x16xf32>
    %15 = arith.mulf %14, %11 : vector<50x16xf32>
    %16 = arith.select %13, %11, %15 : vector<50x16xi1>, vector<50x16xf32>
    %17 = vector.broadcast %2 : vector<50x1xf32> to vector<50x16xf32>
    %18 = arith.mulf %16, %17 : vector<50x16xf32>
    %c3 = arith.constant 3 : index
    %c0_15 = arith.constant 0 : index
    %c0_16 = arith.constant 0 : index
    %19 = vector.load %arg11[%c3, %c0_15, %c0_16] : memref<4x56x16xf32, #tpu.memory_space<vmem>>, vector<1x50x16xf32>
    %20 = vector.shape_cast %19 : vector<1x50x16xf32> to vector<50x16xf32>
    %21 = vector.shape_cast %18 : vector<50x16xf32> to vector<1x50x16xf32>
    tpu.vector_store %arg11[%c3, %c0_15, %c0_16], %21 {strides = array<i32>} : memref<4x56x16xf32, #tpu.memory_space<vmem>>, vector<1x50x16xf32>,
    %cst_17 = arith.constant 0.000000e+00 : f32
    %22 = vector.broadcast %cst_17 : f32 to vector<50x16xf32>
    %c0_18 = arith.constant 0 : index
    %c0_19 = arith.constant 0 : index
    %23 = vector.load %arg0[%c0_18, %c0_19] : memref<56x48xf32, #tpu.memory_space<vmem>>, vector<50x48xf32>
    %c1 = arith.constant 1 : index
    %c0_20 = arith.constant 0 : index
    %c0_21 = arith.constant 0 : index
    %24 = vector.load %arg1[%c1, %c0_20, %c0_21] : memref<9x48x16xf32, #tpu.memory_space<vmem>>, vector<1x48x16xf32>
    %25 = vector.shape_cast %24 : vector<1x48x16xf32> to vector<48x16xf32>
    %cst_22 = arith.constant dense<0.000000e+00> : vector<50x16xf32>
    %26 = tpu.matmul %23, %25, %cst_22 {dimension_numbers = #tpu.dot_dimension_numbers<[1], [0], [0], [1], [0, 0, 1, 1], [], []>} : vector<50x48xf32>, vector<48x16xf32>, vector<50x16xf32> -> vector<50x16xf32>
    %27 = arith.addf %22, %26 : vector<50x16xf32>
    %c1_23 = arith.constant 1 : index
    %c0_24 = arith.constant 0 : index
    %28 = vector.load %arg0[%c1_23, %c0_24] : memref<56x48xf32, #tpu.memory_space<vmem>>, vector<50x48xf32>
    %c2 = arith.constant 2 : index
    %c0_25 = arith.constant 0 : index
    %c0_26 = arith.constant 0 : index
    %29 = vector.load %arg1[%c2, %c0_25, %c0_26] : memref<9x48x16xf32, #tpu.memory_space<vmem>>, vector<1x48x16xf32>
    %30 = vector.shape_cast %29 : vector<1x48x16xf32> to vector<48x16xf32>
    %cst_27 = arith.constant dense<0.000000e+00> : vector<50x16xf32>
    %31 = tpu.matmul %28, %30, %cst_27 {dimension_numbers = #tpu.dot_dimension_numbers<[1], [0], [0], [1], [0, 0, 1, 1], [], []>} : vector<50x48xf32>, vector<48x16xf32>, vector<50x16xf32> -> vector<50x16xf32>
    %32 = arith.addf %27, %31 : vector<50x16xf32>
    %33 = vector.broadcast %3 : vector<1x16xf32> to vector<50x16xf32>
    %34 = arith.addf %32, %33 : vector<50x16xf32>
    %cst_28 = arith.constant 0.000000e+00 : f32
    %35 = vector.broadcast %cst_28 : f32 to vector<50x16xf32>
    %36 = arith.cmpf ogt, %34, %35 : vector<50x16xf32>
    %cst_29 = arith.constant 2.000000e-01 : f32
    %37 = vector.broadcast %cst_29 : f32 to vector<50x16xf32>
    %38 = arith.mulf %37, %34 : vector<50x16xf32>
    %39 = arith.select %36, %34, %38 : vector<50x16xi1>, vector<50x16xf32>
    %40 = vector.broadcast %2 : vector<50x1xf32> to vector<50x16xf32>
    %41 = arith.mulf %39, %40 : vector<50x16xf32>
    %c2_30 = arith.constant 2 : index
    %c1_31 = arith.constant 1 : index
    %c0_32 = arith.constant 0 : index
    %42 = vector.load %arg11[%c2_30, %c1_31, %c0_32] : memref<4x56x16xf32, #tpu.memory_space<vmem>>, vector<1x50x16xf32>
    %43 = vector.shape_cast %42 : vector<1x50x16xf32> to vector<50x16xf32>
    %44 = vector.shape_cast %41 : vector<50x16xf32> to vector<1x50x16xf32>
    tpu.vector_store %arg11[%c2_30, %c1_31, %c0_32], %44 {strides = array<i32>} : memref<4x56x16xf32, #tpu.memory_space<vmem>>, vector<1x50x16xf32>,
    %cst_33 = arith.constant 0.000000e+00 : f32
    %45 = vector.broadcast %cst_33 : f32 to vector<50x16xf32>
    %c0_34 = arith.constant 0 : index
    %c0_35 = arith.constant 0 : index
    %46 = vector.load %arg0[%c0_34, %c0_35] : memref<56x48xf32, #tpu.memory_space<vmem>>, vector<50x48xf32>
    %c3_36 = arith.constant 3 : index
    %c0_37 = arith.constant 0 : index
    %c0_38 = arith.constant 0 : index
    %47 = vector.load %arg1[%c3_36, %c0_37, %c0_38] : memref<9x48x16xf32, #tpu.memory_space<vmem>>, vector<1x48x16xf32>
    %48 = vector.shape_cast %47 : vector<1x48x16xf32> to vector<48x16xf32>
    %cst_39 = arith.constant dense<0.000000e+00> : vector<50x16xf32>
    %49 = tpu.matmul %46, %48, %cst_39 {dimension_numbers = #tpu.dot_dimension_numbers<[1], [0], [0], [1], [0, 0, 1, 1], [], []>} : vector<50x48xf32>, vector<48x16xf32>, vector<50x16xf32> -> vector<50x16xf32>
    %50 = arith.addf %45, %49 : vector<50x16xf32>
    %c5 = arith.constant 5 : index
    %c0_40 = arith.constant 0 : index
    %51 = vector.load %arg0[%c5, %c0_40] : memref<56x48xf32, #tpu.memory_space<vmem>>, vector<50x48xf32>
    %c4 = arith.constant 4 : index
    %c0_41 = arith.constant 0 : index
    %c0_42 = arith.constant 0 : index
    %52 = vector.load %arg1[%c4, %c0_41, %c0_42] : memref<9x48x16xf32, #tpu.memory_space<vmem>>, vector<1x48x16xf32>
    %53 = vector.shape_cast %52 : vector<1x48x16xf32> to vector<48x16xf32>
    %cst_43 = arith.constant dense<0.000000e+00> : vector<50x16xf32>
    %54 = tpu.matmul %51, %53, %cst_43 {dimension_numbers = #tpu.dot_dimension_numbers<[1], [0], [0], [1], [0, 0, 1, 1], [], []>} : vector<50x48xf32>, vector<48x16xf32>, vector<50x16xf32> -> vector<50x16xf32>
    %55 = arith.addf %50, %54 : vector<50x16xf32>
    %56 = vector.broadcast %3 : vector<1x16xf32> to vector<50x16xf32>
    %57 = arith.addf %55, %56 : vector<50x16xf32>
    %cst_44 = arith.constant 0.000000e+00 : f32
    %58 = vector.broadcast %cst_44 : f32 to vector<50x16xf32>
    %59 = arith.cmpf ogt, %57, %58 : vector<50x16xf32>
    %cst_45 = arith.constant 2.000000e-01 : f32
    %60 = vector.broadcast %cst_45 : f32 to vector<50x16xf32>
    %61 = arith.mulf %60, %57 : vector<50x16xf32>
    %62 = arith.select %59, %57, %61 : vector<50x16xi1>, vector<50x16xf32>
    %63 = vector.broadcast %2 : vector<50x1xf32> to vector<50x16xf32>
    %64 = arith.mulf %62, %63 : vector<50x16xf32>
    %c1_46 = arith.constant 1 : index
    %c5_47 = arith.constant 5 : index
    %c0_48 = arith.constant 0 : index
    %65 = vector.load %arg11[%c1_46, %c5_47, %c0_48] : memref<4x56x16xf32, #tpu.memory_space<vmem>>, vector<1x50x16xf32>
    %66 = vector.shape_cast %65 : vector<1x50x16xf32> to vector<50x16xf32>
    %67 = vector.shape_cast %64 : vector<50x16xf32> to vector<1x50x16xf32>
    tpu.vector_store %arg11[%c1_46, %c5_47, %c0_48], %67 {strides = array<i32>} : memref<4x56x16xf32, #tpu.memory_space<vmem>>, vector<1x50x16xf32>,
    %cst_49 = arith.constant 0.000000e+00 : f32
    %68 = vector.broadcast %cst_49 : f32 to vector<50x16xf32>
    %c0_50 = arith.constant 0 : index
    %c0_51 = arith.constant 0 : index
    %69 = vector.load %arg0[%c0_50, %c0_51] : memref<56x48xf32, #tpu.memory_space<vmem>>, vector<50x48xf32>
    %c5_52 = arith.constant 5 : index
    %c0_53 = arith.constant 0 : index
    %c0_54 = arith.constant 0 : index
    %70 = vector.load %arg1[%c5_52, %c0_53, %c0_54] : memref<9x48x16xf32, #tpu.memory_space<vmem>>, vector<1x48x16xf32>
    %71 = vector.shape_cast %70 : vector<1x48x16xf32> to vector<48x16xf32>
    %cst_55 = arith.constant dense<0.000000e+00> : vector<50x16xf32>
    %72 = tpu.matmul %69, %71, %cst_55 {dimension_numbers = #tpu.dot_dimension_numbers<[1], [0], [0], [1], [0, 0, 1, 1], [], []>} : vector<50x48xf32>, vector<48x16xf32>, vector<50x16xf32> -> vector<50x16xf32>
    %73 = arith.addf %68, %72 : vector<50x16xf32>
    %c1_56 = arith.constant 1 : index
    %c0_57 = arith.constant 0 : index
    %74 = vector.load %arg0[%c1_56, %c0_57] : memref<56x48xf32, #tpu.memory_space<vmem>>, vector<50x48xf32>
    %c6 = arith.constant 6 : index
    %c0_58 = arith.constant 0 : index
    %c0_59 = arith.constant 0 : index
    %75 = vector.load %arg1[%c6, %c0_58, %c0_59] : memref<9x48x16xf32, #tpu.memory_space<vmem>>, vector<1x48x16xf32>
    %76 = vector.shape_cast %75 : vector<1x48x16xf32> to vector<48x16xf32>
    %cst_60 = arith.constant dense<0.000000e+00> : vector<50x16xf32>
    %77 = tpu.matmul %74, %76, %cst_60 {dimension_numbers = #tpu.dot_dimension_numbers<[1], [0], [0], [1], [0, 0, 1, 1], [], []>} : vector<50x48xf32>, vector<48x16xf32>, vector<50x16xf32> -> vector<50x16xf32>
    %78 = arith.addf %73, %77 : vector<50x16xf32>
    %c5_61 = arith.constant 5 : index
    %c0_62 = arith.constant 0 : index
    %79 = vector.load %arg0[%c5_61, %c0_62] : memref<56x48xf32, #tpu.memory_space<vmem>>, vector<50x48xf32>
    %c7 = arith.constant 7 : index
    %c0_63 = arith.constant 0 : index
    %c0_64 = arith.constant 0 : index
    %80 = vector.load %arg1[%c7, %c0_63, %c0_64] : memref<9x48x16xf32, #tpu.memory_space<vmem>>, vector<1x48x16xf32>
    %81 = vector.shape_cast %80 : vector<1x48x16xf32> to vector<48x16xf32>
    %cst_65 = arith.constant dense<0.000000e+00> : vector<50x16xf32>
    %82 = tpu.matmul %79, %81, %cst_65 {dimension_numbers = #tpu.dot_dimension_numbers<[1], [0], [0], [1], [0, 0, 1, 1], [], []>} : vector<50x48xf32>, vector<48x16xf32>, vector<50x16xf32> -> vector<50x16xf32>
    %83 = arith.addf %78, %82 : vector<50x16xf32>
    %c6_66 = arith.constant 6 : index
    %c0_67 = arith.constant 0 : index
    %84 = vector.load %arg0[%c6_66, %c0_67] : memref<56x48xf32, #tpu.memory_space<vmem>>, vector<50x48xf32>
    %c8 = arith.constant 8 : index
    %c0_68 = arith.constant 0 : index
    %c0_69 = arith.constant 0 : index
    %85 = vector.load %arg1[%c8, %c0_68, %c0_69] : memref<9x48x16xf32, #tpu.memory_space<vmem>>, vector<1x48x16xf32>
    %86 = vector.shape_cast %85 : vector<1x48x16xf32> to vector<48x16xf32>
    %cst_70 = arith.constant dense<0.000000e+00> : vector<50x16xf32>
    %87 = tpu.matmul %84, %86, %cst_70 {dimension_numbers = #tpu.dot_dimension_numbers<[1], [0], [0], [1], [0, 0, 1, 1], [], []>} : vector<50x48xf32>, vector<48x16xf32>, vector<50x16xf32> -> vector<50x16xf32>
    %88 = arith.addf %83, %87 : vector<50x16xf32>
    %89 = vector.broadcast %3 : vector<1x16xf32> to vector<50x16xf32>
    %90 = arith.addf %88, %89 : vector<50x16xf32>
    %cst_71 = arith.constant 0.000000e+00 : f32
    %91 = vector.broadcast %cst_71 : f32 to vector<50x16xf32>
    %92 = arith.cmpf ogt, %90, %91 : vector<50x16xf32>
    %cst_72 = arith.constant 2.000000e-01 : f32
    %93 = vector.broadcast %cst_72 : f32 to vector<50x16xf32>
    %94 = arith.mulf %93, %90 : vector<50x16xf32>
    %95 = arith.select %92, %90, %94 : vector<50x16xi1>, vector<50x16xf32>
    %96 = vector.broadcast %2 : vector<50x1xf32> to vector<50x16xf32>
    %97 = arith.mulf %95, %96 : vector<50x16xf32>
    %c0_73 = arith.constant 0 : index
    %c6_74 = arith.constant 6 : index
    %c0_75 = arith.constant 0 : index
    %98 = vector.load %arg11[%c0_73, %c6_74, %c0_75] : memref<4x56x16xf32, #tpu.memory_space<vmem>>, vector<1x50x16xf32>
    %99 = vector.shape_cast %98 : vector<1x50x16xf32> to vector<50x16xf32>
    %100 = vector.shape_cast %97 : vector<50x16xf32> to vector<1x50x16xf32>
    tpu.vector_store %arg11[%c0_73, %c6_74, %c0_75], %100 {strides = array<i32>} : memref<4x56x16xf32, #tpu.memory_space<vmem>>, vector<1x50x16xf32>,
    %cst_76 = arith.constant 0.000000e+00 : f32
    %101 = vector.broadcast %cst_76 : f32 to vector<50x8xf32>
    %c0_77 = arith.constant 0 : index
    %c0_78 = arith.constant 0 : index
    %c0_79 = arith.constant 0 : index
    %102 = vector.load %arg11[%c0_77, %c0_78, %c0_79] : memref<4x56x16xf32, #tpu.memory_space<vmem>>, vector<1x50x16xf32>
    %103 = vector.shape_cast %102 : vector<1x50x16xf32> to vector<50x16xf32>
    %c0_80 = arith.constant 0 : index
    %c0_81 = arith.constant 0 : index
    %c0_82 = arith.constant 0 : index
    %104 = vector.load %arg4[%c0_80, %c0_81, %c0_82] : memref<16x16x8xf32, #tpu.memory_space<vmem>>, vector<1x16x8xf32>
    %105 = vector.shape_cast %104 : vector<1x16x8xf32> to vector<16x8xf32>
    %cst_83 = arith.constant dense<0.000000e+00> : vector<50x8xf32>
    %106 = tpu.matmul %103, %105, %cst_83 {dimension_numbers = #tpu.dot_dimension_numbers<[1], [0], [0], [1], [0, 0, 1, 1], [], []>} : vector<50x16xf32>, vector<16x8xf32>, vector<50x8xf32> -> vector<50x8xf32>
    %107 = arith.addf %101, %106 : vector<50x8xf32>
    %c1_84 = arith.constant 1 : index
    %c0_85 = arith.constant 0 : index
    %c0_86 = arith.constant 0 : index
    %108 = vector.load %arg11[%c1_84, %c0_85, %c0_86] : memref<4x56x16xf32, #tpu.memory_space<vmem>>, vector<1x50x16xf32>
    %109 = vector.shape_cast %108 : vector<1x50x16xf32> to vector<50x16xf32>
    %c1_87 = arith.constant 1 : index
    %c0_88 = arith.constant 0 : index
    %c0_89 = arith.constant 0 : index
    %110 = vector.load %arg4[%c1_87, %c0_88, %c0_89] : memref<16x16x8xf32, #tpu.memory_space<vmem>>, vector<1x16x8xf32>
    %111 = vector.shape_cast %110 : vector<1x16x8xf32> to vector<16x8xf32>
    %cst_90 = arith.constant dense<0.000000e+00> : vector<50x8xf32>
    %112 = tpu.matmul %109, %111, %cst_90 {dimension_numbers = #tpu.dot_dimension_numbers<[1], [0], [0], [1], [0, 0, 1, 1], [], []>} : vector<50x16xf32>, vector<16x8xf32>, vector<50x8xf32> -> vector<50x8xf32>
    %113 = arith.addf %107, %112 : vector<50x8xf32>
    %c2_91 = arith.constant 2 : index
    %c0_92 = arith.constant 0 : index
    %c0_93 = arith.constant 0 : index
    %114 = vector.load %arg11[%c2_91, %c0_92, %c0_93] : memref<4x56x16xf32, #tpu.memory_space<vmem>>, vector<1x50x16xf32>
    %115 = vector.shape_cast %114 : vector<1x50x16xf32> to vector<50x16xf32>
    %c2_94 = arith.constant 2 : index
    %c0_95 = arith.constant 0 : index
    %c0_96 = arith.constant 0 : index
    %116 = vector.load %arg4[%c2_94, %c0_95, %c0_96] : memref<16x16x8xf32, #tpu.memory_space<vmem>>, vector<1x16x8xf32>
    %117 = vector.shape_cast %116 : vector<1x16x8xf32> to vector<16x8xf32>
    %cst_97 = arith.constant dense<0.000000e+00> : vector<50x8xf32>
    %118 = tpu.matmul %115, %117, %cst_97 {dimension_numbers = #tpu.dot_dimension_numbers<[1], [0], [0], [1], [0, 0, 1, 1], [], []>} : vector<50x16xf32>, vector<16x8xf32>, vector<50x8xf32> -> vector<50x8xf32>
    %119 = arith.addf %113, %118 : vector<50x8xf32>
    %c3_98 = arith.constant 3 : index
    %c0_99 = arith.constant 0 : index
    %c0_100 = arith.constant 0 : index
    %120 = vector.load %arg11[%c3_98, %c0_99, %c0_100] : memref<4x56x16xf32, #tpu.memory_space<vmem>>, vector<1x50x16xf32>
    %121 = vector.shape_cast %120 : vector<1x50x16xf32> to vector<50x16xf32>
    %c3_101 = arith.constant 3 : index
    %c0_102 = arith.constant 0 : index
    %c0_103 = arith.constant 0 : index
    %122 = vector.load %arg4[%c3_101, %c0_102, %c0_103] : memref<16x16x8xf32, #tpu.memory_space<vmem>>, vector<1x16x8xf32>
    %123 = vector.shape_cast %122 : vector<1x16x8xf32> to vector<16x8xf32>
    %cst_104 = arith.constant dense<0.000000e+00> : vector<50x8xf32>
    %124 = tpu.matmul %121, %123, %cst_104 {dimension_numbers = #tpu.dot_dimension_numbers<[1], [0], [0], [1], [0, 0, 1, 1], [], []>} : vector<50x16xf32>, vector<16x8xf32>, vector<50x8xf32> -> vector<50x8xf32>
    %125 = arith.addf %119, %124 : vector<50x8xf32>
    %c0_105 = arith.constant 0 : index
    %c1_106 = arith.constant 1 : index
    %c0_107 = arith.constant 0 : index
    %126 = vector.load %arg11[%c0_105, %c1_106, %c0_107] : memref<4x56x16xf32, #tpu.memory_space<vmem>>, vector<1x50x16xf32>
    %127 = vector.shape_cast %126 : vector<1x50x16xf32> to vector<50x16xf32>
    %c4_108 = arith.constant 4 : index
    %c0_109 = arith.constant 0 : index
    %c0_110 = arith.constant 0 : index
    %128 = vector.load %arg4[%c4_108, %c0_109, %c0_110] : memref<16x16x8xf32, #tpu.memory_space<vmem>>, vector<1x16x8xf32>
    %129 = vector.shape_cast %128 : vector<1x16x8xf32> to vector<16x8xf32>
    %cst_111 = arith.constant dense<0.000000e+00> : vector<50x8xf32>
    %130 = tpu.matmul %127, %129, %cst_111 {dimension_numbers = #tpu.dot_dimension_numbers<[1], [0], [0], [1], [0, 0, 1, 1], [], []>} : vector<50x16xf32>, vector<16x8xf32>, vector<50x8xf32> -> vector<50x8xf32>
    %131 = arith.addf %125, %130 : vector<50x8xf32>
    %c1_112 = arith.constant 1 : index
    %c1_113 = arith.constant 1 : index
    %c0_114 = arith.constant 0 : index
    %132 = vector.load %arg11[%c1_112, %c1_113, %c0_114] : memref<4x56x16xf32, #tpu.memory_space<vmem>>, vector<1x50x16xf32>
    %133 = vector.shape_cast %132 : vector<1x50x16xf32> to vector<50x16xf32>
    %c5_115 = arith.constant 5 : index
    %c0_116 = arith.constant 0 : index
    %c0_117 = arith.constant 0 : index
    %134 = vector.load %arg4[%c5_115, %c0_116, %c0_117] : memref<16x16x8xf32, #tpu.memory_space<vmem>>, vector<1x16x8xf32>
    %135 = vector.shape_cast %134 : vector<1x16x8xf32> to vector<16x8xf32>
    %cst_118 = arith.constant dense<0.000000e+00> : vector<50x8xf32>
    %136 = tpu.matmul %133, %135, %cst_118 {dimension_numbers = #tpu.dot_dimension_numbers<[1], [0], [0], [1], [0, 0, 1, 1], [], []>} : vector<50x16xf32>, vector<16x8xf32>, vector<50x8xf32> -> vector<50x8xf32>
    %137 = arith.addf %131, %136 : vector<50x8xf32>
    %c2_119 = arith.constant 2 : index
    %c1_120 = arith.constant 1 : index
    %c0_121 = arith.constant 0 : index
    %138 = vector.load %arg11[%c2_119, %c1_120, %c0_121] : memref<4x56x16xf32, #tpu.memory_space<vmem>>, vector<1x50x16xf32>
    %139 = vector.shape_cast %138 : vector<1x50x16xf32> to vector<50x16xf32>
    %c6_122 = arith.constant 6 : index
    %c0_123 = arith.constant 0 : index
    %c0_124 = arith.constant 0 : index
    %140 = vector.load %arg4[%c6_122, %c0_123, %c0_124] : memref<16x16x8xf32, #tpu.memory_space<vmem>>, vector<1x16x8xf32>
    %141 = vector.shape_cast %140 : vector<1x16x8xf32> to vector<16x8xf32>
    %cst_125 = arith.constant dense<0.000000e+00> : vector<50x8xf32>
    %142 = tpu.matmul %139, %141, %cst_125 {dimension_numbers = #tpu.dot_dimension_numbers<[1], [0], [0], [1], [0, 0, 1, 1], [], []>} : vector<50x16xf32>, vector<16x8xf32>, vector<50x8xf32> -> vector<50x8xf32>
    %143 = arith.addf %137, %142 : vector<50x8xf32>
    %c3_126 = arith.constant 3 : index
    %c1_127 = arith.constant 1 : index
    %c0_128 = arith.constant 0 : index
    %144 = vector.load %arg11[%c3_126, %c1_127, %c0_128] : memref<4x56x16xf32, #tpu.memory_space<vmem>>, vector<1x50x16xf32>
    %145 = vector.shape_cast %144 : vector<1x50x16xf32> to vector<50x16xf32>
    %c7_129 = arith.constant 7 : index
    %c0_130 = arith.constant 0 : index
    %c0_131 = arith.constant 0 : index
    %146 = vector.load %arg4[%c7_129, %c0_130, %c0_131] : memref<16x16x8xf32, #tpu.memory_space<vmem>>, vector<1x16x8xf32>
    %147 = vector.shape_cast %146 : vector<1x16x8xf32> to vector<16x8xf32>
    %cst_132 = arith.constant dense<0.000000e+00> : vector<50x8xf32>
    %148 = tpu.matmul %145, %147, %cst_132 {dimension_numbers = #tpu.dot_dimension_numbers<[1], [0], [0], [1], [0, 0, 1, 1], [], []>} : vector<50x16xf32>, vector<16x8xf32>, vector<50x8xf32> -> vector<50x8xf32>
    %149 = arith.addf %143, %148 : vector<50x8xf32>
    %c0_133 = arith.constant 0 : index
    %c5_134 = arith.constant 5 : index
    %c0_135 = arith.constant 0 : index
    %150 = vector.load %arg11[%c0_133, %c5_134, %c0_135] : memref<4x56x16xf32, #tpu.memory_space<vmem>>, vector<1x50x16xf32>
    %151 = vector.shape_cast %150 : vector<1x50x16xf32> to vector<50x16xf32>
    %c8_136 = arith.constant 8 : index
    %c0_137 = arith.constant 0 : index
    %c0_138 = arith.constant 0 : index
    %152 = vector.load %arg4[%c8_136, %c0_137, %c0_138] : memref<16x16x8xf32, #tpu.memory_space<vmem>>, vector<1x16x8xf32>
    %153 = vector.shape_cast %152 : vector<1x16x8xf32> to vector<16x8xf32>
    %cst_139 = arith.constant dense<0.000000e+00> : vector<50x8xf32>
    %154 = tpu.matmul %151, %153, %cst_139 {dimension_numbers = #tpu.dot_dimension_numbers<[1], [0], [0], [1], [0, 0, 1, 1], [], []>} : vector<50x16xf32>, vector<16x8xf32>, vector<50x8xf32> -> vector<50x8xf32>
    %155 = arith.addf %149, %154 : vector<50x8xf32>
    %c1_140 = arith.constant 1 : index
    %c5_141 = arith.constant 5 : index
    %c0_142 = arith.constant 0 : index
    %156 = vector.load %arg11[%c1_140, %c5_141, %c0_142] : memref<4x56x16xf32, #tpu.memory_space<vmem>>, vector<1x50x16xf32>
    %157 = vector.shape_cast %156 : vector<1x50x16xf32> to vector<50x16xf32>
    %c9 = arith.constant 9 : index
    %c0_143 = arith.constant 0 : index
    %c0_144 = arith.constant 0 : index
    %158 = vector.load %arg4[%c9, %c0_143, %c0_144] : memref<16x16x8xf32, #tpu.memory_space<vmem>>, vector<1x16x8xf32>
    %159 = vector.shape_cast %158 : vector<1x16x8xf32> to vector<16x8xf32>
    %cst_145 = arith.constant dense<0.000000e+00> : vector<50x8xf32>
    %160 = tpu.matmul %157, %159, %cst_145 {dimension_numbers = #tpu.dot_dimension_numbers<[1], [0], [0], [1], [0, 0, 1, 1], [], []>} : vector<50x16xf32>, vector<16x8xf32>, vector<50x8xf32> -> vector<50x8xf32>
    %161 = arith.addf %155, %160 : vector<50x8xf32>
    %c2_146 = arith.constant 2 : index
    %c5_147 = arith.constant 5 : index
    %c0_148 = arith.constant 0 : index
    %162 = vector.load %arg11[%c2_146, %c5_147, %c0_148] : memref<4x56x16xf32, #tpu.memory_space<vmem>>, vector<1x50x16xf32>
    %163 = vector.shape_cast %162 : vector<1x50x16xf32> to vector<50x16xf32>
    %c10 = arith.constant 10 : index
    %c0_149 = arith.constant 0 : index
    %c0_150 = arith.constant 0 : index
    %164 = vector.load %arg4[%c10, %c0_149, %c0_150] : memref<16x16x8xf32, #tpu.memory_space<vmem>>, vector<1x16x8xf32>
    %165 = vector.shape_cast %164 : vector<1x16x8xf32> to vector<16x8xf32>
    %cst_151 = arith.constant dense<0.000000e+00> : vector<50x8xf32>
    %166 = tpu.matmul %163, %165, %cst_151 {dimension_numbers = #tpu.dot_dimension_numbers<[1], [0], [0], [1], [0, 0, 1, 1], [], []>} : vector<50x16xf32>, vector<16x8xf32>, vector<50x8xf32> -> vector<50x8xf32>
    %167 = arith.addf %161, %166 : vector<50x8xf32>
    %c3_152 = arith.constant 3 : index
    %c5_153 = arith.constant 5 : index
    %c0_154 = arith.constant 0 : index
    %168 = vector.load %arg11[%c3_152, %c5_153, %c0_154] : memref<4x56x16xf32, #tpu.memory_space<vmem>>, vector<1x50x16xf32>
    %169 = vector.shape_cast %168 : vector<1x50x16xf32> to vector<50x16xf32>
    %c11 = arith.constant 11 : index
    %c0_155 = arith.constant 0 : index
    %c0_156 = arith.constant 0 : index
    %170 = vector.load %arg4[%c11, %c0_155, %c0_156] : memref<16x16x8xf32, #tpu.memory_space<vmem>>, vector<1x16x8xf32>
    %171 = vector.shape_cast %170 : vector<1x16x8xf32> to vector<16x8xf32>
    %cst_157 = arith.constant dense<0.000000e+00> : vector<50x8xf32>
    %172 = tpu.matmul %169, %171, %cst_157 {dimension_numbers = #tpu.dot_dimension_numbers<[1], [0], [0], [1], [0, 0, 1, 1], [], []>} : vector<50x16xf32>, vector<16x8xf32>, vector<50x8xf32> -> vector<50x8xf32>
    %173 = arith.addf %167, %172 : vector<50x8xf32>
    %c0_158 = arith.constant 0 : index
    %c6_159 = arith.constant 6 : index
    %c0_160 = arith.constant 0 : index
    %174 = vector.load %arg11[%c0_158, %c6_159, %c0_160] : memref<4x56x16xf32, #tpu.memory_space<vmem>>, vector<1x50x16xf32>
    %175 = vector.shape_cast %174 : vector<1x50x16xf32> to vector<50x16xf32>
    %c12 = arith.constant 12 : index
    %c0_161 = arith.constant 0 : index
    %c0_162 = arith.constant 0 : index
    %176 = vector.load %arg4[%c12, %c0_161, %c0_162] : memref<16x16x8xf32, #tpu.memory_space<vmem>>, vector<1x16x8xf32>
    %177 = vector.shape_cast %176 : vector<1x16x8xf32> to vector<16x8xf32>
    %cst_163 = arith.constant dense<0.000000e+00> : vector<50x8xf32>
    %178 = tpu.matmul %175, %177, %cst_163 {dimension_numbers = #tpu.dot_dimension_numbers<[1], [0], [0], [1], [0, 0, 1, 1], [], []>} : vector<50x16xf32>, vector<16x8xf32>, vector<50x8xf32> -> vector<50x8xf32>
    %179 = arith.addf %173, %178 : vector<50x8xf32>
    %c1_164 = arith.constant 1 : index
    %c6_165 = arith.constant 6 : index
    %c0_166 = arith.constant 0 : index
    %180 = vector.load %arg11[%c1_164, %c6_165, %c0_166] : memref<4x56x16xf32, #tpu.memory_space<vmem>>, vector<1x50x16xf32>
    %181 = vector.shape_cast %180 : vector<1x50x16xf32> to vector<50x16xf32>
    %c13 = arith.constant 13 : index
    %c0_167 = arith.constant 0 : index
    %c0_168 = arith.constant 0 : index
    %182 = vector.load %arg4[%c13, %c0_167, %c0_168] : memref<16x16x8xf32, #tpu.memory_space<vmem>>, vector<1x16x8xf32>
    %183 = vector.shape_cast %182 : vector<1x16x8xf32> to vector<16x8xf32>
    %cst_169 = arith.constant dense<0.000000e+00> : vector<50x8xf32>
    %184 = tpu.matmul %181, %183, %cst_169 {dimension_numbers = #tpu.dot_dimension_numbers<[1], [0], [0], [1], [0, 0, 1, 1], [], []>} : vector<50x16xf32>, vector<16x8xf32>, vector<50x8xf32> -> vector<50x8xf32>
    %185 = arith.addf %179, %184 : vector<50x8xf32>
    %c2_170 = arith.constant 2 : index
    %c6_171 = arith.constant 6 : index
    %c0_172 = arith.constant 0 : index
    %186 = vector.load %arg11[%c2_170, %c6_171, %c0_172] : memref<4x56x16xf32, #tpu.memory_space<vmem>>, vector<1x50x16xf32>
    %187 = vector.shape_cast %186 : vector<1x50x16xf32> to vector<50x16xf32>
    %c14 = arith.constant 14 : index
    %c0_173 = arith.constant 0 : index
    %c0_174 = arith.constant 0 : index
    %188 = vector.load %arg4[%c14, %c0_173, %c0_174] : memref<16x16x8xf32, #tpu.memory_space<vmem>>, vector<1x16x8xf32>
    %189 = vector.shape_cast %188 : vector<1x16x8xf32> to vector<16x8xf32>
    %cst_175 = arith.constant dense<0.000000e+00> : vector<50x8xf32>
    %190 = tpu.matmul %187, %189, %cst_175 {dimension_numbers = #tpu.dot_dimension_numbers<[1], [0], [0], [1], [0, 0, 1, 1], [], []>} : vector<50x16xf32>, vector<16x8xf32>, vector<50x8xf32> -> vector<50x8xf32>
    %191 = arith.addf %185, %190 : vector<50x8xf32>
    %c3_176 = arith.constant 3 : index
    %c6_177 = arith.constant 6 : index
    %c0_178 = arith.constant 0 : index
    %192 = vector.load %arg11[%c3_176, %c6_177, %c0_178] : memref<4x56x16xf32, #tpu.memory_space<vmem>>, vector<1x50x16xf32>
    %193 = vector.shape_cast %192 : vector<1x50x16xf32> to vector<50x16xf32>
    %c15 = arith.constant 15 : index
    %c0_179 = arith.constant 0 : index
    %c0_180 = arith.constant 0 : index
    %194 = vector.load %arg4[%c15, %c0_179, %c0_180] : memref<16x16x8xf32, #tpu.memory_space<vmem>>, vector<1x16x8xf32>
    %195 = vector.shape_cast %194 : vector<1x16x8xf32> to vector<16x8xf32>
    %cst_181 = arith.constant dense<0.000000e+00> : vector<50x8xf32>
    %196 = tpu.matmul %193, %195, %cst_181 {dimension_numbers = #tpu.dot_dimension_numbers<[1], [0], [0], [1], [0, 0, 1, 1], [], []>} : vector<50x16xf32>, vector<16x8xf32>, vector<50x8xf32> -> vector<50x8xf32>
    %197 = arith.addf %191, %196 : vector<50x8xf32>
    %198 = vector.broadcast %2 : vector<50x1xf32> to vector<50x8xf32>
    %199 = arith.mulf %197, %198 : vector<50x8xf32>
    %cst_182 = arith.constant dense<0.000000e+00> : vector<8xf32>
    %200 = vector.multi_reduction <add>, %199, %cst_182 [0] : vector<50x8xf32> to vector<8xf32>
    %201 = vector.shape_cast %200 : vector<8xf32> to vector<1x8xf32>
    %cst_183 = arith.constant 3.200000e+01 : f32
    %202 = vector.broadcast %cst_183 : f32 to vector<1x8xf32>
    %203 = arith.divf %201, %202 : vector<1x8xf32>
    %204 = vector.broadcast %203 : vector<1x8xf32> to vector<50x8xf32>
    %205 = arith.subf %197, %204 : vector<50x8xf32>
    %206 = arith.mulf %205, %205 : vector<50x8xf32>
    %207 = vector.broadcast %2 : vector<50x1xf32> to vector<50x8xf32>
    %208 = arith.mulf %206, %207 : vector<50x8xf32>
    %cst_184 = arith.constant dense<0.000000e+00> : vector<8xf32>
    %209 = vector.multi_reduction <add>, %208, %cst_184 [0] : vector<50x8xf32> to vector<8xf32>
    %210 = vector.shape_cast %209 : vector<8xf32> to vector<1x8xf32>
    %cst_185 = arith.constant 3.200000e+01 : f32
    %211 = vector.broadcast %cst_185 : f32 to vector<1x8xf32>
    %212 = arith.divf %210, %211 : vector<1x8xf32>
    %cst_186 = arith.constant 9.99999974E-6 : f32
    %213 = vector.broadcast %cst_186 : f32 to vector<1x8xf32>
    %214 = arith.addf %212, %213 : vector<1x8xf32>
    %215 = math.rsqrt %214 : vector<1x8xf32>
    %216 = vector.broadcast %215 : vector<1x8xf32> to vector<50x8xf32>
    %217 = arith.mulf %205, %216 : vector<50x8xf32>
    %c0_187 = arith.constant 0 : index
    %c0_188 = arith.constant 0 : index
    %218 = vector.load %arg5[%c0_187, %c0_188] : memref<1x8xf32, #tpu.memory_space<vmem>>, vector<1x8xf32>
    %219 = vector.broadcast %218 : vector<1x8xf32> to vector<50x8xf32>
    %220 = arith.mulf %217, %219 : vector<50x8xf32>
    %c0_189 = arith.constant 0 : index
    %c0_190 = arith.constant 0 : index
    %221 = vector.load %arg6[%c0_189, %c0_190] : memref<1x8xf32, #tpu.memory_space<vmem>>, vector<1x8xf32>
    %222 = vector.broadcast %221 : vector<1x8xf32> to vector<50x8xf32>
    %223 = arith.addf %220, %222 : vector<50x8xf32>
    %cst_191 = arith.constant 0.000000e+00 : f32
    %224 = vector.broadcast %cst_191 : f32 to vector<50x8xf32>
    %225 = arith.cmpf ogt, %223, %224 : vector<50x8xf32>
    %cst_192 = arith.constant 2.000000e-01 : f32
    %226 = vector.broadcast %cst_192 : f32 to vector<50x8xf32>
    %227 = arith.mulf %226, %223 : vector<50x8xf32>
    %228 = arith.select %225, %223, %227 : vector<50x8xi1>, vector<50x8xf32>
    %c0_193 = arith.constant 0 : index
    %c0_194 = arith.constant 0 : index
    %229 = vector.load %arg7[%c0_193, %c0_194] : memref<50x8xf32, #tpu.memory_space<vmem>>, vector<50x8xf32>
    %230 = arith.mulf %228, %229 : vector<50x8xf32>
    %c0_195 = arith.constant 0 : index
    %c0_196 = arith.constant 0 : index
    %231 = vector.load %arg8[%c0_195, %c0_196] : memref<2x50xf32, #tpu.memory_space<vmem>>, vector<2x50xf32>
    %cst_197 = arith.constant dense<0.000000e+00> : vector<2x8xf32>
    %232 = tpu.matmul %231, %230, %cst_197 {dimension_numbers = #tpu.dot_dimension_numbers<[1], [0], [0], [1], [0, 0, 1, 1], [], []>} : vector<2x50xf32>, vector<50x8xf32>, vector<2x8xf32> -> vector<2x8xf32>
    %cst_198 = arith.constant dense<0.000000e+00> : vector<2xf32>
    %233 = vector.multi_reduction <add>, %232, %cst_198 [1] : vector<2x8xf32> to vector<2xf32>
    %234 = vector.shape_cast %233 : vector<2xf32> to vector<2x1xf32>
    %c0_199 = arith.constant 0 : index
    %c0_200 = arith.constant 0 : index
    %235 = vector.load %arg9[%c0_199, %c0_200] : memref<1x1xf32, #tpu.memory_space<vmem>>, vector<1x1xf32>
    %236 = vector.broadcast %235 : vector<1x1xf32> to vector<2x1xf32>
    %237 = arith.addf %234, %236 : vector<2x1xf32>
    %238 = arith.negf %237 : vector<2x1xf32>
    %239 = math.exp %238 : vector<2x1xf32>
    %cst_201 = arith.constant 1.000000e+00 : f32
    %240 = vector.broadcast %cst_201 : f32 to vector<2x1xf32>
    %241 = arith.addf %240, %239 : vector<2x1xf32>
    %242 = arith.divf %240, %241 : vector<2x1xf32>
    %c0_202 = arith.constant 0 : index
    %c0_203 = arith.constant 0 : index
    %243 = vector.load %arg10[%c0_202, %c0_203] : memref<2x1xf32, #tpu.memory_space<vmem>>, vector<2x1xf32>
    tpu.vector_store %arg10[%c0_202, %c0_203], %242 {strides = array<i32>} : memref<2x1xf32, #tpu.memory_space<vmem>>, vector<2x1xf32>,
    return
  }
}

</mosaic_0001>

<bundles_post_ra>
// kernel: tile.10
= control target key start
LH: loop header
LB: loop body
LE: loop exit
PB: predicated region body
PF: predicated region fallthrough
CT: control target
= control target key end

     0   :  { %s22_s0 = inlined_call_operand.vmem [shape: f32[25], index: 0, kind: input, shape index: {}]   ;;  %s23_s1 = inlined_call_operand.vmem [shape: f32[2,25], index: 1, kind: output, shape index: {}]  }
   0x1   :  { %v4_v0 = vld [vmem:[%s22_s0] ss:$0 sm:$0xff] }
   0x2   :  { %5 = vst [vmem:[%s23_s1] sm:$0x3] %v4_v0 }

// kernel: tile.0
= control target key start
LH: loop header
LB: loop body
LE: loop exit
PB: predicated region body
PF: predicated region fallthrough
CT: control target
= control target key end

     0   :  { %s238_s8 = smov 127   ;;  %s239_s9 = smov 124   ;;  %vm7_vm0 = vcmask 7168   ;;  %s374_s0 = inlined_call_operand.vmem [shape: f32[2,25], index: 0, kind: input, shape index: {}]   ;;  %s375_s1 = inlined_call_operand.vmem [shape: f32[50,1], index: 1, kind: output, shape index: {}]  }
   0x1   :  { %v4_v0 = vld [vmem:[%s374_s0] sm:$0x3]  ;;  %s237_s0 = smov 125   ;;  %s240_s10 = smov 126  }
   0x2   :  { %5 = vst [vmem:[#allocation0] sm:$0x3] %v4_v0  ;;  %s54_s11 = smov 3  ;;  %s46_s12 = smov 3 }
   0x3   :  { %s241_s13 = smov 122   ;;  %s242_s14 = smov 123  }
   0x4   :  { %s70_s15 = smov 3  ;;  %s62_s16 = smov 3 }
   0x5   :  { %s243_s17 = smov 120   ;;  %s244_s18 = smov 121  }
   0x6   :  { %s86_s19 = smov 3  ;;  %s78_s20 = smov 3 }
   0x7   :  { %s245_s21 = smov 118   ;;  %s246_s22 = smov 119  }
   0x8   :  { %s102_s23 = smov 3  ;;  %s94_s24 = smov 3 }
   0x9   :  { %v21_v1 = vld [vmem:[#allocation0] sm:$0x3]   ;;  %s247_s25 = smov 116   ;;  %s248_s26 = smov 117  }
   0xa   :  { %v9_v2 = vld [vmem:[#allocation0] sm:$0x3]   ;;  %22 = vrot.lane.b32.xlu1 %v21_v1, %s237_s0  ;;  %s118_s27 = smov 3  ;;  %s110_s28 = smov 3 }
   0xb   :  { %10 = vrot.lane.b32.xlu0 %v9_v2, %s238_s8  ;;  %v27_v3 = vld [vmem:[#allocation0] sm:$0x3]   ;;  %s249_s29 = smov 114   ;;  %s250_s30 = smov 115  }
   0xc   :  { %v15_v4 = vld [vmem:[#allocation0] sm:$0x3]   ;;  %s134_s2 = smov 3  ;;  %s126_s3 = smov 3 }
   0xd   :  { %v39_v5 = vld [vmem:[#allocation0] sm:$0x3]   ;;  %s251_s4 = smov 112   ;;  %s252_s5 = smov 113  }
   0xe   :  { %28 = vrot.lane.b32.xlu1 %v27_v3, %s239_s9  ;;  %v33_v6 = vld [vmem:[#allocation0] sm:$0x3]   ;;  %s150_s6 = smov 3  ;;  %s142_s7 = smov 3 }
   0xf   :  { %16 = vrot.lane.b32.xlu0 %v15_v4, %s240_s10  ;;  %v55_v7 = vld [vmem:[#allocation0 + $0x1] ss:$-1 sm:%s54_s11]   ;;  %s253_s9 = smov 110   ;;  %s254_s10 = smov 111  }
  0x10   :  { %v47_v8 = vld [vmem:[#allocation0 + $0x1] ss:$-1 sm:%s46_s12]   ;;  %s166_s11 = smov 3  ;;  %s158_s12 = smov 3 }
  0x11   :  { %v71_v9 = vld [vmem:[#allocation0 + $0x1] ss:$-1 sm:%s70_s15]   ;;  %s182_s15 = smov 3 }
  0x12   :  { %40 = vrot.lane.b32.xlu1 %v39_v5, %s241_s13  ;;  %v63_v10 = vld [vmem:[#allocation0 + $0x1] ss:$-1 sm:%s62_s16]   ;;  %s255_s13 = smov 108   ;;  %s174_s16 = smov 3 }
  0x13   :  { %34 = vrot.lane.b32.xlu0 %v33_v6, %s242_s14  ;;  %v87_v11 = vld [vmem:[#allocation0 + $0x1] ss:$-1 sm:%s86_s19]   ;;  %s256_s14 = smov 109   ;;  %s259_s19 = smov 104  }
  0x14   :  { %v79_v12 = vld [vmem:[#allocation0 + $0x1] ss:$-1 sm:%s78_s20]   ;;  %s260_s20 = smov 105  }
  0x15   :  { %v103_v13 = vld [vmem:[#allocation0 + $0x1] ss:$-1 sm:%s102_s23]  }
  0x16   :  { %56 = vrot.lane.b32.xlu1 %v55_v7, %s243_s17  ;;  %v95_v14 = vld [vmem:[#allocation0 + $0x1] ss:$-1 sm:%s94_s24]   ;;  %s257_s17 = smov 106  }
  0x17   :  { %48 = vrot.lane.b32.xlu0 %v47_v8, %s244_s18  ;;  %v119_v15 = vld [vmem:[#allocation0 + $0x1] ss:$-1 sm:%s118_s27]   ;;  %s258_s18 = smov 107  }
  0x18   :  { %v111_v16 = vld [vmem:[#allocation0 + $0x1] ss:$-1 sm:%s110_s28]  }
  0x19   :  { %v135_v17 = vld [vmem:[#allocation0 + $0x1] ss:$-1 sm:%s134_s2]  }
  0x1a   :  { %72 = vrot.lane.b32.xlu1 %v71_v9, %s245_s21  ;;  %v127_v18 = vld [vmem:[#allocation0 + $0x1] ss:$-1 sm:%s126_s3]  }
  0x1b   :  { %64 = vrot.lane.b32.xlu0 %v63_v10, %s246_s22  ;;  %v6_v19 = vld [vmem:[#allocation0] sm:$0x3]  }
  0x1c   :  { %8 = vst.msk [vmem:[%s375_s1] ss:$25 sm:$0x3] %vm7_vm0, %v6_v19   ;;  %v151_v20 = vld [vmem:[#allocation0 + $0x1] ss:$-1 sm:%s150_s6]  }
  0x1d   :  { %v143_v21 = vld [vmem:[#allocation0 + $0x1] ss:$-1 sm:%s142_s7]  }
  0x1e   :  { %88 = vrot.lane.b32.xlu1 %v87_v11, %s247_s25  ;;  %v167_v22 = vld [vmem:[#allocation0 + $0x1] ss:$-1 sm:%s166_s11]  }
  0x1f   :  { %80 = vrot.lane.b32.xlu0 %v79_v12, %s248_s26  ;;  %v159_v23 = vld [vmem:[#allocation0 + $0x1] ss:$-1 sm:%s158_s12]  }
  0x20   :  { %v183_v24 = vld [vmem:[#allocation0 + $0x1] ss:$-1 sm:%s182_s15]  }
  0x21   :  { %v175_v25 = vld [vmem:[#allocation0 + $0x1] ss:$-1 sm:%s174_s16]  }
  0x22   :  { %104 = vrot.lane.b32.xlu1 %v103_v13, %s249_s29 }
  0x23   :  { %96 = vrot.lane.b32.xlu0 %v95_v14, %s250_s30 }
  0x26   :  { %120 = vrot.lane.b32.xlu1 %v119_v15, %s251_s4 }
  0x27   :  { %112 = vrot.lane.b32.xlu0 %v111_v16, %s252_s5 }
  0x2a   :  { %136 = vrot.lane.b32.xlu1 %v135_v17, %s253_s9 }
  0x2b   :  { %128 = vrot.lane.b32.xlu0 %v127_v18, %s254_s10 }
  0x2e   :  { %152 = vrot.lane.b32.xlu1 %v151_v20, %s255_s13 }
  0x2f   :  { %144 = vrot.lane.b32.xlu0 %v143_v21, %s256_s14 }
  0x32   :  { %168 = vrot.lane.b32.xlu1 %v167_v22, %s257_s17 }
  0x33   :  { %160 = vrot.lane.b32.xlu0 %v159_v23, %s258_s18 }
  0x36   :  { %184 = vrot.lane.b32.xlu1 %v183_v24, %s259_s19 }
  0x37   :  { %176 = vrot.lane.b32.xlu0 %v175_v25, %s260_s20 }
  0x7c   :  { %v23_v26 = vpop.permute.xlu1 %22  }
  0x7d   :  { %v11_v27 = vpop.permute.xlu0 %10   ;;  %191 = vst.msk [vmem:[%s375_s1 + $0x3] ss:$25 sm:$0x3] %vm7_vm0, %v23_v26  }
  0x7e   :  { %189 = vst.msk [vmem:[%s375_s1 + $0x1] ss:$25 sm:$0x3] %vm7_vm0, %v11_v27  }
  0x80   :  { %v29_v28 = vpop.permute.xlu1 %28  }
  0x81   :  { %v17_v29 = vpop.permute.xlu0 %16   ;;  %192 = vst.msk [vmem:[%s375_s1 + $0x4] ss:$25 sm:$0x3] %vm7_vm0, %v29_v28  }
  0x82   :  { %190 = vst.msk [vmem:[%s375_s1 + $0x2] ss:$25 sm:$0x3] %vm7_vm0, %v17_v29  }
  0x84   :  { %v41_v30 = vpop.permute.xlu1 %40  }
  0x85   :  { %v35_v31 = vpop.permute.xlu0 %34   ;;  %194 = vst.msk [vmem:[%s375_s1 + $0x6] ss:$25 sm:$0x3] %vm7_vm0, %v41_v30  }
  0x86   :  { %193 = vst.msk [vmem:[%s375_s1 + $0x5] ss:$25 sm:$0x3] %vm7_vm0, %v35_v31  }
  0x88   :  { %v57_v32 = vpop.permute.xlu1 %56  }
  0x89   :  { %v49_v33 = vpop.permute.xlu0 %48   ;;  %196 = vst.msk [vmem:[%s375_s1 + $0x21] ss:$-25 sm:$0x3] %vm7_vm0, %v57_v32  }
  0x8a   :  { %195 = vst.msk [vmem:[%s375_s1 + $0x20] ss:$-25 sm:$0x3] %vm7_vm0, %v49_v33  }
  0x8c   :  { %v73_v34 = vpop.permute.xlu1 %72  }
  0x8d   :  { %v65_v35 = vpop.permute.xlu0 %64   ;;  %198 = vst.msk [vmem:[%s375_s1 + $0x23] ss:$-25 sm:$0x3] %vm7_vm0, %v73_v34  }
  0x8e   :  { %197 = vst.msk [vmem:[%s375_s1 + $0x22] ss:$-25 sm:$0x3] %vm7_vm0, %v65_v35  }
  0x90   :  { %v89_v36 = vpop.permute.xlu1 %88  }
  0x91   :  { %v81_v37 = vpop.permute.xlu0 %80   ;;  %200 = vst.msk [vmem:[%s375_s1 + $0x25] ss:$-25 sm:$0x3] %vm7_vm0, %v89_v36  }
  0x92   :  { %199 = vst.msk [vmem:[%s375_s1 + $0x24] ss:$-25 sm:$0x3] %vm7_vm0, %v81_v37  }
  0x94   :  { %v105_v38 = vpop.permute.xlu1 %104  }
  0x95   :  { %v97_v39 = vpop.permute.xlu0 %96   ;;  %202 = vst.msk [vmem:[%s375_s1 + $0x27] ss:$-25 sm:$0x3] %vm7_vm0, %v105_v38  }
  0x96   :  { %201 = vst.msk [vmem:[%s375_s1 + $0x26] ss:$-25 sm:$0x3] %vm7_vm0, %v97_v39  }
  0x98   :  { %v121_v40 = vpop.permute.xlu1 %120  }
  0x99   :  { %v113_v41 = vpop.permute.xlu0 %112   ;;  %204 = vst.msk [vmem:[%s375_s1 + $0x29] ss:$-25 sm:$0x3] %vm7_vm0, %v121_v40  }
  0x9a   :  { %203 = vst.msk [vmem:[%s375_s1 + $0x28] ss:$-25 sm:$0x3] %vm7_vm0, %v113_v41  }
  0x9c   :  { %v137_v42 = vpop.permute.xlu1 %136  }
  0x9d   :  { %v129_v43 = vpop.permute.xlu0 %128   ;;  %206 = vst.msk [vmem:[%s375_s1 + $0x2b] ss:$-25 sm:$0x3] %vm7_vm0, %v137_v42  }
  0x9e   :  { %205 = vst.msk [vmem:[%s375_s1 + $0x2a] ss:$-25 sm:$0x3] %vm7_vm0, %v129_v43  }
  0xa0   :  { %v153_v44 = vpop.permute.xlu1 %152  }
  0xa1   :  { %v145_v45 = vpop.permute.xlu0 %144   ;;  %208 = vst.msk [vmem:[%s375_s1 + $0x2d] ss:$-25 sm:$0x3] %vm7_vm0, %v153_v44  }
  0xa2   :  { %207 = vst.msk [vmem:[%s375_s1 + $0x2c] ss:$-25 sm:$0x3] %vm7_vm0, %v145_v45  }
  0xa4   :  { %v169_v46 = vpop.permute.xlu1 %168  }
  0xa5   :  { %v161_v47 = vpop.permute.xlu0 %160   ;;  %210 = vst.msk [vmem:[%s375_s1 + $0x2f] ss:$-25 sm:$0x3] %vm7_vm0, %v169_v46  }
  0xa6   :  { %209 = vst.msk [vmem:[%s375_s1 + $0x2e] ss:$-25 sm:$0x3] %vm7_vm0, %v161_v47  }
  0xa8   :  { %v185_v48 = vpop.permute.xlu1 %184  }
  0xa9   :  { %v177_v49 = vpop.permute.xlu0 %176   ;;  %212 = vst.msk [vmem:[%s375_s1 + $0x31] ss:$-25 sm:$0x3] %vm7_vm0, %v185_v48  }
  0xaa   :  { %211 = vst.msk [vmem:[%s375_s1 + $0x30] ss:$-25 sm:$0x3] %vm7_vm0, %v177_v49  }

// kernel: tile.15
= control target key start
LH: loop header
LB: loop body
LE: loop exit
PB: predicated region body
PF: predicated region fallthrough
CT: control target
= control target key end

     0   :  { %vm42_vm0 = vcmask 1047556   ;;  %vm44_vm1 = vcmask 203776   ;;  %vm54_vm2 = vcmask 408776   ;;  %s111_s0 = inlined_call_operand.vmem [shape: f32[2,25,8], index: 0, kind: input, shape index: {}]   ;;  %s112_s1 = inlined_call_operand.vmem [shape: f32[50,8], index: 1, kind: output, shape index: {}]  }
   0x1   :  { %v62_v0 = vld [vmem:[%s111_s0 + $0xe] sm:$0x3]  ;;  %v63_v1 = vld [vmem:[%s111_s0 + $0xc] sm:$0x3]  ;;  %v64_v2 = vld [vmem:[%s111_s0 + $0xa] sm:$0x3] }
   0x2   :  { %8 = vst [vmem:[#allocation0 + $0x38] sm:$0x3] %v62_v0  ;;  %13 = vst [vmem:[#allocation0 + $0x30] sm:$0x3] %v63_v1  ;;  %v65_v3 = vld [vmem:[%s111_s0 + $0x8] sm:$0x3] }
   0x3   :  { %18 = vst [vmem:[#allocation0 + $0x28] sm:$0x3] %v64_v2  ;;  %v66_v4 = vld [vmem:[%s111_s0 + $0x6] sm:$0x3]  ;;  %v67_v5 = vld [vmem:[%s111_s0 + $0x4] sm:$0x3] }
   0x4   :  { %23 = vst [vmem:[#allocation0 + $0x20] sm:$0x3] %v65_v3  ;;  %28 = vst [vmem:[#allocation0 + $0x18] sm:$0x3] %v66_v4  ;;  %v68_v6 = vld [vmem:[%s111_s0 + $0x2] sm:$0x3] }
   0x5   :  { %33 = vst [vmem:[#allocation0 + $0x10] sm:$0x3] %v67_v5  ;;  %v38_v7 = vld [vmem:[%s111_s0] sm:$0x3]  ;;  %37 = vst [vmem:[#allocation0 + $0x8] sm:$0x3] %v68_v6 }
   0x6   :  { %39 = vst [vmem:[#allocation0] sm:$0x3] %v38_v7  ;;  %s70_s0 = smov 25  }
   0xb   :  { %v41_v8 = vld [vmem:[#allocation0] ss:$8 sm:$0xf0]   ;;  %v49_v9 = vld [vmem:[#allocation0 + $0x1] ss:$8 sm:$0xf0]  }
   0xd   :  { %v40_v10 = vld [vmem:[#allocation0] ss:$8 sm:$0xf]   ;;  %v47_v11 = vld [vmem:[#allocation0 + $0x1] ss:$8 sm:$0xf]  }
   0xe   :  { %v43_v12 = vsel %vm42_vm0, %v41_v8, %v40_v10  ;;  %v51_v13 = vsel %vm42_vm0, %v49_v9, %v47_v11 }
   0xf   :  { %52 = vrot.lane.b32.xlu0 %v51_v13, %s70_s0  ;;  %45 = vst.msk [vmem:[%s112_s1] sm:$0xff] %vm44_vm1, %v43_v12  }
  0x81   :  { %v53_v14 = vpop.permute.xlu0 %52  }
  0x82   :  { %55 = vst.msk [vmem:[%s112_s1] sm:$0xff] %vm54_vm2, %v53_v14  }

// kernel: resnet_discriminator_forward.1
= control target key start
LH: loop header
LB: loop body
LE: loop exit
PB: predicated region body
PF: predicated region fallthrough
CT: control target
= control target key end

     0   :  { %v5543_v0 = vmov 0.0|0.0   ;;  %vm5544_vm0 = vmmov 0   ;;  %v5545_v4 = vmov 0.0   ;;  %v5546_v7 = vmov 0   ;;  %s6889_s1 = inlined_call_operand.vmem [shape: f32[9,48,16], index: 1, kind: input, shape index: {}]   ;;  %s6890_s0 = inlined_call_operand.vmem [shape: f32[56,48], index: 0, kind: input, shape index: {}]   ;;  %s6891_s3 = inlined_call_operand.vmem [shape: f32[50,1], index: 3, kind: input, shape index: {}]   ;;  %s6892_s4 = inlined_call_operand.vmem [shape: f32[16,16,8], index: 4, kind: input, shape index: {}]   ;;  %s6893_s2 = inlined_call_operand.vmem [shape: f32[1,16], index: 2, kind: input, shape index: {}]   ;;  %s6894_s5 = inlined_call_operand.vmem [shape: f32[1,8], index: 5, kind: input, shape index: {}]   ;;  %s6895_s6 = inlined_call_operand.vmem [shape: f32[1,8], index: 6, kind: input, shape index: {}]   ;;  %s6896_s7 = inlined_call_operand.vmem [shape: f32[50,8], index: 7, kind: input, shape index: {}]   ;;  %s6897_s8 = inlined_call_operand.vmem [shape: f32[2,50], index: 8, kind: input, shape index: {}]   ;;  %s6898_s9 = inlined_call_operand.<no memory space> [shape: f32[1,1], index: 9, kind: input, shape index: {}]   ;;  %s6899_s10 = inlined_call_operand.vmem [shape: f32[2,1], index: 10, kind: output, shape index: {}]  }
   0x1   :  { %5190 = vmatprep.subr.bf16.mxu0 %v5543_v0  ;;  %v81_v1 = vld [vmem:[%s6889_s1] sm:$0xff]  ;;  %v82_v2 = vld [vmem:[%s6889_s1 + $0x8] sm:$0xff]  ;;  %v83_v3 = vld [vmem:[%s6889_s1 + $0x10] sm:$0xff]  ;;  %4488 = vmatprep.mubr.msk.f32.mxu0 %vm5544_vm0, %v5545_v4  ;;  %vm93_vm1 = vcmask 392192   ;;  %vm37_vm2 = vcmask 130048   ;;  %vm285_vm10 = vcmask 123904  }
   0x2   :  { %v5191_v5 = vpack.c.bf16 %v82_v2, %v81_v1  ;;  %v84_v6 = vld [vmem:[%s6889_s1 + $0x18] sm:$0xff]  ;;  %5535 = vset.pattern.permute.xlu0 %v5546_v7  ;;  %5536 = vset.pattern.permute.xlu1 %v5546_v7  ;;  %v85_v9 = vld [vmem:[%s6889_s1 + $0x20] sm:$0xff]  ;;  %v86_v10 = vld [vmem:[%s6889_s1 + $0x28] sm:$0xff]  ;;  %59 = vst.msk [vmem:[#allocation2 + $0xa8] sm:$0xff] %vm37_vm2, %v5545_v4 }
   0x3   :  { %5280 = vmatprep.subr.bf16.mxu1 %v5543_v0  ;;  %4852 = vmatprep.mubr.msk.f32.mxu1 %vm5544_vm0, %v5545_v4  ;;  %v5194_v8 = vpack.c.bf16 %v84_v6, %v83_v3  ;;  %v5197_v11 = vpack.c.bf16 %v86_v10, %v85_v9  ;;  %v3961_v12 = vld [vmem:[%s6889_s1 + $0x60] sm:$0xff]  ;;  %v3962_v13 = vld [vmem:[%s6889_s1 + $0x68] sm:$0xff]  ;;  %v3963_v16 = vld [vmem:[%s6889_s1 + $0x70] sm:$0xff]  ;;  %38 = vst.msk [vmem:[#allocation2] sm:$0xff] %vm37_vm2, %v5545_v4 }
   0x4   :  { %5192 = vmatpush3.bf16.msra.mxu0 %v5191_v5  ;;  %v5637_v14 = vld [vmem:[%s6890_s0] sm:$0xff]  ;;  %v5200_v15 = vpack.c.bf16 %v3962_v13, %v3961_v12  ;;  %v3964_v17 = vld [vmem:[%s6889_s1 + $0x78] sm:$0xff]  ;;  %v5656_v19 = vld [vmem:[%s6890_s0 + $0x8] sm:$0xff]  ;;  %39 = vst.msk [vmem:[#allocation2 + $0x8] sm:$0xff] %vm37_vm2, %v5545_v4 }
   0x5   :  { %5193 = vmatprep.subr.bf16.mxu0 %v5543_v0  ;;  %v66_v18 = vld [vmem:[%s6891_s3] sm:$0xff]  ;;  %v5203_v20 = vpack.c.bf16 %v3964_v17, %v3963_v16  ;;  %v67_v21 = vld [vmem:[%s6891_s3 + $0x8] sm:$0xff]  ;;  %v68_v22 = vld [vmem:[%s6891_s3 + $0x10] sm:$0xff]  ;;  %40 = vst.msk [vmem:[#allocation2 + $0x10] sm:$0xff] %vm37_vm2, %v5545_v4 }
   0x6   :  { %238 = vperm.xlu0 %5535, %v66_v18   ;;  %v3965_v23 = vld [vmem:[%s6889_s1 + $0x80] sm:$0xff]  ;;  %v3966_v24 = vld [vmem:[%s6889_s1 + $0x88] sm:$0xff]  ;;  %248 = vperm.xlu1 %5536, %v68_v22   ;;  %v69_v25 = vld [vmem:[%s6891_s3 + $0x18] sm:$0xff]  ;;  %41 = vst.msk [vmem:[#allocation2 + $0x18] sm:$0xff] %vm37_vm2, %v5545_v4 }
   0x7   :  { %v5681_v26 = vld [vmem:[%s6890_s0 + $0x10] sm:$0xff]  ;;  %v5206_v27 = vpack.c.bf16 %v3966_v24, %v3965_v23  ;;  %v70_v28 = vld [vmem:[%s6891_s3 + $0x20] sm:$0xff]  ;;  %v71_v29 = vld [vmem:[%s6891_s3 + $0x28] sm:$0xff]  ;;  %42 = vst.msk [vmem:[#allocation2 + $0x20] sm:$0xff] %vm37_vm2, %v5545_v4 }
   0x8   :  { %5195 = vmatpush3.bf16.msra.mxu0 %v5194_v8  ;;  %v5697_v30 = vld [vmem:[%s6890_s0 + $0x18] sm:$0xff]  ;;  %v72_v31 = vld [vmem:[%s6891_s3 + $0x30] sm:$0x3]  ;;  %v5710_v32 = vld [vmem:[%s6890_s0 + $0x20] sm:$0xff]  ;;  %43 = vst.msk [vmem:[#allocation2 + $0x28] sm:$0xff] %vm37_vm2, %v5545_v4 }
   0x9   :  { %5196 = vmatprep.subr.bf16.mxu0 %v5543_v0  ;;  %v5719_v33 = vld [vmem:[%s6890_s0 + $0x28] sm:$0xff]  ;;  %v80_v34 = vld [vmem:[%s6890_s0 + $0x30] sm:$0x3]  ;;  %v3956_v36 = vld [vmem:[%s6889_s1 + $0x38] sm:$0xff]  ;;  %44 = vst.msk [vmem:[#allocation2 + $0x30] sm:$0xff] %vm37_vm2, %v5545_v4 }
   0xa   :  { %243 = vperm.xlu0 %5535, %v67_v21   ;;  %253 = vperm.xlu1 %5536, %v69_v25   ;;  %v3955_v35 = vld [vmem:[%s6889_s1 + $0x30] sm:$0xff]  ;;  %v5740_v37 = vld [vmem:[%s6890_s0 + $0x1] sm:$0xff]  ;;  %v3960_v44 = vld [vmem:[%s6889_s1 + $0x58] sm:$0xff]  ;;  %45 = vst.msk [vmem:[#allocation2 + $0x38] sm:$0xff] %vm37_vm2, %v5545_v4 }
   0xb   :  { %v5209_v38 = vpack.c.bf16 %v3956_v36, %v3955_v35  ;;  %v3957_v39 = vld [vmem:[%s6889_s1 + $0x40] sm:$0xff]  ;;  %v3958_v40 = vld [vmem:[%s6889_s1 + $0x48] sm:$0xff]  ;;  %v3959_v43 = vld [vmem:[%s6889_s1 + $0x50] sm:$0xff]  ;;  %46 = vst.msk [vmem:[#allocation2 + $0x40] sm:$0xff] %vm37_vm2, %v5545_v4 }
   0xc   :  { %5198 = vmatpush3.bf16.msra.mxu0 %v5197_v11  ;;  %v5755_v41 = vld [vmem:[%s6890_s0 + $0x9] sm:$0xff]  ;;  %v5212_v42 = vpack.c.bf16 %v3958_v40, %v3957_v39  ;;  %v5771_v45 = vld [vmem:[%s6890_s0 + $0x11] sm:$0xff]  ;;  %v5215_v46 = vpack.c.bf16 %v3960_v44, %v3959_v43  ;;  %v5781_v47 = vld [vmem:[%s6890_s0 + $0x19] sm:$0xff]  ;;  %47 = vst.msk [vmem:[#allocation2 + $0x48] sm:$0xff] %vm37_vm2, %v5545_v4 }
   0xd   :  { %5199 = vmatprep.subr.bf16.mxu0 %v5543_v0  ;;  %v5791_v48 = vld [vmem:[%s6890_s0 + $0x21] sm:$0xff]  ;;  %v5800_v49 = vld [vmem:[%s6890_s0 + $0x29] sm:$0xff]  ;;  %v307_v50 = vld [vmem:[%s6890_s0 + $0x31] sm:$0x3]  ;;  %48 = vst.msk [vmem:[#allocation2 + $0x50] sm:$0xff] %vm37_vm2, %v5545_v4 }
   0xe   :  { %258 = vperm.xlu0 %5535, %v70_v28   ;;  %263 = vperm.xlu1 %5536, %v71_v29   ;;  %v3987_v51 = vld [vmem:[%s6889_s1 + $0xc0] sm:$0xff]  ;;  %v3988_v52 = vld [vmem:[%s6889_s1 + $0xc8] sm:$0xff]  ;;  %v3989_v54 = vld [vmem:[%s6889_s1 + $0xd0] sm:$0xff]  ;;  %49 = vst.msk [vmem:[#allocation2 + $0x58] sm:$0xff] %vm37_vm2, %v5545_v4 }
   0xf   :  { %4489 = vmatmul.mubr.msk.f32.vlgmr.msra.gmra.mrb[0].mxu0 %vm93_vm1, %v5637_v14  ;;  %v5218_v53 = vpack.c.bf16 %v3988_v52, %v3987_v51  ;;  %v3990_v55 = vld [vmem:[%s6889_s1 + $0xd8] sm:$0xff]  ;;  %v3991_v57 = vld [vmem:[%s6889_s1 + $0xe0] sm:$0xff]  ;;  %v3992_v58 = vld [vmem:[%s6889_s1 + $0xe8] sm:$0xff]  ;;  %50 = vst.msk [vmem:[#allocation2 + $0x60] sm:$0xff] %vm37_vm2, %v5545_v4 }
  0x10   :  { %4491 = vmatprep.mubr.msk.f32.mxu0 %vm5544_vm0, %v5545_v4  ;;  %5201 = vmatpush3.bf16.msra.mxu0 %v5200_v15  ;;  %v5221_v56 = vpack.c.bf16 %v3990_v55, %v3989_v54  ;;  %v5224_v59 = vpack.c.bf16 %v3992_v58, %v3991_v57  ;;  %v293_v60 = vld [vmem:[%s6890_s0 + $0x30] sm:$0x3]  ;;  %v3982_v62 = vld [vmem:[%s6889_s1 + $0x98] sm:$0xff]  ;;  %v5872_v63 = vld [vmem:[%s6890_s0 + $0x5] sm:$0xff]  ;;  %51 = vst.msk [vmem:[#allocation2 + $0x68] sm:$0xff] %vm37_vm2, %v5545_v4 }
  0x11   :  { %5202 = vmatprep.subr.bf16.mxu0 %v5543_v0  ;;  %v3981_v61 = vld [vmem:[%s6889_s1 + $0x90] sm:$0xff]  ;;  %v3983_v2 = vld [vmem:[%s6889_s1 + $0xa0] sm:$0xff]  ;;  %v3984_v3 = vld [vmem:[%s6889_s1 + $0xa8] sm:$0xff]  ;;  %52 = vst.msk [vmem:[#allocation2 + $0x70] sm:$0xff] %vm37_vm2, %v5545_v4 }
  0x12   :  { %268 = vperm.xlu0 %5535, %v72_v31   ;;  %v5227_v1 = vpack.c.bf16 %v3982_v62, %v3981_v61  ;;  %v5887_v5 = vld [vmem:[%s6890_s0 + $0xd] sm:$0xff]  ;;  %v5230_v6 = vpack.c.bf16 %v3984_v3, %v3983_v2  ;;  %v3986_v8 = vld [vmem:[%s6889_s1 + $0xb8] sm:$0xff]  ;;  %53 = vst.msk [vmem:[#allocation2 + $0x78] sm:$0xff] %vm37_vm2, %v5545_v4  ;;  %54 = vst.msk [vmem:[#allocation2 + $0x80] sm:$0xff] %vm37_vm2, %v5545_v4 }
  0x13   :  { %4492 = vmatmul.mubr.msk.f32.gmra.mrb[2].mxu0 %vm93_vm1, %v5656_v19  ;;  %v3985_v7 = vld [vmem:[%s6889_s1 + $0xb0] sm:$0xff]  ;;  %55 = vst.msk [vmem:[#allocation2 + $0x88] sm:$0xff] %vm37_vm2, %v5545_v4  ;;  %56 = vst.msk [vmem:[#allocation2 + $0x90] sm:$0xff] %vm37_vm2, %v5545_v4  ;;  %v5969_v11 = vld [vmem:[%s6890_s0 + $0x1d] sm:$0xff] }
  0x14   :  { %4494 = vmatprep.mubr.msk.f32.mxu0 %vm5544_vm0, %v5545_v4  ;;  %5204 = vmatpush3.bf16.msra.mxu0 %v5203_v20  ;;  %v5903_v9 = vld [vmem:[%s6890_s0 + $0x15] sm:$0xff]  ;;  %v5233_v10 = vpack.c.bf16 %v3986_v8, %v3985_v7  ;;  %57 = vst.msk [vmem:[#allocation2 + $0x98] sm:$0xff] %vm37_vm2, %v5545_v4  ;;  %58 = vst.msk [vmem:[#allocation2 + $0xa0] sm:$0xff] %vm37_vm2, %v5545_v4  ;;  %v5985_v16 = vld [vmem:[%s6890_s0 + $0x25] sm:$0xff] }
  0x15   :  { %5205 = vmatprep.subr.bf16.mxu0 %v5543_v0  ;;  %60 = vst.msk [vmem:[#allocation2 + $0xb0] sm:$0xff] %vm37_vm2, %v5545_v4  ;;  %61 = vst.msk [vmem:[#allocation2 + $0xb8] sm:$0xff] %vm37_vm2, %v5545_v4  ;;  %v4084_v12 = vld [vmem:[%s6892_s4 + $0x30] sm:$0xff]  ;;  %v4085_v13 = vld [vmem:[%s6892_s4 + $0x38] sm:$0xff] }
  0x16   :  { %62 = vst.msk [vmem:[#allocation2 + $0xc0] sm:$0xff] %vm37_vm2, %v5545_v4  ;;  %63 = vst.msk [vmem:[#allocation2 + $0xc8] sm:$0xff] %vm37_vm2, %v5545_v4  ;;  %v5281_v15 = vpack.c.bf16 %v4085_v13, %v4084_v12  ;;  %v5995_v17 = vld [vmem:[%s6890_s0 + $0x2d] sm:$0xff]  ;;  %v620_v18 = vld [vmem:[%s6890_s0 + $0x35] sm:$0x3] }
  0x17   :  { %4495 = vmatmul.mubr.msk.f32.gmra.mrb[4].mxu0 %vm93_vm1, %v5681_v26  ;;  %64 = vst.msk [vmem:[#allocation2 + $0xd0] sm:$0xff] %vm37_vm2, %v5545_v4  ;;  %65 = vst.msk [vmem:[#allocation2 + $0xd8] sm:$0xff] %vm37_vm2, %v5545_v4  ;;  %v4013_v20 = vld [vmem:[%s6889_s1 + $0x120] sm:$0xff]  ;;  %v4014_v21 = vld [vmem:[%s6889_s1 + $0x128] sm:$0xff] }
  0x18   :  { %4497 = vmatprep.mubr.msk.f32.mxu0 %vm5544_vm0, %v5545_v4  ;;  %5207 = vmatpush3.bf16.msra.mxu0 %v5206_v27  ;;  %v5236_v22 = vpack.c.bf16 %v4014_v21, %v4013_v20  ;;  %v4015_v23 = vld [vmem:[%s6889_s1 + $0x130] sm:$0xff]  ;;  %v4016_v24 = vld [vmem:[%s6889_s1 + $0x138] sm:$0xff]  ;;  %v4017_v27 = vld [vmem:[%s6889_s1 + $0x140] sm:$0xff] }
  0x19   :  { %5208 = vmatprep.subr.bf16.mxu0 %v5543_v0  ;;  %5282 = vmatpush3.bf16.msra.mxu1 %v5281_v15  ;;  %v5239_v25 = vpack.c.bf16 %v4016_v24, %v4015_v23  ;;  %v4018_v28 = vld [vmem:[%s6889_s1 + $0x148] sm:$0xff]  ;;  %v606_v31 = vld [vmem:[%s6890_s0 + $0x30] sm:$0x3]  ;;  %v4008_v35 = vld [vmem:[%s6889_s1 + $0xf8] sm:$0xff] }
  0x1a   :  { %5283 = vmatprep.subr.bf16.mxu1 %v5543_v0  ;;  %v5242_v29 = vpack.c.bf16 %v4018_v28, %v4017_v27  ;;  %v4010_v39 = vld [vmem:[%s6889_s1 + $0x108] sm:$0xff]  ;;  %v4012_v43 = vld [vmem:[%s6889_s1 + $0x118] sm:$0xff]  ;;  %v4033_v44 = vld [vmem:[%s6889_s1 + $0x150] sm:$0xff] }
  0x1b   :  { %4498 = vmatmul.mubr.msk.f32.gmra.mrb[6].mxu0 %vm93_vm1, %v5697_v30  ;;  %v4038_v51 = vld [vmem:[%s6889_s1 + $0x178] sm:$0xff]  ;;  %v4050_v54 = vld [vmem:[%s6889_s1 + $0x1a0] sm:$0xff]  ;;  %v4051_v55 = vld [vmem:[%s6889_s1 + $0x1a8] sm:$0xff] }
  0x1c   :  { %4500 = vmatprep.mubr.msk.f32.mxu0 %vm5544_vm0, %v5545_v4  ;;  %v4049_v52 = vld [vmem:[%s6889_s1 + $0x198] sm:$0xff]  ;;  %v6198_v57 = vld [vmem:[%s6893_s2] ss:$0 sm:$0xff]  ;;  %v1326_v28 = vld [vmem:[%s6890_s0 + $0xe] sm:$0xff] }
  0x1f   :  { %4501 = vmatmul.mubr.msk.f32.gmra.mrb[8].mxu0 %vm93_vm1, %v5710_v32 }
  0x20   :  { %4503 = vmatprep.mubr.msk.f32.mxu0 %vm5544_vm0, %v5545_v4 }
  0x23   :  { %4504 = vmatmul.mubr.msk.f32.gmra.mrb[10].mxu0 %vm93_vm1, %v5719_v33 }
  0x24   :  { %4506 = vmatprep.mubr.msk.f32.mxu0 %vm5544_vm0, %v5545_v4 }
  0x27   :  { %4507 = vmatmul.mubr.msk.f32.gmra.mrb[12].mxu0 %vm93_vm1, %v80_v34  ;;  %v4007_v34 = vld [vmem:[%s6889_s1 + $0xf0] sm:$0xff] }
  0x28   :  { %4521 = vmatprep.mubr.msk.f32.mxu0 %vm5544_vm0, %v5545_v4  ;;  %v5245_v36 = vpack.c.bf16 %v4008_v35, %v4007_v34 }
  0x2b   :  { %4522 = vmatmul.mubr.msk.f32.vlgmr.msra.gmra.mrb[14].mxu0 %vm93_vm1, %v5740_v37 }
  0x2c   :  { %4524 = vmatprep.mubr.msk.f32.mxu0 %vm5544_vm0, %v5545_v4  ;;  %5210 = vmatpush3.bf16.msra.mxu0 %v5209_v38  ;;  %v4009_v38 = vld [vmem:[%s6889_s1 + $0x100] sm:$0xff] }
  0x2d   :  { %5211 = vmatprep.subr.bf16.mxu0 %v5543_v0  ;;  %v5248_v40 = vpack.c.bf16 %v4010_v39, %v4009_v38 }
  0x2f   :  { %4525 = vmatmul.mubr.msk.f32.gmra.mrb[16].mxu0 %vm93_vm1, %v5755_v41 }
  0x30   :  { %4527 = vmatprep.mubr.msk.f32.mxu0 %vm5544_vm0, %v5545_v4  ;;  %5213 = vmatpush3.bf16.msra.mxu0 %v5212_v42  ;;  %v4011_v42 = vld [vmem:[%s6889_s1 + $0x110] sm:$0xff] }
  0x31   :  { %5214 = vmatprep.subr.bf16.mxu0 %v5543_v0 }
  0x33   :  { %4528 = vmatmul.mubr.msk.f32.gmra.mrb[18].mxu0 %vm93_vm1, %v5771_v45 }
  0x34   :  { %4530 = vmatprep.mubr.msk.f32.mxu0 %vm5544_vm0, %v5545_v4  ;;  %5216 = vmatpush3.bf16.msra.mxu0 %v5215_v46 }
  0x35   :  { %5217 = vmatprep.subr.bf16.mxu0 %v5543_v0 }
  0x37   :  { %4531 = vmatmul.mubr.msk.f32.gmra.mrb[20].mxu0 %vm93_vm1, %v5781_v47 }
  0x38   :  { %4533 = vmatprep.mubr.msk.f32.mxu0 %vm5544_vm0, %v5545_v4 }
  0x3b   :  { %4534 = vmatmul.mubr.msk.f32.gmra.mrb[22].mxu0 %vm93_vm1, %v5791_v48 }
  0x3c   :  { %4536 = vmatprep.mubr.msk.f32.mxu0 %vm5544_vm0, %v5545_v4 }
  0x3f   :  { %4537 = vmatmul.mubr.msk.f32.gmra.mrb[24].mxu0 %vm93_vm1, %v5800_v49 }
  0x40   :  { %4539 = vmatprep.mubr.msk.f32.mxu0 %vm5544_vm0, %v5545_v4 }
  0x43   :  { %4540 = vmatmul.mubr.msk.f32.gmra.mrb[26].mxu0 %vm93_vm1, %v307_v50  ;;  %v4037_v50 = vld [vmem:[%s6889_s1 + $0x170] sm:$0xff] }
  0x44   :  { %4554 = vmatprep.mubr.msk.f32.mxu0 %vm5544_vm0, %v5545_v4 }
  0x47   :  { %4555 = vmatmul.mubr.msk.f32.vlgmr.msra.gmra.mrb[28].mxu0 %vm93_vm1, %v5637_v14 }
  0x48   :  { %4557 = vmatprep.mubr.msk.f32.mxu0 %vm5544_vm0, %v5545_v4  ;;  %5219 = vmatpush3.bf16.msra.mxu0 %v5218_v53 }
  0x49   :  { %5220 = vmatprep.subr.bf16.mxu0 %v5543_v0 }
  0x4b   :  { %4558 = vmatmul.mubr.msk.f32.gmra.mrb[30].mxu0 %vm93_vm1, %v5656_v19 }
  0x4c   :  { %4560 = vmatprep.mubr.msk.f32.mxu0 %vm5544_vm0, %v5545_v4  ;;  %5222 = vmatpush3.bf16.msra.mxu0 %v5221_v56  ;;  %v5269_v56 = vpack.c.bf16 %v4051_v55, %v4050_v54 }
  0x4d   :  { %5223 = vmatprep.subr.bf16.mxu0 %v5543_v0 }
  0x4f   :  { %4561 = vmatmul.mubr.msk.f32.gmra.mrb[32].mxu0 %vm93_vm1, %v5681_v26 }
  0x50   :  { %4563 = vmatprep.mubr.msk.f32.mxu0 %vm5544_vm0, %v5545_v4  ;;  %5225 = vmatpush3.bf16.msra.mxu0 %v5224_v59 }
  0x51   :  { %5226 = vmatprep.subr.bf16.mxu0 %v5543_v0 }
  0x53   :  { %4564 = vmatmul.mubr.msk.f32.gmra.mrb[34].mxu0 %vm93_vm1, %v5697_v30 }
  0x54   :  { %4566 = vmatprep.mubr.msk.f32.mxu0 %vm5544_vm0, %v5545_v4 }
  0x57   :  { %4567 = vmatmul.mubr.msk.f32.gmra.mrb[36].mxu0 %vm93_vm1, %v5710_v32 }
  0x58   :  { %4569 = vmatprep.mubr.msk.f32.mxu0 %vm5544_vm0, %v5545_v4 }
  0x5b   :  { %4570 = vmatmul.mubr.msk.f32.gmra.mrb[38].mxu0 %vm93_vm1, %v5719_v33 }
  0x5c   :  { %4572 = vmatprep.mubr.msk.f32.mxu0 %vm5544_vm0, %v5545_v4 }
  0x5f   :  { %4573 = vmatmul.mubr.msk.f32.gmra.mrb[40].mxu0 %vm93_vm1, %v293_v60 }
  0x60   :  { %4587 = vmatprep.mubr.msk.f32.mxu0 %vm5544_vm0, %v5545_v4 }
  0x63   :  { %4588 = vmatmul.mubr.msk.f32.vlgmr.msra.gmra.mrb[42].mxu0 %vm93_vm1, %v5872_v63 }
  0x64   :  { %4590 = vmatprep.mubr.msk.f32.mxu0 %vm5544_vm0, %v5545_v4  ;;  %5228 = vmatpush3.bf16.msra.mxu0 %v5227_v1 }
  0x65   :  { %5229 = vmatprep.subr.bf16.mxu0 %v5543_v0 }
  0x67   :  { %4591 = vmatmul.mubr.msk.f32.gmra.mrb[44].mxu0 %vm93_vm1, %v5887_v5 }
  0x68   :  { %4593 = vmatprep.mubr.msk.f32.mxu0 %vm5544_vm0, %v5545_v4  ;;  %5231 = vmatpush3.bf16.msra.mxu0 %v5230_v6  ;;  %v1189_v6 = vld [vmem:[%s6890_s0 + $0x35] sm:$0x3] }
  0x69   :  { %5232 = vmatprep.subr.bf16.mxu0 %v5543_v0 }
  0x6b   :  { %4594 = vmatmul.mubr.msk.f32.gmra.mrb[46].mxu0 %vm93_vm1, %v5903_v9 }
  0x6c   :  { %4596 = vmatprep.mubr.msk.f32.mxu0 %vm5544_vm0, %v5545_v4  ;;  %5234 = vmatpush3.bf16.msra.mxu0 %v5233_v10  ;;  %v4060_v10 = vld [vmem:[%s6892_s4 + $0x18] sm:$0xff] }
  0x6d   :  { %5235 = vmatprep.subr.bf16.mxu0 %v5543_v0 }
  0x6f   :  { %4597 = vmatmul.mubr.msk.f32.gmra.mrb[48].mxu0 %vm93_vm1, %v5969_v11 }
  0x70   :  { %4599 = vmatprep.mubr.msk.f32.mxu0 %vm5544_vm0, %v5545_v4 }
  0x73   :  { %4600 = vmatmul.mubr.msk.f32.gmra.mrb[50].mxu0 %vm93_vm1, %v5985_v16 }
  0x74   :  { %4602 = vmatprep.mubr.msk.f32.mxu0 %vm5544_vm0, %v5545_v4 }
  0x77   :  { %4603 = vmatmul.mubr.msk.f32.gmra.mrb[52].mxu0 %vm93_vm1, %v5995_v17 }
  0x78   :  { %4605 = vmatprep.mubr.msk.f32.mxu0 %vm5544_vm0, %v5545_v4 }
  0x7b   :  { %4606 = vmatmul.mubr.msk.f32.gmra.mrb[54].mxu0 %vm93_vm1, %v620_v18  ;;  %v1325_v18 = vld [vmem:[%s6890_s0 + $0x6] sm:$0xff] }
  0x7c   :  { %4620 = vmatprep.mubr.msk.f32.mxu0 %vm5544_vm0, %v5545_v4 }
  0x7f   :  { %4621 = vmatmul.mubr.msk.f32.vlgmr.msra.gmra.mrb[56].mxu0 %vm93_vm1, %v5637_v14 }
  0x80   :  { %4623 = vmatprep.mubr.msk.f32.mxu0 %vm5544_vm0, %v5545_v4  ;;  %5237 = vmatpush3.bf16.msra.mxu0 %v5236_v22 }
  0x81   :  { %5238 = vmatprep.subr.bf16.mxu0 %v5543_v0 }
  0x83   :  { %4624 = vmatmul.mubr.msk.f32.gmra.mrb[58].mxu0 %vm93_vm1, %v5656_v19 }
  0x84   :  { %4626 = vmatprep.mubr.msk.f32.mxu0 %vm5544_vm0, %v5545_v4  ;;  %5240 = vmatpush3.bf16.msra.mxu0 %v5239_v25 }
  0x85   :  { %5241 = vmatprep.subr.bf16.mxu0 %v5543_v0  ;;  %v6205_v61 = vpop.permute.xlu0 %238 }
  0x87   :  { %4627 = vmatmul.mubr.msk.f32.gmra.mrb[60].mxu0 %vm93_vm1, %v5681_v26 }
  0x88   :  { %4629 = vmatprep.mubr.msk.f32.mxu0 %vm5544_vm0, %v5545_v4  ;;  %5243 = vmatpush3.bf16.msra.mxu0 %v5242_v29 }
  0x89   :  { %5244 = vmatprep.subr.bf16.mxu0 %v5543_v0  ;;  %v6218_v8 = vpop.permute.xlu0 %243 }
  0x8b   :  { %4630 = vmatmul.mubr.msk.f32.gmra.mrb[62].mxu0 %vm93_vm1, %v5697_v30 }
  0x8c   :  { %4632 = vmatprep.mubr.msk.f32.mxu0 %vm5544_vm0, %v5545_v4 }
  0x8f   :  { %4633 = vmatmul.mubr.msk.f32.gmra.mrb[64].mxu0 %vm93_vm1, %v5710_v32 }
  0x90   :  { %4635 = vmatprep.mubr.msk.f32.mxu0 %vm5544_vm0, %v5545_v4 }
  0x93   :  { %4636 = vmatmul.mubr.msk.f32.gmra.mrb[66].mxu0 %vm93_vm1, %v5719_v33 }
  0x94   :  { %4638 = vmatprep.mubr.msk.f32.mxu0 %vm5544_vm0, %v5545_v4 }
  0x97   :  { %4639 = vmatmul.mubr.msk.f32.gmra.mrb[68].mxu0 %vm93_vm1, %v606_v31 }
  0x98   :  { %4653 = vmatprep.mubr.msk.f32.mxu0 %vm5544_vm0, %v5545_v4 }
  0x9b   :  { %4654 = vmatmul.mubr.msk.f32.vlgmr.msra.gmra.mrb[70].mxu0 %vm93_vm1, %v5740_v37  ;;  %v5251_v37 = vpack.c.bf16 %v4012_v43, %v4011_v42  ;;  %v1327_v42 = vld [vmem:[%s6890_s0 + $0x16] sm:$0xff] }
  0x9c   :  { %4656 = vmatprep.mubr.msk.f32.mxu0 %vm5544_vm0, %v5545_v4  ;;  %5246 = vmatpush3.bf16.msra.mxu0 %v5245_v36 }
  0x9d   :  { %5247 = vmatprep.subr.bf16.mxu0 %v5543_v0 }
  0x9f   :  { %4657 = vmatmul.mubr.msk.f32.gmra.mrb[72].mxu0 %vm93_vm1, %v5755_v41  ;;  %v933_v41 = vld [vmem:[%s6890_s0 + $0x31] sm:$0x3] }
  0xa0   :  { %4659 = vmatprep.mubr.msk.f32.mxu0 %vm5544_vm0, %v5545_v4  ;;  %5249 = vmatpush3.bf16.msra.mxu0 %v5248_v40 }
  0xa1   :  { %5250 = vmatprep.subr.bf16.mxu0 %v5543_v0 }
  0xa3   :  { %4660 = vmatmul.mubr.msk.f32.gmra.mrb[74].mxu0 %vm93_vm1, %v5771_v45  ;;  %v4034_v45 = vld [vmem:[%s6889_s1 + $0x158] sm:$0xff] }
  0xa4   :  { %4662 = vmatprep.mubr.msk.f32.mxu0 %vm5544_vm0, %v5545_v4  ;;  %5252 = vmatpush3.bf16.msra.mxu0 %v5251_v37  ;;  %v5254_v46 = vpack.c.bf16 %v4034_v45, %v4033_v44 }
  0xa5   :  { %5253 = vmatprep.subr.bf16.mxu0 %v5543_v0 }
  0xa7   :  { %4663 = vmatmul.mubr.msk.f32.gmra.mrb[76].mxu0 %vm93_vm1, %v5781_v47  ;;  %v4035_v47 = vld [vmem:[%s6889_s1 + $0x160] sm:$0xff] }
  0xa8   :  { %4665 = vmatprep.mubr.msk.f32.mxu0 %vm5544_vm0, %v5545_v4 }
  0xab   :  { %4666 = vmatmul.mubr.msk.f32.gmra.mrb[78].mxu0 %vm93_vm1, %v5791_v48  ;;  %v4036_v48 = vld [vmem:[%s6889_s1 + $0x168] sm:$0xff] }
  0xac   :  { %4668 = vmatprep.mubr.msk.f32.mxu0 %vm5544_vm0, %v5545_v4 }
  0xaf   :  { %4669 = vmatmul.mubr.msk.f32.gmra.mrb[80].mxu0 %vm93_vm1, %v5800_v49  ;;  %v5257_v49 = vpack.c.bf16 %v4036_v48, %v4035_v47 }
  0xb0   :  { %4671 = vmatprep.mubr.msk.f32.mxu0 %vm5544_vm0, %v5545_v4 }
  0xb3   :  { %4672 = vmatmul.mubr.msk.f32.gmra.mrb[82].mxu0 %vm93_vm1, %v933_v41  ;;  %v6261_v41 = vpop.permute.xlu0 %258 }
  0xb4   :  { %4686 = vmatprep.mubr.msk.f32.mxu0 %vm5544_vm0, %v5545_v4 }
  0xb7   :  { %4687 = vmatmul.mubr.msk.f32.vlgmr.msra.gmra.mrb[84].mxu0 %vm93_vm1, %v5637_v14  ;;  %v5260_v14 = vpack.c.bf16 %v4038_v51, %v4037_v50  ;;  %v6289_v55 = vpop.permute.xlu0 %268 }
  0xb8   :  { %4689 = vmatprep.mubr.msk.f32.mxu0 %vm5544_vm0, %v5545_v4  ;;  %5255 = vmatpush3.bf16.msra.mxu0 %v5254_v46 }
  0xb9   :  { %5256 = vmatprep.subr.bf16.mxu0 %v5543_v0 }
  0xbb   :  { %4690 = vmatmul.mubr.msk.f32.gmra.mrb[86].mxu0 %vm93_vm1, %v5656_v19  ;;  %v919_v19 = vld [vmem:[%s6890_s0 + $0x30] sm:$0x3] }
  0xbc   :  { %4692 = vmatprep.mubr.msk.f32.mxu0 %vm5544_vm0, %v5545_v4  ;;  %5258 = vmatpush3.bf16.msra.mxu0 %v5257_v49  ;;  %v1328_v49 = vld [vmem:[%s6890_s0 + $0x1e] sm:$0xff] }
  0xbd   :  { %5259 = vmatprep.subr.bf16.mxu0 %v5543_v0 }
  0xbf   :  { %4693 = vmatmul.mubr.msk.f32.gmra.mrb[88].mxu0 %vm93_vm1, %v5681_v26  ;;  %v4046_v26 = vld [vmem:[%s6889_s1 + $0x180] sm:$0xff] }
  0xc0   :  { %4695 = vmatprep.mubr.msk.f32.mxu0 %vm5544_vm0, %v5545_v4  ;;  %5261 = vmatpush3.bf16.msra.mxu0 %v5260_v14 }
  0xc1   :  { %5262 = vmatprep.subr.bf16.mxu0 %v5543_v0 }
  0xc3   :  { %4696 = vmatmul.mubr.msk.f32.gmra.mrb[90].mxu0 %vm93_vm1, %v5697_v30  ;;  %v4047_v30 = vld [vmem:[%s6889_s1 + $0x188] sm:$0xff] }
  0xc4   :  { %4698 = vmatprep.mubr.msk.f32.mxu0 %vm5544_vm0, %v5545_v4 }
  0xc7   :  { %4699 = vmatmul.mubr.msk.f32.gmra.mrb[92].mxu0 %vm93_vm1, %v5710_v32  ;;  %v5263_v32 = vpack.c.bf16 %v4047_v30, %v4046_v26 }
  0xc8   :  { %4701 = vmatprep.mubr.msk.f32.mxu0 %vm5544_vm0, %v5545_v4 }
  0xcb   :  { %4702 = vmatmul.mubr.msk.f32.gmra.mrb[94].mxu0 %vm93_vm1, %v5719_v33  ;;  %v4048_v33 = vld [vmem:[%s6889_s1 + $0x190] sm:$0xff] }
  0xcc   :  { %4704 = vmatprep.mubr.msk.f32.mxu0 %vm5544_vm0, %v5545_v4  ;;  %v5266_v53 = vpack.c.bf16 %v4049_v52, %v4048_v33  ;;  %v1329_v52 = vld [vmem:[%s6890_s0 + $0x26] sm:$0xff] }
  0xcf   :  { %4705 = vmatmul.mubr.msk.f32.gmra.mrb[96].mxu0 %vm93_vm1, %v919_v19 }
  0xd0   :  { %4719 = vmatprep.mubr.msk.f32.mxu0 %vm5544_vm0, %v5545_v4 }
  0xd3   :  { %4720 = vmatmul.mubr.msk.f32.vlgmr.msra.gmra.mrb[98].mxu0 %vm93_vm1, %v5872_v63 }
  0xd4   :  { %4722 = vmatprep.mubr.msk.f32.mxu0 %vm5544_vm0, %v5545_v4  ;;  %5264 = vmatpush3.bf16.msra.mxu0 %v5263_v32 }
  0xd5   :  { %5265 = vmatprep.subr.bf16.mxu0 %v5543_v0 }
  0xd7   :  { %4723 = vmatmul.mubr.msk.f32.gmra.mrb[100].mxu0 %vm93_vm1, %v5887_v5 }
  0xd8   :  { %4725 = vmatprep.mubr.msk.f32.mxu0 %vm5544_vm0, %v5545_v4  ;;  %5267 = vmatpush3.bf16.msra.mxu0 %v5266_v53 }
  0xd9   :  { %5268 = vmatprep.subr.bf16.mxu0 %v5543_v0 }
  0xdb   :  { %4726 = vmatmul.mubr.msk.f32.gmra.mrb[102].mxu0 %vm93_vm1, %v5903_v9  ;;  %v4059_v9 = vld [vmem:[%s6892_s4 + $0x10] sm:$0xff] }
  0xdc   :  { %4728 = vmatprep.mubr.msk.f32.mxu0 %vm5544_vm0, %v5545_v4  ;;  %5270 = vmatpush3.bf16.msra.mxu0 %v5269_v56  ;;  %v5272_v20 = vpack.c.bf16 %v4060_v10, %v4059_v9 }
  0xdd   :  { %5271 = vmatprep.subr.bf16.mxu0 %v5543_v0 }
  0xdf   :  { %4729 = vmatmul.mubr.msk.f32.gmra.mrb[104].mxu0 %vm93_vm1, %v5969_v11 }
  0xe0   :  { %4731 = vmatprep.mubr.msk.f32.mxu0 %vm5544_vm0, %v5545_v4 }
  0xe2   :  { %v181_v58 = vpop.f32.mrb[0].mxu0 }
  0xe3   :  { %v182_v59 = vadd.f32 %v6198_v57, %v181_v58  ;;  %v4490_v60 = vpop.f32.mrb[1].mxu0  ;;  %4732 = vmatmul.mubr.msk.f32.gmra.mrb[106].mxu0 %vm93_vm1, %v5985_v16  ;;  %v6229_v16 = vpop.permute.xlu1 %248 }
  0xe4   :  { %4734 = vmatprep.mubr.msk.f32.mxu0 %vm5544_vm0, %v5545_v4 }
  0xe5   :  { %vm215_vm3 = vcmp.gt.f32.partialorder %v182_v59, 0.0  ;;  %v222_v62 = vmul.f32 0.2, %v182_v59 }
  0xe6   :  { %v186_v63 = vpop.f32.mrb[2].mxu0 }
  0xe7   :  { %v229_v1 = vsel %vm215_vm3, %v182_v59, %v222_v62  ;;  %v187_v2 = vadd.f32 %v6198_v57, %v186_v63  ;;  %v4493_v3 = vpop.f32.mrb[3].mxu0  ;;  %4735 = vmatmul.mubr.msk.f32.gmra.mrb[108].mxu0 %vm93_vm1, %v5995_v17  ;;  %v6246_v34 = vpop.permute.xlu1 %253  ;;  %v1330_v62 = vld [vmem:[%s6890_s0 + $0x2e] sm:$0xff] }
  0xe8   :  { %v271_v5 = vmul.f32 %v6205_v61, %v229_v1  ;;  %4737 = vmatprep.mubr.msk.f32.mxu0 %vm5544_vm0, %v5545_v4  ;;  %v1331_v3 = vld [vmem:[%s6890_s0 + $0x36] sm:$0x3] }
  0xe9   :  { %vm216_vm4 = vcmp.gt.f32.partialorder %v187_v2, 0.0  ;;  %v223_v7 = vmul.f32 0.2, %v187_v2 }
  0xea   :  { %279 = vst.msk [vmem:[#allocation2 + $0xa8] sm:$0xff] %vm37_vm2, %v271_v5  ;;  %v191_v11 = vpop.f32.mrb[4].mxu0 }
  0xeb   :  { %v230_v12 = vsel %vm216_vm4, %v187_v2, %v223_v7  ;;  %v192_v13 = vadd.f32 %v6198_v57, %v191_v11  ;;  %v4496_v15 = vpop.f32.mrb[5].mxu0  ;;  %4738 = vmatmul.mubr.msk.f32.gmra.mrb[110].mxu0 %vm93_vm1, %v1189_v6  ;;  %v6275_v14 = vpop.permute.xlu1 %263 }
  0xec   :  { %v272_v17 = vmul.f32 %v6218_v8, %v230_v12  ;;  %4752 = vmatprep.mubr.msk.f32.mxu0 %vm5544_vm0, %v5545_v4 }
  0xed   :  { %vm217_vm5 = vcmp.gt.f32.partialorder %v192_v13, 0.0  ;;  %v224_v21 = vmul.f32 0.2, %v192_v13 }
  0xee   :  { %280 = vst.msk [vmem:[#allocation2 + $0xb0] sm:$0xff] %vm37_vm2, %v272_v17  ;;  %v196_v22 = vpop.f32.mrb[6].mxu0 }
  0xef   :  { %v231_v23 = vsel %vm217_vm5, %v192_v13, %v224_v21  ;;  %v197_v24 = vadd.f32 %v6198_v57, %v196_v22  ;;  %v4499_v25 = vpop.f32.mrb[7].mxu0  ;;  %4753 = vmatmul.mubr.msk.f32.vlgmr.msra.gmra.mrb[112].mxu0 %vm93_vm1, %v1325_v18 }
  0xf0   :  { %v273_v27 = vmul.f32 %v6229_v16, %v231_v23  ;;  %4755 = vmatprep.mubr.msk.f32.mxu0 %vm5544_vm0, %v5545_v4  ;;  %5273 = vmatpush3.bf16.msra.mxu0 %v5272_v20 }
  0xf1   :  { %vm218_vm6 = vcmp.gt.f32.partialorder %v197_v24, 0.0  ;;  %v225_v29 = vmul.f32 0.2, %v197_v24  ;;  %v1908_v31 = vld [vmem:[#allocation2 + $0xa8] sm:$0xff]  ;;  %5274 = vmatprep.subr.bf16.mxu0 %v5543_v0 }
  0xf2   :  { %281 = vst.msk [vmem:[#allocation2 + $0xb8] sm:$0xff] %vm37_vm2, %v273_v27  ;;  %v201_v35 = vpop.f32.mrb[8].mxu0  ;;  %4853 = vmatmul.mubr.msk.f32.vlgmr.msra.gmra.mrb[0].mxu1 %vm37_vm2, %v1908_v31 }
  0xf3   :  { %v232_v36 = vsel %vm218_vm6, %v197_v24, %v225_v29  ;;  %v202_v38 = vadd.f32 %v6198_v57, %v201_v35  ;;  %v4502_v39 = vpop.f32.mrb[9].mxu0  ;;  %4756 = vmatmul.mubr.msk.f32.gmra.mrb[114].mxu0 %vm93_vm1, %v1326_v28  ;;  %4855 = vmatprep.mubr.msk.f32.mxu1 %vm5544_vm0, %v5545_v4 }
  0xf4   :  { %v274_v40 = vmul.f32 %v6246_v34, %v232_v36  ;;  %4758 = vmatprep.mubr.msk.f32.mxu0 %vm5544_vm0, %v5545_v4 }
  0xf5   :  { %vm219_vm7 = vcmp.gt.f32.partialorder %v202_v38, 0.0  ;;  %v226_v43 = vmul.f32 0.2, %v202_v38  ;;  %v1909_v37 = vld [vmem:[#allocation2 + $0xb0] sm:$0xff] }
  0xf6   :  { %282 = vst.msk [vmem:[#allocation2 + $0xc0] sm:$0xff] %vm37_vm2, %v274_v40  ;;  %v206_v44 = vpop.f32.mrb[10].mxu0  ;;  %4856 = vmatmul.mubr.msk.f32.gmra.mrb[2].mxu1 %vm37_vm2, %v1909_v37 }
  0xf7   :  { %v233_v45 = vsel %vm219_vm7, %v202_v38, %v226_v43  ;;  %v207_v46 = vadd.f32 %v6198_v57, %v206_v44  ;;  %v4505_v47 = vpop.f32.mrb[11].mxu0  ;;  %4759 = vmatmul.mubr.msk.f32.gmra.mrb[116].mxu0 %vm93_vm1, %v1327_v42  ;;  %4858 = vmatprep.mubr.msk.f32.mxu1 %vm5544_vm0, %v5545_v4 }
  0xf8   :  { %v275_v48 = vmul.f32 %v6261_v41, %v233_v45  ;;  %4761 = vmatprep.mubr.msk.f32.mxu0 %vm5544_vm0, %v5545_v4 }
  0xf9   :  { %vm220_vm8 = vcmp.gt.f32.partialorder %v207_v46, 0.0  ;;  %v227_v50 = vmul.f32 0.2, %v207_v46  ;;  %v1910_v51 = vld [vmem:[#allocation2 + $0xb8] sm:$0xff] }
  0xfa   :  { %283 = vst.msk [vmem:[#allocation2 + $0xc8] sm:$0xff] %vm37_vm2, %v275_v48  ;;  %v211_v19 = vpop.f32.mrb[12].mxu0  ;;  %4859 = vmatmul.mubr.msk.f32.gmra.mrb[4].mxu1 %vm37_vm2, %v1910_v51 }
  0xfb   :  { %v234_v26 = vsel %vm220_vm8, %v207_v46, %v227_v50  ;;  %v212_v30 = vadd.f32 %v6198_v57, %v211_v19  ;;  %v4508_v32 = vpop.f32.mrb[13].mxu0  ;;  %4762 = vmatmul.mubr.msk.f32.gmra.mrb[118].mxu0 %vm93_vm1, %v1328_v49  ;;  %4861 = vmatprep.mubr.msk.f32.mxu1 %vm5544_vm0, %v5545_v4 }
  0xfc   :  { %v276_v33 = vmul.f32 %v6275_v14, %v234_v26  ;;  %4764 = vmatprep.mubr.msk.f32.mxu0 %vm5544_vm0, %v5545_v4 }
  0xfd   :  { %vm221_vm9 = vcmp.gt.f32.partialorder %v212_v30, 0.0  ;;  %v228_v53 = vmul.f32 0.2, %v212_v30  ;;  %v1911_v54 = vld [vmem:[#allocation2 + $0xc0] sm:$0xff] }
  0xfe   :  { %284 = vst.msk [vmem:[#allocation2 + $0xd0] sm:$0xff] %vm37_vm2, %v276_v33  ;;  %v402_v56 = vpop.f32.mrb[14].mxu0  ;;  %4862 = vmatmul.mubr.msk.f32.gmra.mrb[6].mxu1 %vm37_vm2, %v1911_v54 }
  0xff   :  { %v235_v58 = vsel %vm221_vm9, %v212_v30, %v228_v53  ;;  %v4523_v59 = vpop.f32.mrb[15].mxu0  ;;  %4765 = vmatmul.mubr.msk.f32.gmra.mrb[120].mxu0 %vm93_vm1, %v1329_v52  ;;  %4864 = vmatprep.mubr.msk.f32.mxu1 %vm5544_vm0, %v5545_v4 }
 0x100   :  { %v277_v60 = vmul.f32 %v6289_v55, %v235_v58  ;;  %4767 = vmatprep.mubr.msk.f32.mxu0 %vm5544_vm0, %v5545_v4 }
 0x101   :  { %v1912_v63 = vld [vmem:[#allocation2 + $0xc8] sm:$0xff] }
 0x102   :  { %286 = vst.msk [vmem:[#allocation2 + $0xd8] sm:$0x3] %vm285_vm10, %v277_v60  ;;  %v407_v1 = vpop.f32.mrb[16].mxu0  ;;  %4865 = vmatmul.mubr.msk.f32.gmra.mrb[8].mxu1 %vm37_vm2, %v1912_v63 }
 0x103   :  { %v4526_v2 = vpop.f32.mrb[17].mxu0  ;;  %4768 = vmatmul.mubr.msk.f32.gmra.mrb[122].mxu0 %vm93_vm1, %v1330_v62  ;;  %4867 = vmatprep.mubr.msk.f32.mxu1 %vm5544_vm0, %v5545_v4 }
 0x104   :  { %4770 = vmatprep.mubr.msk.f32.mxu0 %vm5544_vm0, %v5545_v4 }
 0x105   :  { %v1913_v5 = vld [vmem:[#allocation2 + $0xd0] sm:$0xff] }
 0x106   :  { %v412_v6 = vpop.f32.mrb[18].mxu0  ;;  %4868 = vmatmul.mubr.msk.f32.gmra.mrb[10].mxu1 %vm37_vm2, %v1913_v5 }
 0x107   :  { %v4529_v7 = vpop.f32.mrb[19].mxu0  ;;  %4771 = vmatmul.mubr.msk.f32.gmra.mrb[124].mxu0 %vm93_vm1, %v1331_v3  ;;  %4870 = vmatprep.mubr.msk.f32.mxu1 %vm5544_vm0, %v5545_v4 }
 0x108   :  { %4777 = vmatprep.mubr.msk.f32.mxu0 %vm5544_vm0, %v5545_v4 }
 0x109   :  { %v1914_v9 = vld [vmem:[#allocation2 + $0xd8] sm:$0x3] }
 0x10a   :  { %v417_v10 = vpop.f32.mrb[20].mxu0  ;;  %4871 = vmatmul.mubr.msk.f32.gmra.mrb[12].mxu1 %vm37_vm2, %v1914_v9 }
 0x10b   :  { %v4532_v11 = vpop.f32.mrb[21].mxu0  ;;  %4877 = vmatprep.mubr.msk.f32.mxu1 %vm5544_vm0, %v5545_v4 }
 0x10e   :  { %v422_v12 = vpop.f32.mrb[22].mxu0 }
 0x10f   :  { %v4535_v13 = vpop.f32.mrb[23].mxu0 }
 0x112   :  { %v427_v15 = vpop.f32.mrb[24].mxu0 }
 0x113   :  { %v4538_v17 = vpop.f32.mrb[25].mxu0 }
 0x116   :  { %v432_v18 = vpop.f32.mrb[26].mxu0 }
 0x117   :  { %v4541_v20 = vpop.f32.mrb[27].mxu0 }
 0x11a   :  { %v523_v21 = vpop.f32.mrb[28].mxu0 }
 0x11b   :  { %v524_v22 = vadd.f32 %v523_v21, %v402_v56  ;;  %v4556_v23 = vpop.f32.mrb[29].mxu0 }
 0x11d   :  { %v557_v24 = vadd.f32 %v6198_v57, %v524_v22 }
 0x11e   :  { %v528_v25 = vpop.f32.mrb[30].mxu0 }
 0x11f   :  { %vm564_vm11 = vcmp.gt.f32.partialorder %v557_v24, 0.0  ;;  %v571_v27 = vmul.f32 0.2, %v557_v24  ;;  %v529_v28 = vadd.f32 %v528_v25, %v407_v1  ;;  %v4559_v29 = vpop.f32.mrb[31].mxu0 }
 0x121   :  { %v578_v31 = vsel %vm564_vm11, %v557_v24, %v571_v27  ;;  %v558_v35 = vadd.f32 %v6198_v57, %v529_v28 }
 0x122   :  { %v585_v36 = vmul.f32 %v578_v31, %v6205_v61  ;;  %v533_v38 = vpop.f32.mrb[32].mxu0  ;;  %v4093_v31 = vld [vmem:[%s6892_s4 + $0x40] sm:$0xff] }
 0x123   :  { %vm565_vm12 = vcmp.gt.f32.partialorder %v558_v35, 0.0  ;;  %v572_v39 = vmul.f32 0.2, %v558_v35  ;;  %v534_v40 = vadd.f32 %v533_v38, %v412_v6  ;;  %v4562_v42 = vpop.f32.mrb[33].mxu0 }
 0x124   :  { %593 = vst.msk [vmem:[#allocation2 + $0x71] sm:$0xff] %vm37_vm2, %v585_v36 }
 0x125   :  { %v579_v43 = vsel %vm565_vm12, %v558_v35, %v572_v39  ;;  %v559_v37 = vadd.f32 %v6198_v57, %v534_v40  ;;  %v4094_v35 = vld [vmem:[%s6892_s4 + $0x48] sm:$0xff] }
 0x126   :  { %v586_v44 = vmul.f32 %v579_v43, %v6218_v8  ;;  %v538_v45 = vpop.f32.mrb[34].mxu0  ;;  %v5284_v38 = vpack.c.bf16 %v4094_v35, %v4093_v31 }
 0x127   :  { %vm566_vm13 = vcmp.gt.f32.partialorder %v559_v37, 0.0  ;;  %v573_v46 = vmul.f32 0.2, %v559_v37  ;;  %v539_v47 = vadd.f32 %v538_v45, %v417_v10  ;;  %v4565_v48 = vpop.f32.mrb[35].mxu0 }
 0x128   :  { %594 = vst.msk [vmem:[#allocation2 + $0x79] sm:$0xff] %vm37_vm2, %v586_v44  ;;  %5285 = vmatpush3.bf16.msra.mxu1 %v5284_v38 }
 0x129   :  { %v580_v49 = vsel %vm566_vm13, %v559_v37, %v573_v46  ;;  %v560_v50 = vadd.f32 %v6198_v57, %v539_v47  ;;  %5286 = vmatprep.subr.bf16.mxu1 %v5543_v0 }
 0x12a   :  { %v587_v51 = vmul.f32 %v580_v49, %v6229_v16  ;;  %v543_v19 = vpop.f32.mrb[36].mxu0 }
 0x12b   :  { %vm567_vm14 = vcmp.gt.f32.partialorder %v560_v50, 0.0  ;;  %v574_v26 = vmul.f32 0.2, %v560_v50  ;;  %v544_v30 = vadd.f32 %v543_v19, %v422_v12  ;;  %v4568_v32 = vpop.f32.mrb[37].mxu0 }
 0x12c   :  { %595 = vst.msk [vmem:[#allocation2 + $0x81] sm:$0xff] %vm37_vm2, %v587_v51 }
 0x12d   :  { %v581_v33 = vsel %vm567_vm14, %v560_v50, %v574_v26  ;;  %v561_v52 = vadd.f32 %v6198_v57, %v544_v30 }
 0x12e   :  { %v588_v53 = vmul.f32 %v581_v33, %v6246_v34  ;;  %v548_v54 = vpop.f32.mrb[38].mxu0 }
 0x12f   :  { %vm568_vm15 = vcmp.gt.f32.partialorder %v561_v52, 0.0  ;;  %v575_v56 = vmul.f32 0.2, %v561_v52  ;;  %v549_v58 = vadd.f32 %v548_v54, %v427_v15  ;;  %v4571_v59 = vpop.f32.mrb[39].mxu0  ;;  %v1517_v54 = vld [vmem:[%s6892_s4 + $0x8] sm:$0xff] }
 0x130   :  { %596 = vst.msk [vmem:[#allocation2 + $0x89] sm:$0xff] %vm37_vm2, %v588_v53  ;;  %v1516_v53 = vld [vmem:[%s6892_s4] sm:$0xff] }
 0x131   :  { %v582_v60 = vsel %vm568_vm15, %v561_v52, %v575_v56  ;;  %v562_v62 = vadd.f32 %v6198_v57, %v549_v58 }
 0x132   :  { %v589_v63 = vmul.f32 %v582_v60, %v6261_v41  ;;  %v553_v1 = vpop.f32.mrb[40].mxu0 }
 0x133   :  { %vm569_vm1 = vcmp.gt.f32.partialorder %v562_v62, 0.0  ;;  %v576_v2 = vmul.f32 0.2, %v562_v62  ;;  %v554_v3 = vadd.f32 %v553_v1, %v432_v18  ;;  %v4574_v5 = vpop.f32.mrb[41].mxu0 }
 0x134   :  { %597 = vst.msk [vmem:[#allocation2 + $0x91] sm:$0xff] %vm37_vm2, %v589_v63  ;;  %v5275_v63 = vpack.c.bf16 %v1517_v54, %v1516_v53 }
 0x135   :  { %v583_v6 = vsel %vm569_vm1, %v562_v62, %v576_v2  ;;  %v563_v7 = vadd.f32 %v6198_v57, %v554_v3 }
 0x136   :  { %v590_v9 = vmul.f32 %v583_v6, %v6275_v14  ;;  %v715_v10 = vpop.f32.mrb[42].mxu0 }
 0x137   :  { %vm570_vm3 = vcmp.gt.f32.partialorder %v563_v7, 0.0  ;;  %v577_v11 = vmul.f32 0.2, %v563_v7  ;;  %v4589_v12 = vpop.f32.mrb[43].mxu0 }
 0x138   :  { %598 = vst.msk [vmem:[#allocation2 + $0x99] sm:$0xff] %vm37_vm2, %v590_v9 }
 0x139   :  { %v584_v13 = vsel %vm570_vm3, %v563_v7, %v577_v11 }
 0x13a   :  { %v591_v15 = vmul.f32 %v584_v13, %v6289_v55  ;;  %v720_v17 = vpop.f32.mrb[44].mxu0 }
 0x13b   :  { %v4592_v20 = vpop.f32.mrb[45].mxu0 }
 0x13c   :  { %599 = vst.msk [vmem:[#allocation2 + $0xa1] sm:$0x3] %vm285_vm10, %v591_v15 }
 0x13e   :  { %v725_v18 = vpop.f32.mrb[46].mxu0 }
 0x13f   :  { %v4595_v21 = vpop.f32.mrb[47].mxu0 }
 0x142   :  { %v730_v22 = vpop.f32.mrb[48].mxu0 }
 0x143   :  { %v4598_v23 = vpop.f32.mrb[49].mxu0 }
 0x146   :  { %v735_v24 = vpop.f32.mrb[50].mxu0 }
 0x147   :  { %v4601_v25 = vpop.f32.mrb[51].mxu0 }
 0x14a   :  { %v740_v27 = vpop.f32.mrb[52].mxu0 }
 0x14b   :  { %v4604_v28 = vpop.f32.mrb[53].mxu0 }
 0x14e   :  { %v6342_v29 = vpop.f32.mrb[54].mxu0 }
 0x14f   :  { %v4607_v36 = vpop.f32.mrb[55].mxu0 }
 0x152   :  { %v836_v39 = vpop.f32.mrb[56].mxu0 }
 0x153   :  { %v837_v40 = vadd.f32 %v836_v39, %v715_v10  ;;  %v4622_v42 = vpop.f32.mrb[57].mxu0 }
 0x155   :  { %v870_v43 = vadd.f32 %v6198_v57, %v837_v40 }
 0x156   :  { %v841_v37 = vpop.f32.mrb[58].mxu0 }
 0x157   :  { %vm877_vm4 = vcmp.gt.f32.partialorder %v870_v43, 0.0  ;;  %v884_v44 = vmul.f32 0.2, %v870_v43  ;;  %v842_v45 = vadd.f32 %v841_v37, %v720_v17  ;;  %v4625_v46 = vpop.f32.mrb[59].mxu0 }
 0x159   :  { %v891_v47 = vsel %vm877_vm4, %v870_v43, %v884_v44  ;;  %v871_v48 = vadd.f32 %v6198_v57, %v842_v45 }
 0x15a   :  { %v898_v49 = vmul.f32 %v891_v47, %v6205_v61  ;;  %v846_v50 = vpop.f32.mrb[60].mxu0 }
 0x15b   :  { %vm878_vm5 = vcmp.gt.f32.partialorder %v871_v48, 0.0  ;;  %v885_v51 = vmul.f32 0.2, %v871_v48  ;;  %v847_v19 = vadd.f32 %v846_v50, %v725_v18  ;;  %v4628_v26 = vpop.f32.mrb[61].mxu0 }
 0x15c   :  { %906 = vst.msk [vmem:[#allocation2 + $0x3d] sm:$0xff] %vm37_vm2, %v898_v49 }
 0x15d   :  { %v892_v30 = vsel %vm878_vm5, %v871_v48, %v885_v51  ;;  %v872_v32 = vadd.f32 %v6198_v57, %v847_v19 }
 0x15e   :  { %v899_v33 = vmul.f32 %v892_v30, %v6218_v8  ;;  %v851_v52 = vpop.f32.mrb[62].mxu0 }
 0x15f   :  { %vm879_vm6 = vcmp.gt.f32.partialorder %v872_v32, 0.0  ;;  %v886_v56 = vmul.f32 0.2, %v872_v32  ;;  %v852_v58 = vadd.f32 %v851_v52, %v730_v22  ;;  %v4631_v59 = vpop.f32.mrb[63].mxu0 }
 0x160   :  { %907 = vst.msk [vmem:[#allocation2 + $0x45] sm:$0xff] %vm37_vm2, %v899_v33 }
 0x161   :  { %v893_v60 = vsel %vm879_vm6, %v872_v32, %v886_v56  ;;  %v873_v62 = vadd.f32 %v6198_v57, %v852_v58 }
 0x162   :  { %v900_v1 = vmul.f32 %v893_v60, %v6229_v16  ;;  %v856_v2 = vpop.f32.mrb[64].mxu0 }
 0x163   :  { %vm880_vm7 = vcmp.gt.f32.partialorder %v873_v62, 0.0  ;;  %v887_v3 = vmul.f32 0.2, %v873_v62  ;;  %v857_v5 = vadd.f32 %v856_v2, %v735_v24  ;;  %v4634_v6 = vpop.f32.mrb[65].mxu0  ;;  %v1518_v7 = vld [vmem:[#allocation2 + $0x38] sm:$0xff] }
 0x164   :  { %908 = vst.msk [vmem:[#allocation2 + $0x4d] sm:$0xff] %vm37_vm2, %v900_v1  ;;  %4778 = vmatmul.mubr.msk.f32.vlgmr.msra.gmra.mrb[126].mxu0 %vm37_vm2, %v1518_v7 }
 0x165   :  { %v894_v9 = vsel %vm880_vm7, %v873_v62, %v887_v3  ;;  %v874_v10 = vadd.f32 %v6198_v57, %v857_v5  ;;  %4780 = vmatprep.mubr.msk.f32.mxu0 %vm5544_vm0, %v5545_v4  ;;  %5276 = vmatpush3.bf16.msra.mxu0 %v5275_v63 }
 0x166   :  { %v901_v11 = vmul.f32 %v894_v9, %v6246_v34  ;;  %v861_v12 = vpop.f32.mrb[66].mxu0  ;;  %5277 = vmatprep.subr.bf16.mxu0 %v5543_v0 }
 0x167   :  { %vm881_vm8 = vcmp.gt.f32.partialorder %v874_v10, 0.0  ;;  %v888_v13 = vmul.f32 0.2, %v874_v10  ;;  %v862_v15 = vadd.f32 %v861_v12, %v740_v27  ;;  %v4637_v17 = vpop.f32.mrb[67].mxu0  ;;  %v1519_v20 = vld [vmem:[#allocation2 + $0x40] sm:$0xff] }
 0x168   :  { %909 = vst.msk [vmem:[#allocation2 + $0x55] sm:$0xff] %vm37_vm2, %v901_v11  ;;  %4781 = vmatmul.mubr.msk.f32.gmra.mrb[128].mxu0 %vm37_vm2, %v1519_v20 }
 0x169   :  { %v895_v18 = vsel %vm881_vm8, %v874_v10, %v888_v13  ;;  %v875_v21 = vadd.f32 %v6198_v57, %v862_v15  ;;  %4783 = vmatprep.mubr.msk.f32.mxu0 %vm5544_vm0, %v5545_v4 }
 0x16a   :  { %v902_v22 = vmul.f32 %v895_v18, %v6261_v41  ;;  %v866_v23 = vpop.f32.mrb[68].mxu0 }
 0x16b   :  { %vm882_vm9 = vcmp.gt.f32.partialorder %v875_v21, 0.0  ;;  %v889_v24 = vmul.f32 0.2, %v875_v21  ;;  %v867_v25 = vadd.f32 %v866_v23, %v6342_v29  ;;  %v4640_v27 = vpop.f32.mrb[69].mxu0  ;;  %v1520_v28 = vld [vmem:[#allocation2 + $0x48] sm:$0xff] }
 0x16c   :  { %910 = vst.msk [vmem:[#allocation2 + $0x5d] sm:$0xff] %vm37_vm2, %v902_v22  ;;  %4784 = vmatmul.mubr.msk.f32.gmra.mrb[130].mxu0 %vm37_vm2, %v1520_v28 }
 0x16d   :  { %v896_v31 = vsel %vm882_vm9, %v875_v21, %v889_v24  ;;  %v876_v35 = vadd.f32 %v6198_v57, %v867_v25  ;;  %4786 = vmatprep.mubr.msk.f32.mxu0 %vm5544_vm0, %v5545_v4 }
 0x16e   :  { %v903_v36 = vmul.f32 %v896_v31, %v6275_v14  ;;  %v1028_v38 = vpop.f32.mrb[70].mxu0 }
 0x16f   :  { %vm883_vm11 = vcmp.gt.f32.partialorder %v876_v35, 0.0  ;;  %v890_v39 = vmul.f32 0.2, %v876_v35  ;;  %v4655_v40 = vpop.f32.mrb[71].mxu0  ;;  %v1521_v42 = vld [vmem:[#allocation2 + $0x50] sm:$0xff] }
 0x170   :  { %911 = vst.msk [vmem:[#allocation2 + $0x65] sm:$0xff] %vm37_vm2, %v903_v36  ;;  %4787 = vmatmul.mubr.msk.f32.gmra.mrb[132].mxu0 %vm37_vm2, %v1521_v42 }
 0x171   :  { %v897_v29 = vsel %vm883_vm11, %v876_v35, %v890_v39  ;;  %4789 = vmatprep.mubr.msk.f32.mxu0 %vm5544_vm0, %v5545_v4 }
 0x172   :  { %v904_v43 = vmul.f32 %v897_v29, %v6289_v55  ;;  %v1033_v37 = vpop.f32.mrb[72].mxu0 }
 0x173   :  { %v4658_v44 = vpop.f32.mrb[73].mxu0  ;;  %v1522_v45 = vld [vmem:[#allocation2 + $0x58] sm:$0xff] }
 0x174   :  { %912 = vst.msk [vmem:[#allocation2 + $0x6d] sm:$0x3] %vm285_vm10, %v904_v43  ;;  %4790 = vmatmul.mubr.msk.f32.gmra.mrb[134].mxu0 %vm37_vm2, %v1522_v45 }
 0x175   :  { %4792 = vmatprep.mubr.msk.f32.mxu0 %vm5544_vm0, %v5545_v4 }
 0x176   :  { %v1038_v46 = vpop.f32.mrb[74].mxu0 }
 0x177   :  { %v4661_v47 = vpop.f32.mrb[75].mxu0  ;;  %v1523_v48 = vld [vmem:[#allocation2 + $0x60] sm:$0xff]  ;;  %v1524_v51 = vld [vmem:[#allocation2 + $0x68] sm:$0x3] }
 0x178   :  { %4793 = vmatmul.mubr.msk.f32.gmra.mrb[136].mxu0 %vm37_vm2, %v1523_v48 }
 0x179   :  { %4795 = vmatprep.mubr.msk.f32.mxu0 %vm5544_vm0, %v5545_v4 }
 0x17a   :  { %v1043_v49 = vpop.f32.mrb[76].mxu0 }
 0x17b   :  { %v4664_v50 = vpop.f32.mrb[77].mxu0 }
 0x17c   :  { %4796 = vmatmul.mubr.msk.f32.gmra.mrb[138].mxu0 %vm37_vm2, %v1524_v51 }
 0x17d   :  { %4802 = vmatprep.mubr.msk.f32.mxu0 %vm5544_vm0, %v5545_v4 }
 0x17e   :  { %v1048_v19 = vpop.f32.mrb[78].mxu0 }
 0x17f   :  { %v4667_v26 = vpop.f32.mrb[79].mxu0 }
 0x182   :  { %v1053_v30 = vpop.f32.mrb[80].mxu0 }
 0x183   :  { %v4670_v32 = vpop.f32.mrb[81].mxu0 }
 0x186   :  { %v1058_v33 = vpop.f32.mrb[82].mxu0 }
 0x187   :  { %v4673_v52 = vpop.f32.mrb[83].mxu0 }
 0x18a   :  { %v1149_v53 = vpop.f32.mrb[84].mxu0 }
 0x18b   :  { %v1150_v54 = vadd.f32 %v1149_v53, %v1028_v38  ;;  %v4688_v56 = vpop.f32.mrb[85].mxu0 }
 0x18e   :  { %v1154_v58 = vpop.f32.mrb[86].mxu0 }
 0x18f   :  { %v1155_v59 = vadd.f32 %v1154_v58, %v1033_v37  ;;  %v4691_v60 = vpop.f32.mrb[87].mxu0 }
 0x192   :  { %v1159_v62 = vpop.f32.mrb[88].mxu0 }
 0x193   :  { %v1160_v63 = vadd.f32 %v1159_v62, %v1038_v46  ;;  %v4694_v1 = vpop.f32.mrb[89].mxu0 }
 0x194   :  { %v4103_v1 = vld [vmem:[%s6892_s4 + $0x58] sm:$0xff] }
 0x196   :  { %v1164_v2 = vpop.f32.mrb[90].mxu0 }
 0x197   :  { %v1165_v3 = vadd.f32 %v1164_v2, %v1043_v49  ;;  %v4697_v5 = vpop.f32.mrb[91].mxu0 }
 0x19a   :  { %v1169_v6 = vpop.f32.mrb[92].mxu0 }
 0x19b   :  { %v1170_v7 = vadd.f32 %v1169_v6, %v1048_v19  ;;  %v4700_v9 = vpop.f32.mrb[93].mxu0  ;;  %v4075_v6 = vld [vmem:[%s6892_s4 + $0x20] sm:$0xff] }
 0x19e   :  { %v1174_v10 = vpop.f32.mrb[94].mxu0 }
 0x19f   :  { %v1175_v11 = vadd.f32 %v1174_v10, %v1053_v30  ;;  %v4703_v12 = vpop.f32.mrb[95].mxu0 }
 0x1a2   :  { %v1179_v13 = vpop.f32.mrb[96].mxu0 }
 0x1a3   :  { %v1180_v15 = vadd.f32 %v1179_v13, %v1058_v33  ;;  %v4706_v17 = vpop.f32.mrb[97].mxu0 }
 0x1a6   :  { %v1284_v20 = vpop.f32.mrb[98].mxu0 }
 0x1a7   :  { %v1318_v18 = vadd.f32 %v1284_v20, %v1150_v54  ;;  %v4721_v21 = vpop.f32.mrb[99].mxu0 }
 0x1aa   :  { %v1289_v22 = vpop.f32.mrb[100].mxu0 }
 0x1ab   :  { %v1319_v23 = vadd.f32 %v1289_v22, %v1155_v59  ;;  %v4724_v24 = vpop.f32.mrb[101].mxu0 }
 0x1ae   :  { %v1294_v25 = vpop.f32.mrb[102].mxu0 }
 0x1af   :  { %v1320_v27 = vadd.f32 %v1294_v25, %v1160_v63  ;;  %v4727_v28 = vpop.f32.mrb[103].mxu0  ;;  %v4102_v63 = vld [vmem:[%s6892_s4 + $0x50] sm:$0xff] }
 0x1b0   :  { %v5287_v13 = vpack.c.bf16 %v4103_v1, %v4102_v63  ;;  %v1771_v63 = vld [vmem:[#allocation2 + $0x78] sm:$0xff]  ;;  %v2185_v1 = vld [vmem:[#allocation2 + $0x41] sm:$0xff] }
 0x1b2   :  { %v1299_v31 = vpop.f32.mrb[104].mxu0 }
 0x1b3   :  { %v1321_v35 = vadd.f32 %v1299_v31, %v1165_v3  ;;  %v4730_v36 = vpop.f32.mrb[105].mxu0 }
 0x1b6   :  { %v1304_v38 = vpop.f32.mrb[106].mxu0 }
 0x1b7   :  { %v1322_v39 = vadd.f32 %v1304_v38, %v1170_v7  ;;  %v4733_v40 = vpop.f32.mrb[107].mxu0  ;;  %v4076_v7 = vld [vmem:[%s6892_s4 + $0x28] sm:$0xff] }
 0x1ba   :  { %v1309_v42 = vpop.f32.mrb[108].mxu0 }
 0x1bb   :  { %v1323_v29 = vadd.f32 %v1309_v42, %v1175_v11  ;;  %v4736_v43 = vpop.f32.mrb[109].mxu0 }
 0x1be   :  { %v1314_v37 = vpop.f32.mrb[110].mxu0 }
 0x1bf   :  { %v6401_v44 = vadd.f32 %v1314_v37, %v1180_v15  ;;  %v4739_v45 = vpop.f32.mrb[111].mxu0  ;;  %v5278_v15 = vpack.c.bf16 %v4076_v7, %v4075_v6  ;;  %v2187_v6 = vld [vmem:[#allocation2 + $0x51] sm:$0xff] }
 0x1c0   :  { %v1774_v7 = vld [vmem:[#allocation2 + $0x90] sm:$0xff] }
 0x1c2   :  { %v1426_v46 = vpop.f32.mrb[112].mxu0 }
 0x1c3   :  { %v1460_v47 = vadd.f32 %v1426_v46, %v1318_v18  ;;  %v4754_v48 = vpop.f32.mrb[113].mxu0 }
 0x1c5   :  { %v1467_v49 = vadd.f32 %v6198_v57, %v1460_v47 }
 0x1c6   :  { %v1431_v50 = vpop.f32.mrb[114].mxu0 }
 0x1c7   :  { %vm1474_vm12 = vcmp.gt.f32.partialorder %v1467_v49, 0.0  ;;  %v1481_v51 = vmul.f32 0.2, %v1467_v49  ;;  %v1461_v19 = vadd.f32 %v1431_v50, %v1319_v23  ;;  %v4757_v26 = vpop.f32.mrb[115].mxu0 }
 0x1c9   :  { %v1488_v30 = vsel %vm1474_vm12, %v1467_v49, %v1481_v51  ;;  %v1468_v32 = vadd.f32 %v6198_v57, %v1461_v19  ;;  %vm3850_vm12 = vcmask 1041408  }
 0x1ca   :  { %v1495_v33 = vmul.f32 %v1488_v30, %v6205_v61  ;;  %v1436_v52 = vpop.f32.mrb[116].mxu0 }
 0x1cb   :  { %vm1475_vm13 = vcmp.gt.f32.partialorder %v1468_v32, 0.0  ;;  %v1482_v53 = vmul.f32 0.2, %v1468_v32  ;;  %v1462_v54 = vadd.f32 %v1436_v52, %v1320_v27  ;;  %v4760_v56 = vpop.f32.mrb[117].mxu0 }
 0x1cc   :  { %1502 = vst.msk [vmem:[#allocation2 + $0x6] sm:$0xff] %vm37_vm2, %v1495_v33 }
 0x1cd   :  { %v1489_v58 = vsel %vm1475_vm13, %v1468_v32, %v1482_v53  ;;  %v1469_v59 = vadd.f32 %v6198_v57, %v1462_v54  ;;  %v4111_v53 = vld [vmem:[%s6892_s4 + $0x60] sm:$0xff]  ;;  %vm3846_vm13 = vcmask 408576  }
 0x1ce   :  { %v1496_v60 = vmul.f32 %v1489_v58, %v6218_v8  ;;  %v1441_v62 = vpop.f32.mrb[118].mxu0  ;;  %v4112_v58 = vld [vmem:[%s6892_s4 + $0x68] sm:$0xff] }
 0x1cf   :  { %vm1476_vm14 = vcmp.gt.f32.partialorder %v1469_v59, 0.0  ;;  %v1483_v2 = vmul.f32 0.2, %v1469_v59  ;;  %v1463_v3 = vadd.f32 %v1441_v62, %v1321_v35  ;;  %v4763_v5 = vpop.f32.mrb[119].mxu0  ;;  %v2184_v62 = vld [vmem:[#allocation2 + $0x39] sm:$0xff] }
 0x1d0   :  { %1503 = vst.msk [vmem:[#allocation2 + $0xe] sm:$0xff] %vm37_vm2, %v1496_v60  ;;  %v1770_v60 = vld [vmem:[#allocation2 + $0x70] sm:$0xff]  ;;  %v1773_v5 = vld [vmem:[#allocation2 + $0x88] sm:$0xff] }
 0x1d1   :  { %v1490_v9 = vsel %vm1476_vm14, %v1469_v59, %v1483_v2  ;;  %v1470_v10 = vadd.f32 %v6198_v57, %v1463_v3  ;;  %v5290_v59 = vpack.c.bf16 %v4112_v58, %v4111_v53  ;;  %v1772_v2 = vld [vmem:[#allocation2 + $0x80] sm:$0xff]  ;;  %v2186_v3 = vld [vmem:[#allocation2 + $0x49] sm:$0xff]  ;;  %v2739_v53 = vld [vmem:[#allocation2 + $0x55] sm:$0xff]  ;;  %vm3941_vm14 = vcmask 1024  }
 0x1d2   :  { %v1497_v11 = vmul.f32 %v1490_v9, %v6229_v16  ;;  %v1446_v12 = vpop.f32.mrb[120].mxu0  ;;  %v2188_v9 = vld [vmem:[#allocation2 + $0x59] sm:$0xff]  ;;  %v4156_v58 = vld [vmem:[%s6892_s4 + $0xb0] sm:$0xff] }
 0x1d3   :  { %vm1477_vm15 = vcmp.gt.f32.partialorder %v1470_v10, 0.0  ;;  %v1484_v17 = vmul.f32 0.2, %v1470_v10  ;;  %v1464_v20 = vadd.f32 %v1446_v12, %v1322_v39  ;;  %v4766_v18 = vpop.f32.mrb[121].mxu0  ;;  %v1509_v21 = vld [vmem:[#allocation2] sm:$0xff]  ;;  %v4120_v12 = vld [vmem:[%s6892_s4 + $0x70] sm:$0xff] }
 0x1d4   :  { %v2046_v22 = vld [vmem:[#allocation2 + $0x1] sm:$0xff]  ;;  %1504 = vst.msk [vmem:[#allocation2 + $0x16] sm:$0xff] %vm37_vm2, %v1497_v11  ;;  %4803 = vmatmul.mubr.msk.f32.vlgmr.msra.gmra.mrb[126].mxu0 %vm37_vm2, %v1509_v21  ;;  %v2322_v18 = vld [vmem:[#allocation2 + $0x71] sm:$0xff]  ;;  %v2323_v21 = vld [vmem:[#allocation2 + $0x79] sm:$0xff] }
 0x1d5   :  { %4878 = vmatmul.mubr.msk.f32.vlgmr.msra.gmra.mrb[0].mxu1 %vm37_vm2, %v2046_v22  ;;  %v1491_v23 = vsel %vm1477_vm15, %v1470_v10, %v1484_v17  ;;  %v1471_v24 = vadd.f32 %v6198_v57, %v1464_v20  ;;  %4805 = vmatprep.mubr.msk.f32.mxu0 %vm5544_vm0, %v5545_v4  ;;  %v1775_v10 = vld [vmem:[#allocation2 + $0x98] sm:$0xff]  ;;  %v2189_v11 = vld [vmem:[#allocation2 + $0x61] sm:$0xff]  ;;  %v2190_v17 = vld [vmem:[#allocation2 + $0x69] sm:$0x3] }
 0x1d6   :  { %4880 = vmatprep.mubr.msk.f32.mxu1 %vm5544_vm0, %v5545_v4  ;;  %v1498_v25 = vmul.f32 %v1491_v23, %v6246_v34  ;;  %v1451_v27 = vpop.f32.mrb[122].mxu0  ;;  %5288 = vmatpush3.bf16.msra.mxu1 %v5287_v13  ;;  %v4121_v13 = vld [vmem:[%s6892_s4 + $0x78] sm:$0xff]  ;;  %v2324_v22 = vld [vmem:[#allocation2 + $0x81] sm:$0xff]  ;;  %v2325_v23 = vld [vmem:[#allocation2 + $0x89] sm:$0xff] }
 0x1d7   :  { %5279 = vmatpush3.bf16.msra.mxu0 %v5278_v15  ;;  %vm1478_vm1 = vcmp.gt.f32.partialorder %v1471_v24, 0.0  ;;  %v1485_v28 = vmul.f32 0.2, %v1471_v24  ;;  %v1465_v31 = vadd.f32 %v1451_v27, %v1323_v29  ;;  %v4769_v35 = vpop.f32.mrb[123].mxu0  ;;  %v1510_v36 = vld [vmem:[#allocation2 + $0x8] sm:$0xff]  ;;  %5289 = vmatprep.subr.bf16.mxu1 %v5543_v0  ;;  %v5293_v20 = vpack.c.bf16 %v4121_v13, %v4120_v12  ;;  %v4129_v27 = vld [vmem:[%s6892_s4 + $0x80] sm:$0xff] }
 0x1d8   :  { %v2047_v38 = vld [vmem:[#allocation2 + $0x9] sm:$0xff]  ;;  %5319 = vmatprep.subr.bf16.mxu0 %v5543_v0  ;;  %1505 = vst.msk [vmem:[#allocation2 + $0x1e] sm:$0xff] %vm37_vm2, %v1498_v25  ;;  %4806 = vmatmul.mubr.msk.f32.gmra.mrb[128].mxu0 %vm37_vm2, %v1510_v36  ;;  %v1776_v15 = vld [vmem:[#allocation2 + $0xa0] sm:$0x3]  ;;  %v3013_v13 = vld [vmem:[#allocation2 + $0xb5] sm:$0xff] }
 0x1d9   :  { %4881 = vmatmul.mubr.msk.f32.gmra.mrb[2].mxu1 %vm37_vm2, %v2047_v38  ;;  %v1492_v39 = vsel %vm1478_vm1, %v1471_v24, %v1485_v28  ;;  %v1472_v40 = vadd.f32 %v6198_v57, %v1465_v31  ;;  %4808 = vmatprep.mubr.msk.f32.mxu0 %vm5544_vm0, %v5545_v4  ;;  %v2326_v24 = vld [vmem:[#allocation2 + $0x91] sm:$0xff]  ;;  %v2327_v25 = vld [vmem:[#allocation2 + $0x99] sm:$0xff]  ;;  %v4130_v28 = vld [vmem:[%s6892_s4 + $0x88] sm:$0xff] }
 0x1da   :  { %4883 = vmatprep.mubr.msk.f32.mxu1 %vm5544_vm0, %v5545_v4  ;;  %v1499_v42 = vmul.f32 %v1492_v39, %v6261_v41  ;;  %v1456_v29 = vpop.f32.mrb[124].mxu0  ;;  %v2328_v31 = vld [vmem:[#allocation2 + $0xa1] sm:$0x3]  ;;  %v5296_v35 = vpack.c.bf16 %v4130_v28, %v4129_v27  ;;  %v2460_v36 = vld [vmem:[#allocation2 + $0xa9] sm:$0xff]  ;;  %v2461_v38 = vld [vmem:[#allocation2 + $0xb1] sm:$0xff] }
 0x1db   :  { %vm1479_vm3 = vcmp.gt.f32.partialorder %v1472_v40, 0.0  ;;  %v1486_v43 = vmul.f32 0.2, %v1472_v40  ;;  %v1466_v37 = vadd.f32 %v1456_v29, %v6401_v44  ;;  %v1511_v45 = vld [vmem:[#allocation2 + $0x10] sm:$0xff]  ;;  %v4772_v47 = vpop.f32.mrb[125].mxu0  ;;  %v2462_v39 = vld [vmem:[#allocation2 + $0xb9] sm:$0xff] }
 0x1dc   :  { %v2048_v46 = vld [vmem:[#allocation2 + $0x11] sm:$0xff]  ;;  %1506 = vst.msk [vmem:[#allocation2 + $0x26] sm:$0xff] %vm37_vm2, %v1499_v42  ;;  %4809 = vmatmul.mubr.msk.f32.gmra.mrb[130].mxu0 %vm37_vm2, %v1511_v45  ;;  %v2464_v42 = vld [vmem:[#allocation2 + $0xc9] sm:$0xff]  ;;  %v2466_v45 = vld [vmem:[#allocation2 + $0xd9] sm:$0x3] }
 0x1dd   :  { %4884 = vmatmul.mubr.msk.f32.gmra.mrb[4].mxu1 %vm37_vm2, %v2048_v46  ;;  %v1493_v48 = vsel %vm1479_vm3, %v1472_v40, %v1486_v43  ;;  %v1473_v49 = vadd.f32 %v6198_v57, %v1466_v37  ;;  %4811 = vmatprep.mubr.msk.f32.mxu0 %vm5544_vm0, %v5545_v4  ;;  %v2463_v40 = vld [vmem:[#allocation2 + $0xc1] sm:$0xff]  ;;  %v2465_v29 = vld [vmem:[#allocation2 + $0xd1] sm:$0xff] }
 0x1de   :  { %4886 = vmatprep.mubr.msk.f32.mxu1 %vm5544_vm0, %v5545_v4  ;;  %v1500_v44 = vmul.f32 %v1493_v48, %v6275_v14  ;;  %v4138_v43 = vld [vmem:[%s6892_s4 + $0x90] sm:$0xff]  ;;  %v4139_v37 = vld [vmem:[%s6892_s4 + $0x98] sm:$0xff]  ;;  %v2598_v47 = vld [vmem:[#allocation2 + $0x5] sm:$0xff] }
 0x1df   :  { %vm1480_vm4 = vcmp.gt.f32.partialorder %v1473_v49, 0.0  ;;  %v1487_v50 = vmul.f32 0.2, %v1473_v49  ;;  %v1512_v51 = vld [vmem:[#allocation2 + $0x18] sm:$0xff]  ;;  %v5299_v46 = vpack.c.bf16 %v4139_v37, %v4138_v43  ;;  %v2599_v48 = vld [vmem:[#allocation2 + $0xd] sm:$0xff] }
 0x1e0   :  { %v2049_v19 = vld [vmem:[#allocation2 + $0x19] sm:$0xff]  ;;  %1507 = vst.msk [vmem:[#allocation2 + $0x2e] sm:$0xff] %vm37_vm2, %v1500_v44  ;;  %4812 = vmatmul.mubr.msk.f32.gmra.mrb[132].mxu0 %vm37_vm2, %v1512_v51  ;;  %v3012_v12 = vld [vmem:[#allocation2 + $0xad] sm:$0xff] }
 0x1e1   :  { %4887 = vmatmul.mubr.msk.f32.gmra.mrb[6].mxu1 %vm37_vm2, %v2049_v19  ;;  %v1494_v26 = vsel %vm1480_vm4, %v1473_v49, %v1487_v50  ;;  %4814 = vmatprep.mubr.msk.f32.mxu0 %vm5544_vm0, %v5545_v4  ;;  %v2600_v49 = vld [vmem:[#allocation2 + $0x15] sm:$0xff]  ;;  %v2601_v44 = vld [vmem:[#allocation2 + $0x1d] sm:$0xff]  ;;  %v4184_v43 = vld [vmem:[%s6892_s4 + $0xe8] sm:$0xff] }
 0x1e2   :  { %4889 = vmatprep.mubr.msk.f32.mxu1 %vm5544_vm0, %v5545_v4  ;;  %v1501_v57 = vmul.f32 %v1494_v26, %v6289_v55  ;;  %v4147_v19 = vld [vmem:[%s6892_s4 + $0xa0] sm:$0xff]  ;;  %v4148_v26 = vld [vmem:[%s6892_s4 + $0xa8] sm:$0xff]  ;;  %v3152_v28 = vld [vmem:[#allocation2 + $0x16] sm:$0xff] }
 0x1e3   :  { %v1513_v30 = vld [vmem:[#allocation2 + $0x20] sm:$0xff]  ;;  %v3151_v27 = vld [vmem:[#allocation2 + $0xe] sm:$0xff] }
 0x1e4   :  { %v2050_v32 = vld [vmem:[#allocation2 + $0x21] sm:$0xff]  ;;  %1508 = vst.msk [vmem:[#allocation2 + $0x36] sm:$0x3] %vm285_vm10, %v1501_v57  ;;  %4815 = vmatmul.mubr.msk.f32.gmra.mrb[134].mxu0 %vm37_vm2, %v1513_v30  ;;  %v5302_v30 = vpack.c.bf16 %v4148_v26, %v4147_v19  ;;  %vm3709_vm10 = vcmask 64512  }
 0x1e5   :  { %4890 = vmatmul.mubr.msk.f32.gmra.mrb[8].mxu1 %vm37_vm2, %v2050_v32  ;;  %4817 = vmatprep.mubr.msk.f32.mxu0 %vm5544_vm0, %v5545_v4  ;;  %v2602_v50 = vld [vmem:[#allocation2 + $0x25] sm:$0xff]  ;;  %v2736_v32 = vld [vmem:[#allocation2 + $0x3d] sm:$0xff] }
 0x1e6   :  { %4892 = vmatprep.mubr.msk.f32.mxu1 %vm5544_vm0, %v5545_v4 }
 0x1e7   :  { %v1514_v33 = vld [vmem:[#allocation2 + $0x28] sm:$0xff]  ;;  %v1515_v54 = vld [vmem:[#allocation2 + $0x30] sm:$0x3] }
 0x1e8   :  { %v2051_v52 = vld [vmem:[#allocation2 + $0x29] sm:$0xff]  ;;  %4818 = vmatmul.mubr.msk.f32.gmra.mrb[136].mxu0 %vm37_vm2, %v1514_v33  ;;  %v2052_v56 = vld [vmem:[#allocation2 + $0x31] sm:$0x3] }
 0x1e9   :  { %4893 = vmatmul.mubr.msk.f32.gmra.mrb[10].mxu1 %vm37_vm2, %v2051_v52  ;;  %4820 = vmatprep.mubr.msk.f32.mxu0 %vm5544_vm0, %v5545_v4  ;;  %v2603_v51 = vld [vmem:[#allocation2 + $0x2d] sm:$0xff]  ;;  %v2737_v33 = vld [vmem:[#allocation2 + $0x45] sm:$0xff] }
 0x1ea   :  { %4895 = vmatprep.mubr.msk.f32.mxu1 %vm5544_vm0, %v5545_v4  ;;  %v2738_v52 = vld [vmem:[#allocation2 + $0x4d] sm:$0xff] }
 0x1eb   :  { %v2604_v57 = vld [vmem:[#allocation2 + $0x35] sm:$0x3] }
 0x1ec   :  { %4821 = vmatmul.mubr.msk.f32.gmra.mrb[138].mxu0 %vm37_vm2, %v1515_v54  ;;  %v2740_v54 = vld [vmem:[#allocation2 + $0x5d] sm:$0xff] }
 0x1ed   :  { %4896 = vmatmul.mubr.msk.f32.gmra.mrb[12].mxu1 %vm37_vm2, %v2052_v56  ;;  %4827 = vmatprep.mubr.msk.f32.mxu0 %vm5544_vm0, %v5545_v4  ;;  %v2741_v56 = vld [vmem:[#allocation2 + $0x65] sm:$0xff] }
 0x1ee   :  { %4902 = vmatprep.mubr.msk.f32.mxu1 %vm5544_vm0, %v5545_v4 }
 0x1f0   :  { %4828 = vmatmul.mubr.msk.f32.vlgmr.msra.gmra.mrb[126].mxu0 %vm37_vm2, %v1770_v60  ;;  %v2742_v60 = vld [vmem:[#allocation2 + $0x6d] sm:$0x3] }
 0x1f1   :  { %4903 = vmatmul.mubr.msk.f32.vlgmr.msra.gmra.mrb[0].mxu1 %vm37_vm2, %v2184_v62  ;;  %4830 = vmatprep.mubr.msk.f32.mxu0 %vm5544_vm0, %v5545_v4 }
 0x1f2   :  { %4905 = vmatprep.mubr.msk.f32.mxu1 %vm5544_vm0, %v5545_v4  ;;  %5291 = vmatpush3.bf16.msra.mxu1 %v5290_v59  ;;  %v4157_v59 = vld [vmem:[%s6892_s4 + $0xb8] sm:$0xff] }
 0x1f3   :  { %5292 = vmatprep.subr.bf16.mxu1 %v5543_v0  ;;  %v5305_v62 = vpack.c.bf16 %v4157_v59, %v4156_v58  ;;  %v4193_v58 = vld [vmem:[%s6892_s4 + $0xf8] sm:$0xff]  ;;  %v3294_v59 = vld [vmem:[#allocation2 + $0x6e] sm:$0x3] }
 0x1f4   :  { %4831 = vmatmul.mubr.msk.f32.gmra.mrb[128].mxu0 %vm37_vm2, %v1771_v63  ;;  %v2874_v63 = vld [vmem:[#allocation2 + $0x75] sm:$0xff] }
 0x1f5   :  { %4906 = vmatmul.mubr.msk.f32.gmra.mrb[2].mxu1 %vm37_vm2, %v2185_v1  ;;  %4833 = vmatprep.mubr.msk.f32.mxu0 %vm5544_vm0, %v5545_v4  ;;  %v2875_v1 = vld [vmem:[#allocation2 + $0x7d] sm:$0xff] }
 0x1f6   :  { %4908 = vmatprep.mubr.msk.f32.mxu1 %vm5544_vm0, %v5545_v4 }
 0x1f8   :  { %4834 = vmatmul.mubr.msk.f32.gmra.mrb[130].mxu0 %vm37_vm2, %v1772_v2  ;;  %v2876_v2 = vld [vmem:[#allocation2 + $0x85] sm:$0xff] }
 0x1f9   :  { %4909 = vmatmul.mubr.msk.f32.gmra.mrb[4].mxu1 %vm37_vm2, %v2186_v3  ;;  %4836 = vmatprep.mubr.msk.f32.mxu0 %vm5544_vm0, %v5545_v4  ;;  %v2877_v3 = vld [vmem:[#allocation2 + $0x8d] sm:$0xff] }
 0x1fa   :  { %4911 = vmatprep.mubr.msk.f32.mxu1 %vm5544_vm0, %v5545_v4 }
 0x1fc   :  { %4837 = vmatmul.mubr.msk.f32.gmra.mrb[132].mxu0 %vm37_vm2, %v1773_v5  ;;  %v2878_v5 = vld [vmem:[#allocation2 + $0x95] sm:$0xff] }
 0x1fd   :  { %4912 = vmatmul.mubr.msk.f32.gmra.mrb[6].mxu1 %vm37_vm2, %v2187_v6  ;;  %4839 = vmatprep.mubr.msk.f32.mxu0 %vm5544_vm0, %v5545_v4  ;;  %v2879_v6 = vld [vmem:[#allocation2 + $0x9d] sm:$0xff] }
 0x1fe   :  { %4914 = vmatprep.mubr.msk.f32.mxu1 %vm5544_vm0, %v5545_v4 }
 0x200   :  { %4840 = vmatmul.mubr.msk.f32.gmra.mrb[134].mxu0 %vm37_vm2, %v1774_v7  ;;  %v2880_v7 = vld [vmem:[#allocation2 + $0xa5] sm:$0x3] }
 0x201   :  { %4915 = vmatmul.mubr.msk.f32.gmra.mrb[8].mxu1 %vm37_vm2, %v2188_v9  ;;  %4842 = vmatprep.mubr.msk.f32.mxu0 %vm5544_vm0, %v5545_v4  ;;  %v4165_v9 = vld [vmem:[%s6892_s4 + $0xc0] sm:$0xff] }
 0x202   :  { %4917 = vmatprep.mubr.msk.f32.mxu1 %vm5544_vm0, %v5545_v4 }
 0x204   :  { %4843 = vmatmul.mubr.msk.f32.gmra.mrb[136].mxu0 %vm37_vm2, %v1775_v10  ;;  %v4166_v10 = vld [vmem:[%s6892_s4 + $0xc8] sm:$0xff] }
 0x205   :  { %4918 = vmatmul.mubr.msk.f32.gmra.mrb[10].mxu1 %vm37_vm2, %v2189_v11  ;;  %4845 = vmatprep.mubr.msk.f32.mxu0 %vm5544_vm0, %v5545_v4  ;;  %v5308_v11 = vpack.c.bf16 %v4166_v10, %v4165_v9  ;;  %v3565_v9 = vld [vmem:[#allocation2 + $0xb6] sm:$0xff]  ;;  %v3566_v10 = vld [vmem:[#allocation2 + $0xbe] sm:$0xff] }
 0x206   :  { %4920 = vmatprep.mubr.msk.f32.mxu1 %vm5544_vm0, %v5545_v4 }
 0x208   :  { %4846 = vmatmul.mubr.msk.f32.gmra.mrb[138].mxu0 %vm37_vm2, %v1776_v15  ;;  %v3014_v15 = vld [vmem:[#allocation2 + $0xbd] sm:$0xff] }
 0x209   :  { %4921 = vmatmul.mubr.msk.f32.gmra.mrb[12].mxu1 %vm37_vm2, %v2190_v17  ;;  %5187 = vmatprep.mubr.msk.f32.mxu0 %vm5544_vm0, %v5545_v4  ;;  %v3015_v17 = vld [vmem:[#allocation2 + $0xc5] sm:$0xff] }
 0x20a   :  { %4927 = vmatprep.mubr.msk.f32.mxu1 %vm5544_vm0, %v5545_v4 }
 0x20d   :  { %4928 = vmatmul.mubr.msk.f32.vlgmr.msra.gmra.mrb[0].mxu1 %vm37_vm2, %v2322_v18  ;;  %v3017_v18 = vld [vmem:[#allocation2 + $0xd5] sm:$0xff] }
 0x20e   :  { %4930 = vmatprep.mubr.msk.f32.mxu1 %vm5544_vm0, %v5545_v4  ;;  %5294 = vmatpush3.bf16.msra.mxu1 %v5293_v20  ;;  %v3016_v20 = vld [vmem:[#allocation2 + $0xcd] sm:$0xff] }
 0x20f   :  { %5295 = vmatprep.subr.bf16.mxu1 %v5543_v0 }
 0x211   :  { %4931 = vmatmul.mubr.msk.f32.gmra.mrb[2].mxu1 %vm37_vm2, %v2323_v21  ;;  %v3018_v21 = vld [vmem:[#allocation2 + $0xdd] sm:$0x3] }
 0x212   :  { %4933 = vmatprep.mubr.msk.f32.mxu1 %vm5544_vm0, %v5545_v4 }
 0x215   :  { %4934 = vmatmul.mubr.msk.f32.gmra.mrb[4].mxu1 %vm37_vm2, %v2324_v22  ;;  %v4174_v22 = vld [vmem:[%s6892_s4 + $0xd0] sm:$0xff] }
 0x216   :  { %4936 = vmatprep.mubr.msk.f32.mxu1 %vm5544_vm0, %v5545_v4 }
 0x219   :  { %4937 = vmatmul.mubr.msk.f32.gmra.mrb[6].mxu1 %vm37_vm2, %v2325_v23  ;;  %v4175_v23 = vld [vmem:[%s6892_s4 + $0xd8] sm:$0xff] }
 0x21a   :  { %4939 = vmatprep.mubr.msk.f32.mxu1 %vm5544_vm0, %v5545_v4 }
 0x21d   :  { %4940 = vmatmul.mubr.msk.f32.gmra.mrb[8].mxu1 %vm37_vm2, %v2326_v24  ;;  %v5311_v24 = vpack.c.bf16 %v4175_v23, %v4174_v22 }
 0x21e   :  { %4942 = vmatprep.mubr.msk.f32.mxu1 %vm5544_vm0, %v5545_v4 }
 0x221   :  { %4943 = vmatmul.mubr.msk.f32.gmra.mrb[10].mxu1 %vm37_vm2, %v2327_v25  ;;  %v3150_v25 = vld [vmem:[#allocation2 + $0x6] sm:$0xff] }
 0x222   :  { %4945 = vmatprep.mubr.msk.f32.mxu1 %vm5544_vm0, %v5545_v4 }
 0x225   :  { %4946 = vmatmul.mubr.msk.f32.gmra.mrb[12].mxu1 %vm37_vm2, %v2328_v31  ;;  %v3153_v31 = vld [vmem:[#allocation2 + $0x1e] sm:$0xff] }
 0x226   :  { %4952 = vmatprep.mubr.msk.f32.mxu1 %vm5544_vm0, %v5545_v4 }
 0x229   :  { %4953 = vmatmul.mubr.msk.f32.vlgmr.msra.gmra.mrb[0].mxu1 %vm37_vm2, %v2460_v36  ;;  %v3154_v36 = vld [vmem:[#allocation2 + $0x26] sm:$0xff] }
 0x22a   :  { %4955 = vmatprep.mubr.msk.f32.mxu1 %vm5544_vm0, %v5545_v4  ;;  %5297 = vmatpush3.bf16.msra.mxu1 %v5296_v35 }
 0x22b   :  { %5298 = vmatprep.subr.bf16.mxu1 %v5543_v0 }
 0x22d   :  { %4956 = vmatmul.mubr.msk.f32.gmra.mrb[2].mxu1 %vm37_vm2, %v2461_v38 }
 0x22e   :  { %4958 = vmatprep.mubr.msk.f32.mxu1 %vm5544_vm0, %v5545_v4 }
 0x231   :  { %4959 = vmatmul.mubr.msk.f32.gmra.mrb[4].mxu1 %vm37_vm2, %v2462_v39 }
 0x232   :  { %4961 = vmatprep.mubr.msk.f32.mxu1 %vm5544_vm0, %v5545_v4 }
 0x235   :  { %4962 = vmatmul.mubr.msk.f32.gmra.mrb[6].mxu1 %vm37_vm2, %v2463_v40  ;;  %v3155_v40 = vld [vmem:[#allocation2 + $0x2e] sm:$0xff] }
 0x236   :  { %4964 = vmatprep.mubr.msk.f32.mxu1 %vm5544_vm0, %v5545_v4 }
 0x239   :  { %4965 = vmatmul.mubr.msk.f32.gmra.mrb[8].mxu1 %vm37_vm2, %v2464_v42 }
 0x23a   :  { %4967 = vmatprep.mubr.msk.f32.mxu1 %vm5544_vm0, %v5545_v4 }
 0x23d   :  { %4968 = vmatmul.mubr.msk.f32.gmra.mrb[10].mxu1 %vm37_vm2, %v2465_v29  ;;  %v4183_v29 = vld [vmem:[%s6892_s4 + $0xe0] sm:$0xff] }
 0x23e   :  { %4970 = vmatprep.mubr.msk.f32.mxu1 %vm5544_vm0, %v5545_v4 }
 0x241   :  { %4971 = vmatmul.mubr.msk.f32.gmra.mrb[12].mxu1 %vm37_vm2, %v2466_v45  ;;  %v3156_v45 = vld [vmem:[#allocation2 + $0x36] sm:$0x3] }
 0x242   :  { %4977 = vmatprep.mubr.msk.f32.mxu1 %vm5544_vm0, %v5545_v4 }
 0x245   :  { %4978 = vmatmul.mubr.msk.f32.vlgmr.msra.gmra.mrb[0].mxu1 %vm37_vm2, %v2598_v47  ;;  %v5314_v47 = vpack.c.bf16 %v4184_v43, %v4183_v29 }
 0x246   :  { %4980 = vmatprep.mubr.msk.f32.mxu1 %vm5544_vm0, %v5545_v4  ;;  %5300 = vmatpush3.bf16.msra.mxu1 %v5299_v46 }
 0x247   :  { %5301 = vmatprep.subr.bf16.mxu1 %v5543_v0 }
 0x249   :  { %4981 = vmatmul.mubr.msk.f32.gmra.mrb[2].mxu1 %vm37_vm2, %v2599_v48 }
 0x24a   :  { %4983 = vmatprep.mubr.msk.f32.mxu1 %vm5544_vm0, %v5545_v4 }
 0x24d   :  { %4984 = vmatmul.mubr.msk.f32.gmra.mrb[4].mxu1 %vm37_vm2, %v2600_v49  ;;  %v3288_v49 = vld [vmem:[#allocation2 + $0x3e] sm:$0xff] }
 0x24e   :  { %4986 = vmatprep.mubr.msk.f32.mxu1 %vm5544_vm0, %v5545_v4 }
 0x251   :  { %4987 = vmatmul.mubr.msk.f32.gmra.mrb[6].mxu1 %vm37_vm2, %v2601_v44 }
 0x252   :  { %4989 = vmatprep.mubr.msk.f32.mxu1 %vm5544_vm0, %v5545_v4 }
 0x255   :  { %4990 = vmatmul.mubr.msk.f32.gmra.mrb[8].mxu1 %vm37_vm2, %v2602_v50 }
 0x256   :  { %4992 = vmatprep.mubr.msk.f32.mxu1 %vm5544_vm0, %v5545_v4 }
 0x259   :  { %4993 = vmatmul.mubr.msk.f32.gmra.mrb[10].mxu1 %vm37_vm2, %v2603_v51  ;;  %v3289_v51 = vld [vmem:[#allocation2 + $0x46] sm:$0xff] }
 0x25a   :  { %4995 = vmatprep.mubr.msk.f32.mxu1 %vm5544_vm0, %v5545_v4 }
 0x25d   :  { %4996 = vmatmul.mubr.msk.f32.gmra.mrb[12].mxu1 %vm37_vm2, %v2604_v57  ;;  %v3290_v57 = vld [vmem:[#allocation2 + $0x4e] sm:$0xff] }
 0x25e   :  { %5002 = vmatprep.mubr.msk.f32.mxu1 %vm5544_vm0, %v5545_v4 }
 0x261   :  { %5003 = vmatmul.mubr.msk.f32.vlgmr.msra.gmra.mrb[0].mxu1 %vm37_vm2, %v2736_v32 }
 0x262   :  { %5005 = vmatprep.mubr.msk.f32.mxu1 %vm5544_vm0, %v5545_v4  ;;  %5303 = vmatpush3.bf16.msra.mxu1 %v5302_v30 }
 0x263   :  { %5304 = vmatprep.subr.bf16.mxu1 %v5543_v0 }
 0x265   :  { %5006 = vmatmul.mubr.msk.f32.gmra.mrb[2].mxu1 %vm37_vm2, %v2737_v33  ;;  %v3291_v33 = vld [vmem:[#allocation2 + $0x56] sm:$0xff] }
 0x266   :  { %5008 = vmatprep.mubr.msk.f32.mxu1 %vm5544_vm0, %v5545_v4 }
 0x269   :  { %5009 = vmatmul.mubr.msk.f32.gmra.mrb[4].mxu1 %vm37_vm2, %v2738_v52 }
 0x26a   :  { %5011 = vmatprep.mubr.msk.f32.mxu1 %vm5544_vm0, %v5545_v4 }
 0x26d   :  { %5012 = vmatmul.mubr.msk.f32.gmra.mrb[6].mxu1 %vm37_vm2, %v2739_v53  ;;  %v3292_v53 = vld [vmem:[#allocation2 + $0x5e] sm:$0xff] }
 0x26e   :  { %5014 = vmatprep.mubr.msk.f32.mxu1 %vm5544_vm0, %v5545_v4 }
 0x271   :  { %5015 = vmatmul.mubr.msk.f32.gmra.mrb[8].mxu1 %vm37_vm2, %v2740_v54  ;;  %v3293_v54 = vld [vmem:[#allocation2 + $0x66] sm:$0xff] }
 0x272   :  { %5017 = vmatprep.mubr.msk.f32.mxu1 %vm5544_vm0, %v5545_v4 }
 0x275   :  { %5018 = vmatmul.mubr.msk.f32.gmra.mrb[10].mxu1 %vm37_vm2, %v2741_v56  ;;  %v4192_v56 = vld [vmem:[%s6892_s4 + $0xf0] sm:$0xff] }
 0x276   :  { %5020 = vmatprep.mubr.msk.f32.mxu1 %vm5544_vm0, %v5545_v4 }
 0x279   :  { %5021 = vmatmul.mubr.msk.f32.gmra.mrb[12].mxu1 %vm37_vm2, %v2742_v60  ;;  %v5317_v60 = vpack.c.bf16 %v4193_v58, %v4192_v56 }
 0x27a   :  { %5027 = vmatprep.mubr.msk.f32.mxu1 %vm5544_vm0, %v5545_v4 }
 0x27d   :  { %5028 = vmatmul.mubr.msk.f32.vlgmr.msra.gmra.mrb[0].mxu1 %vm37_vm2, %v2874_v63  ;;  %v3427_v63 = vld [vmem:[#allocation2 + $0x7e] sm:$0xff] }
 0x27e   :  { %5030 = vmatprep.mubr.msk.f32.mxu1 %vm5544_vm0, %v5545_v4  ;;  %5306 = vmatpush3.bf16.msra.mxu1 %v5305_v62  ;;  %v3426_v62 = vld [vmem:[#allocation2 + $0x76] sm:$0xff] }
 0x27f   :  { %5307 = vmatprep.subr.bf16.mxu1 %v5543_v0 }
 0x281   :  { %5031 = vmatmul.mubr.msk.f32.gmra.mrb[2].mxu1 %vm37_vm2, %v2875_v1  ;;  %v3428_v1 = vld [vmem:[#allocation2 + $0x86] sm:$0xff] }
 0x282   :  { %5033 = vmatprep.mubr.msk.f32.mxu1 %vm5544_vm0, %v5545_v4 }
 0x285   :  { %5034 = vmatmul.mubr.msk.f32.gmra.mrb[4].mxu1 %vm37_vm2, %v2876_v2  ;;  %v3429_v2 = vld [vmem:[#allocation2 + $0x8e] sm:$0xff] }
 0x286   :  { %5036 = vmatprep.mubr.msk.f32.mxu1 %vm5544_vm0, %v5545_v4 }
 0x289   :  { %5037 = vmatmul.mubr.msk.f32.gmra.mrb[6].mxu1 %vm37_vm2, %v2877_v3  ;;  %v3430_v3 = vld [vmem:[#allocation2 + $0x96] sm:$0xff] }
 0x28a   :  { %5039 = vmatprep.mubr.msk.f32.mxu1 %vm5544_vm0, %v5545_v4 }
 0x28d   :  { %5040 = vmatmul.mubr.msk.f32.gmra.mrb[8].mxu1 %vm37_vm2, %v2878_v5  ;;  %v3431_v5 = vld [vmem:[#allocation2 + $0x9e] sm:$0xff] }
 0x28e   :  { %5042 = vmatprep.mubr.msk.f32.mxu1 %vm5544_vm0, %v5545_v4 }
 0x291   :  { %5043 = vmatmul.mubr.msk.f32.gmra.mrb[10].mxu1 %vm37_vm2, %v2879_v6  ;;  %v3432_v6 = vld [vmem:[#allocation2 + $0xa6] sm:$0x3] }
 0x292   :  { %5045 = vmatprep.mubr.msk.f32.mxu1 %vm5544_vm0, %v5545_v4 }
 0x295   :  { %5046 = vmatmul.mubr.msk.f32.gmra.mrb[12].mxu1 %vm37_vm2, %v2880_v7  ;;  %v3564_v7 = vld [vmem:[#allocation2 + $0xae] sm:$0xff] }
 0x296   :  { %5052 = vmatprep.mubr.msk.f32.mxu1 %vm5544_vm0, %v5545_v4 }
 0x299   :  { %5053 = vmatmul.mubr.msk.f32.vlgmr.msra.gmra.mrb[0].mxu1 %vm37_vm2, %v3012_v12  ;;  %v3568_v12 = vld [vmem:[#allocation2 + $0xce] sm:$0xff] }
 0x29a   :  { %5055 = vmatprep.mubr.msk.f32.mxu1 %vm5544_vm0, %v5545_v4  ;;  %5309 = vmatpush3.bf16.msra.mxu1 %v5308_v11  ;;  %v3567_v11 = vld [vmem:[#allocation2 + $0xc6] sm:$0xff] }
 0x29b   :  { %5310 = vmatprep.subr.bf16.mxu1 %v5543_v0 }
 0x29d   :  { %5056 = vmatmul.mubr.msk.f32.gmra.mrb[2].mxu1 %vm37_vm2, %v3013_v13  ;;  %v3569_v13 = vld [vmem:[#allocation2 + $0xd6] sm:$0xff] }
 0x29e   :  { %5058 = vmatprep.mubr.msk.f32.mxu1 %vm5544_vm0, %v5545_v4 }
 0x2a1   :  { %5059 = vmatmul.mubr.msk.f32.gmra.mrb[4].mxu1 %vm37_vm2, %v3014_v15  ;;  %v3570_v15 = vld [vmem:[#allocation2 + $0xde] sm:$0x3] }
 0x2a2   :  { %5061 = vmatprep.mubr.msk.f32.mxu1 %vm5544_vm0, %v5545_v4 }
 0x2a5   :  { %5062 = vmatmul.mubr.msk.f32.gmra.mrb[6].mxu1 %vm37_vm2, %v3015_v17 }
 0x2a6   :  { %5064 = vmatprep.mubr.msk.f32.mxu1 %vm5544_vm0, %v5545_v4 }
 0x2a9   :  { %5065 = vmatmul.mubr.msk.f32.gmra.mrb[8].mxu1 %vm37_vm2, %v3016_v20 }
 0x2aa   :  { %5067 = vmatprep.mubr.msk.f32.mxu1 %vm5544_vm0, %v5545_v4 }
 0x2ad   :  { %5068 = vmatmul.mubr.msk.f32.gmra.mrb[10].mxu1 %vm37_vm2, %v3017_v18 }
 0x2ae   :  { %5070 = vmatprep.mubr.msk.f32.mxu1 %vm5544_vm0, %v5545_v4 }
 0x2b1   :  { %5071 = vmatmul.mubr.msk.f32.gmra.mrb[12].mxu1 %vm37_vm2, %v3018_v21 }
 0x2b2   :  { %5077 = vmatprep.mubr.msk.f32.mxu1 %vm5544_vm0, %v5545_v4 }
 0x2b5   :  { %5078 = vmatmul.mubr.msk.f32.vlgmr.msra.gmra.mrb[0].mxu1 %vm37_vm2, %v3150_v25 }
 0x2b6   :  { %5080 = vmatprep.mubr.msk.f32.mxu1 %vm5544_vm0, %v5545_v4  ;;  %5312 = vmatpush3.bf16.msra.mxu1 %v5311_v24 }
 0x2b7   :  { %5313 = vmatprep.subr.bf16.mxu1 %v5543_v0 }
 0x2b9   :  { %5081 = vmatmul.mubr.msk.f32.gmra.mrb[2].mxu1 %vm37_vm2, %v3151_v27 }
 0x2ba   :  { %5083 = vmatprep.mubr.msk.f32.mxu1 %vm5544_vm0, %v5545_v4 }
 0x2bd   :  { %5084 = vmatmul.mubr.msk.f32.gmra.mrb[4].mxu1 %vm37_vm2, %v3152_v28 }
 0x2be   :  { %5086 = vmatprep.mubr.msk.f32.mxu1 %vm5544_vm0, %v5545_v4 }
 0x2c1   :  { %5087 = vmatmul.mubr.msk.f32.gmra.mrb[6].mxu1 %vm37_vm2, %v3153_v31 }
 0x2c2   :  { %5089 = vmatprep.mubr.msk.f32.mxu1 %vm5544_vm0, %v5545_v4 }
 0x2c3   :  { %v6717_v35 = vpop.f32.mrb[126].mxu0 }
 0x2c4   :  { %v4829_v38 = vpop.f32.mrb[127].mxu0 }
 0x2c5   :  { %5090 = vmatmul.mubr.msk.f32.gmra.mrb[8].mxu1 %vm37_vm2, %v3154_v36 }
 0x2c6   :  { %5092 = vmatprep.mubr.msk.f32.mxu1 %vm5544_vm0, %v5545_v4 }
 0x2c7   :  { %v6722_v39 = vpop.f32.mrb[128].mxu0 }
 0x2c8   :  { %v4832_v42 = vpop.f32.mrb[129].mxu0 }
 0x2c9   :  { %5093 = vmatmul.mubr.msk.f32.gmra.mrb[10].mxu1 %vm37_vm2, %v3155_v40 }
 0x2ca   :  { %5095 = vmatprep.mubr.msk.f32.mxu1 %vm5544_vm0, %v5545_v4 }
 0x2cb   :  { %v6733_v37 = vpop.f32.mrb[130].mxu0 }
 0x2cc   :  { %v4835_v46 = vpop.f32.mrb[131].mxu0 }
 0x2cd   :  { %5096 = vmatmul.mubr.msk.f32.gmra.mrb[12].mxu1 %vm37_vm2, %v3156_v45 }
 0x2ce   :  { %5102 = vmatprep.mubr.msk.f32.mxu1 %vm5544_vm0, %v5545_v4 }
 0x2cf   :  { %v6738_v48 = vpop.f32.mrb[132].mxu0 }
 0x2d0   :  { %v4838_v44 = vpop.f32.mrb[133].mxu0 }
 0x2d1   :  { %5103 = vmatmul.mubr.msk.f32.vlgmr.msra.gmra.mrb[0].mxu1 %vm37_vm2, %v3288_v49 }
 0x2d2   :  { %5105 = vmatprep.mubr.msk.f32.mxu1 %vm5544_vm0, %v5545_v4  ;;  %5315 = vmatpush3.bf16.msra.mxu1 %v5314_v47 }
 0x2d3   :  { %5316 = vmatprep.subr.bf16.mxu1 %v5543_v0  ;;  %v6744_v50 = vpop.f32.mrb[134].mxu0 }
 0x2d4   :  { %v4841_v19 = vpop.f32.mrb[135].mxu0 }
 0x2d5   :  { %5106 = vmatmul.mubr.msk.f32.gmra.mrb[2].mxu1 %vm37_vm2, %v3289_v51 }
 0x2d6   :  { %5108 = vmatprep.mubr.msk.f32.mxu1 %vm5544_vm0, %v5545_v4 }
 0x2d7   :  { %v6749_v26 = vpop.f32.mrb[136].mxu0 }
 0x2d8   :  { %v4844_v30 = vpop.f32.mrb[137].mxu0 }
 0x2d9   :  { %5109 = vmatmul.mubr.msk.f32.gmra.mrb[4].mxu1 %vm37_vm2, %v3290_v57 }
 0x2da   :  { %5111 = vmatprep.mubr.msk.f32.mxu1 %vm5544_vm0, %v5545_v4 }
 0x2db   :  { %v6754_v32 = vpop.f32.mrb[138].mxu0 }
 0x2dc   :  { %v4847_v52 = vpop.f32.mrb[139].mxu0 }
 0x2dd   :  { %5112 = vmatmul.mubr.msk.f32.gmra.mrb[6].mxu1 %vm37_vm2, %v3291_v33 }
 0x2de   :  { %5114 = vmatprep.mubr.msk.f32.mxu1 %vm5544_vm0, %v5545_v4 }
 0x2e1   :  { %5115 = vmatmul.mubr.msk.f32.gmra.mrb[8].mxu1 %vm37_vm2, %v3292_v53 }
 0x2e2   :  { %5117 = vmatprep.mubr.msk.f32.mxu1 %vm5544_vm0, %v5545_v4 }
 0x2e5   :  { %5118 = vmatmul.mubr.msk.f32.gmra.mrb[10].mxu1 %vm37_vm2, %v3293_v54 }
 0x2e6   :  { %5120 = vmatprep.mubr.msk.f32.mxu1 %vm5544_vm0, %v5545_v4 }
 0x2e9   :  { %5121 = vmatmul.mubr.msk.f32.gmra.mrb[12].mxu1 %vm37_vm2, %v3294_v59 }
 0x2ea   :  { %5127 = vmatprep.mubr.msk.f32.mxu1 %vm5544_vm0, %v5545_v4 }
 0x2ed   :  { %5128 = vmatmul.mubr.msk.f32.vlgmr.msra.gmra.mrb[0].mxu1 %vm37_vm2, %v3426_v62 }
 0x2ee   :  { %5130 = vmatprep.mubr.msk.f32.mxu1 %vm5544_vm0, %v5545_v4  ;;  %5318 = vmatpush3.bf16.msra.mxu1 %v5317_v60 }
 0x2f1   :  { %5131 = vmatmul.mubr.msk.f32.gmra.mrb[2].mxu1 %vm37_vm2, %v3427_v63 }
 0x2f2   :  { %5133 = vmatprep.mubr.msk.f32.mxu1 %vm5544_vm0, %v5545_v4 }
 0x2f5   :  { %5134 = vmatmul.mubr.msk.f32.gmra.mrb[4].mxu1 %vm37_vm2, %v3428_v1 }
 0x2f6   :  { %5136 = vmatprep.mubr.msk.f32.mxu1 %vm5544_vm0, %v5545_v4 }
 0x2f9   :  { %5137 = vmatmul.mubr.msk.f32.gmra.mrb[6].mxu1 %vm37_vm2, %v3429_v2 }
 0x2fa   :  { %5139 = vmatprep.mubr.msk.f32.mxu1 %vm5544_vm0, %v5545_v4 }
 0x2fd   :  { %5140 = vmatmul.mubr.msk.f32.gmra.mrb[8].mxu1 %vm37_vm2, %v3430_v3 }
 0x2fe   :  { %5142 = vmatprep.mubr.msk.f32.mxu1 %vm5544_vm0, %v5545_v4 }
 0x301   :  { %5143 = vmatmul.mubr.msk.f32.gmra.mrb[10].mxu1 %vm37_vm2, %v3431_v5 }
 0x302   :  { %5145 = vmatprep.mubr.msk.f32.mxu1 %vm5544_vm0, %v5545_v4 }
 0x305   :  { %5146 = vmatmul.mubr.msk.f32.gmra.mrb[12].mxu1 %vm37_vm2, %v3432_v6 }
 0x306   :  { %5152 = vmatprep.mubr.msk.f32.mxu1 %vm5544_vm0, %v5545_v4 }
 0x309   :  { %5153 = vmatmul.mubr.msk.f32.vlgmr.msra.gmra.mrb[0].mxu1 %vm37_vm2, %v3564_v7 }
 0x30a   :  { %5155 = vmatprep.mubr.msk.f32.mxu1 %vm5544_vm0, %v5545_v4 }
 0x30d   :  { %5156 = vmatmul.mubr.msk.f32.gmra.mrb[2].mxu1 %vm37_vm2, %v3565_v9 }
 0x30e   :  { %5158 = vmatprep.mubr.msk.f32.mxu1 %vm5544_vm0, %v5545_v4 }
 0x311   :  { %5159 = vmatmul.mubr.msk.f32.gmra.mrb[4].mxu1 %vm37_vm2, %v3566_v10 }
 0x312   :  { %5161 = vmatprep.mubr.msk.f32.mxu1 %vm5544_vm0, %v5545_v4 }
 0x315   :  { %5162 = vmatmul.mubr.msk.f32.gmra.mrb[6].mxu1 %vm37_vm2, %v3567_v11 }
 0x316   :  { %5164 = vmatprep.mubr.msk.f32.mxu1 %vm5544_vm0, %v5545_v4 }
 0x319   :  { %5165 = vmatmul.mubr.msk.f32.gmra.mrb[8].mxu1 %vm37_vm2, %v3568_v12 }
 0x31a   :  { %5167 = vmatprep.mubr.msk.f32.mxu1 %vm5544_vm0, %v5545_v4 }
 0x31d   :  { %5168 = vmatmul.mubr.msk.f32.gmra.mrb[10].mxu1 %vm37_vm2, %v3569_v13 }
 0x31e   :  { %5170 = vmatprep.mubr.msk.f32.mxu1 %vm5544_vm0, %v5545_v4  ;;  %vm3721_vm0 = vcmask 58368  }
 0x321   :  { %5171 = vmatmul.mubr.msk.f32.gmra.mrb[12].mxu1 %vm37_vm2, %v3570_v15 }
 0x3dc   :  { %v3661_v17 = vpop.f32.mrb[0].mxu1 }
 0x3dd   :  { %v5328_v20 = vadd.f32 %v3661_v17, %v6717_v35  ;;  %v5154_v18 = vpop.f32.mrb[1].mxu1 }
 0x3df   :  { %v3702_v22 = vmul.f32 %v5328_v20, %v6205_v61 }
 0x3e0   :  { %v3666_v21 = vpop.f32.mrb[2].mxu1 }
 0x3e1   :  { %v5329_v23 = vadd.f32 %v3666_v21, %v6722_v39  ;;  %v5157_v24 = vpop.f32.mrb[3].mxu1  ;;  %v3710_v28 = vsel %vm3709_vm10, %v3702_v22, 0.0 }
 0x3e3   :  { %v3703_v25 = vmul.f32 %v5329_v23, %v6218_v8 }
 0x3e4   :  { %v3671_v27 = vpop.f32.mrb[4].mxu1 }
 0x3e5   :  { %v3711_v31 = vsel %vm3709_vm10, %v3703_v25, 0.0  ;;  %v5330_v36 = vadd.f32 %v3671_v27, %v6733_v37  ;;  %v5160_v38 = vpop.f32.mrb[5].mxu1 }
 0x3e6   :  { %v3712_v40 = vadd.f32 %v3711_v31, %v3710_v28 }
 0x3e7   :  { %v3704_v35 = vmul.f32 %v5330_v36, %v6229_v16 }
 0x3e8   :  { %v3676_v42 = vpop.f32.mrb[6].mxu1 }
 0x3e9   :  { %v3713_v29 = vsel %vm3709_vm10, %v3704_v35, 0.0  ;;  %v5331_v39 = vadd.f32 %v3676_v42, %v6738_v48  ;;  %v5163_v43 = vpop.f32.mrb[7].mxu1 }
 0x3ea   :  { %v3714_v45 = vadd.f32 %v3713_v29, %v3712_v40 }
 0x3eb   :  { %v3705_v46 = vmul.f32 %v5331_v39, %v6246_v34 }
 0x3ec   :  { %v3681_v47 = vpop.f32.mrb[8].mxu1 }
 0x3ed   :  { %v3715_v49 = vsel %vm3709_vm10, %v3705_v46, 0.0  ;;  %v5332_v44 = vadd.f32 %v3681_v47, %v6744_v50  ;;  %v5166_v51 = vpop.f32.mrb[9].mxu1 }
 0x3ee   :  { %v3716_v37 = vadd.f32 %v3715_v49, %v3714_v45 }
 0x3ef   :  { %v3706_v19 = vmul.f32 %v5332_v44, %v6261_v41 }
 0x3f0   :  { %v3686_v57 = vpop.f32.mrb[10].mxu1 }
 0x3f1   :  { %v3717_v30 = vsel %vm3709_vm10, %v3706_v19, 0.0  ;;  %v5333_v33 = vadd.f32 %v3686_v57, %v6749_v26  ;;  %v5169_v52 = vpop.f32.mrb[11].mxu1 }
 0x3f2   :  { %v3718_v48 = vadd.f32 %v3717_v30, %v3716_v37 }
 0x3f3   :  { %v3707_v53 = vmul.f32 %v5333_v33, %v6275_v14 }
 0x3f4   :  { %v3691_v54 = vpop.f32.mrb[12].mxu1 }
 0x3f5   :  { %v3719_v56 = vsel %vm3709_vm10, %v3707_v53, 0.0  ;;  %v5334_v58 = vadd.f32 %v3691_v54, %v6754_v32  ;;  %v5172_v59 = vpop.f32.mrb[13].mxu1 }
 0x3f6   :  { %v3720_v50 = vadd.f32 %v3719_v56, %v3718_v48  ;;  %v4202_v56 = vld [vmem:[%s6895_s6] ss:$0 sm:$0xff] }
 0x3f7   :  { %v3708_v60 = vmul.f32 %v5334_v58, %v6289_v55 }
 0x3f9   :  { %v3722_v62 = vsel %vm3721_vm0, %v3708_v60, 0.0 }
 0x3fa   :  { %v3723_v63 = vadd.f32 %v3722_v62, %v3720_v50 }
 0x3fc   :  { %v3724_v1 = vrot.slane %v3723_v63, 4 }
 0x3fe   :  { %v3725_v2 = vadd.f32 %v3724_v1, %v3723_v63 }
 0x400   :  { %v3726_v26 = vrot.slane %v3725_v2, 2 }
 0x402   :  { %v3727_v3 = vadd.f32 %v3726_v26, %v3725_v2 }
 0x404   :  { %v3728_v5 = vrot.slane %v3727_v3, 1 }
 0x406   :  { %v3729_v6 = vadd.f32 %v3728_v5, %v3727_v3 }
 0x408   :  { %v3731_v7 = vmul.f32 0.03125, %v3729_v6 }
 0x40a   :  { %v3732_v9 = vsub.f32 %v5328_v20, %v3731_v7  ;;  %v3733_v10 = vsub.f32 %v5329_v23, %v3731_v7  ;;  %v3734_v11 = vsub.f32 %v5330_v36, %v3731_v7  ;;  %v3735_v12 = vsub.f32 %v5331_v39, %v3731_v7 }
 0x40b   :  { %v3736_v32 = vsub.f32 %v5332_v44, %v3731_v7  ;;  %v3737_v13 = vsub.f32 %v5333_v33, %v3731_v7  ;;  %v3738_v15 = vsub.f32 %v5334_v58, %v3731_v7  ;;  %v3831_v7 = vld [vmem:[%s6896_s7] sm:$0xff] }
 0x40c   :  { %v3739_v17 = vmul.f32 %v3732_v9, %v3732_v9  ;;  %v3740_v18 = vmul.f32 %v3733_v10, %v3733_v10  ;;  %v3741_v21 = vmul.f32 %v3734_v11, %v3734_v11  ;;  %v3742_v22 = vmul.f32 %v3735_v12, %v3735_v12 }
 0x40d   :  { %v3743_v24 = vmul.f32 %v3736_v32, %v3736_v32  ;;  %v3744_v31 = vmul.f32 %v3737_v13, %v3737_v13  ;;  %v3745_v40 = vmul.f32 %v3738_v15, %v3738_v15 }
 0x40e   :  { %v3746_v25 = vmul.f32 %v3739_v17, %v6205_v61  ;;  %v3747_v27 = vmul.f32 %v3740_v18, %v6218_v8  ;;  %v3748_v28 = vmul.f32 %v3741_v21, %v6229_v16  ;;  %v3749_v20 = vmul.f32 %v3742_v22, %v6246_v34 }
 0x40f   :  { %v3750_v35 = vmul.f32 %v3743_v24, %v6261_v41  ;;  %v3751_v61 = vmul.f32 %v3744_v31, %v6275_v14  ;;  %v3752_v16 = vmul.f32 %v3745_v40, %v6289_v55  ;;  %v4201_v55 = vld [vmem:[%s6894_s5] ss:$0 sm:$0xff] }
 0x410   :  { %v3753_v23 = vsel %vm3709_vm10, %v3746_v25, 0.0  ;;  %v3754_v36 = vsel %vm3709_vm10, %v3747_v27, 0.0  ;;  %v3756_v42 = vsel %vm3709_vm10, %v3748_v28, 0.0  ;;  %v3758_v8 = vsel %vm3709_vm10, %v3749_v20, 0.0  ;;  %v3835_v31 = vld [vmem:[%s6896_s7 + $0x20] sm:$0xff]  ;;  %v3836_v20 = vld [vmem:[%s6896_s7 + $0x28] sm:$0xff] }
 0x411   :  { %v3755_v38 = vadd.f32 %v3754_v36, %v3753_v23  ;;  %v3760_v34 = vsel %vm3709_vm10, %v3750_v35, 0.0  ;;  %v3762_v45 = vsel %vm3709_vm10, %v3751_v61, 0.0  ;;  %v3764_v47 = vsel %vm3721_vm0, %v3752_v16, 0.0 }
 0x413   :  { %v3757_v29 = vadd.f32 %v3756_v42, %v3755_v38 }
 0x415   :  { %v3759_v39 = vadd.f32 %v3758_v8, %v3757_v29 }
 0x417   :  { %v3761_v43 = vadd.f32 %v3760_v34, %v3759_v39 }
 0x419   :  { %v3763_v46 = vadd.f32 %v3762_v45, %v3761_v43 }
 0x41b   :  { %v3765_v49 = vadd.f32 %v3764_v47, %v3763_v46 }
 0x41d   :  { %v3766_v41 = vrot.slane %v3765_v49, 4 }
 0x41f   :  { %v3767_v44 = vadd.f32 %v3766_v41, %v3765_v49  ;;  %v3837_v49 = vld [vmem:[%s6896_s7 + $0x30] sm:$0x3] }
 0x421   :  { %v3768_v51 = vrot.slane %v3767_v44, 2 }
 0x423   :  { %v3769_v37 = vadd.f32 %v3768_v51, %v3767_v44  ;;  %v3845_v44 = vld [vmem:[%s6897_s8] sm:$0x3] }
 0x425   :  { %v3770_v19 = vrot.slane %v3769_v37, 1 }
 0x427   :  { %v3771_v14 = vadd.f32 %v3770_v19, %v3769_v37 }
 0x429   :  { %v3772_v57 = vmul.f32 0.03125, %v3771_v14 }
 0x42b   :  { %v3773_v30 = vadd.f32 1e-05, %v3772_v57 }
 0x42d   :  { %5537 = vrsqrt.f32 %v3773_v30 }
 0x437   :  { %v5538_v33 = vpop.eup %5537 }
 0x438   :  { %v3781_v52 = vmul.f32 %v5538_v33, %v3738_v15  ;;  %v3775_v48 = vmul.f32 %v5538_v33, %v3732_v9  ;;  %v3776_v53 = vmul.f32 %v5538_v33, %v3733_v10  ;;  %v3777_v54 = vmul.f32 %v5538_v33, %v3734_v11 }
 0x439   :  { %v3778_v58 = vmul.f32 %v5538_v33, %v3735_v12  ;;  %v3779_v59 = vmul.f32 %v5538_v33, %v3736_v32  ;;  %v3780_v50 = vmul.f32 %v5538_v33, %v3737_v13  ;;  %v3832_v12 = vld [vmem:[%s6896_s7 + $0x8] sm:$0xff]  ;;  %v3833_v32 = vld [vmem:[%s6896_s7 + $0x10] sm:$0xff]  ;;  %v3834_v13 = vld [vmem:[%s6896_s7 + $0x18] sm:$0xff] }
 0x43a   :  { %v3789_v60 = vmul.f32 %v4201_v55, %v3775_v48  ;;  %v3790_v62 = vmul.f32 %v4201_v55, %v3776_v53  ;;  %v3791_v63 = vmul.f32 %v4201_v55, %v3777_v54  ;;  %v3795_v15 = vmul.f32 %v4201_v55, %v3781_v52 }
 0x43b   :  { %v3792_v1 = vmul.f32 %v4201_v55, %v3778_v58  ;;  %v3793_v2 = vmul.f32 %v4201_v55, %v3779_v59  ;;  %v3794_v26 = vmul.f32 %v4201_v55, %v3780_v50 }
 0x43c   :  { %v3803_v3 = vadd.f32 %v4202_v56, %v3789_v60  ;;  %v3804_v5 = vadd.f32 %v4202_v56, %v3790_v62  ;;  %v3805_v6 = vadd.f32 %v4202_v56, %v3791_v63  ;;  %v3809_v34 = vadd.f32 %v4202_v56, %v3795_v15 }
 0x43d   :  { %v3806_v9 = vadd.f32 %v4202_v56, %v3792_v1  ;;  %v3807_v10 = vadd.f32 %v4202_v56, %v3793_v2  ;;  %v3808_v11 = vadd.f32 %v4202_v56, %v3794_v26 }
 0x43e   :  { %vm3810_vm2 = vcmp.gt.f32.partialorder %v3803_v3, 0.0  ;;  %vm3811_vm5 = vcmp.gt.f32.partialorder %v3804_v5, 0.0  ;;  %v3817_v17 = vmul.f32 0.2, %v3803_v3  ;;  %v3818_v18 = vmul.f32 0.2, %v3804_v5 }
 0x43f   :  { %vm3812_vm6 = vcmp.gt.f32.partialorder %v3805_v6, 0.0  ;;  %vm3813_vm7 = vcmp.gt.f32.partialorder %v3806_v9, 0.0  ;;  %v3819_v21 = vmul.f32 0.2, %v3805_v6  ;;  %v3820_v22 = vmul.f32 0.2, %v3806_v9 }
 0x440   :  { %vm3814_vm8 = vcmp.gt.f32.partialorder %v3807_v10, 0.0  ;;  %vm3815_vm9 = vcmp.gt.f32.partialorder %v3808_v11, 0.0  ;;  %v3824_v24 = vsel %vm3810_vm2, %v3803_v3, %v3817_v17  ;;  %v3825_v25 = vsel %vm3811_vm5, %v3804_v5, %v3818_v18 }
 0x441   :  { %v3821_v27 = vmul.f32 0.2, %v3807_v10  ;;  %v3822_v28 = vmul.f32 0.2, %v3808_v11  ;;  %v3838_v23 = vmul.f32 %v3831_v7, %v3824_v24  ;;  %v3839_v36 = vmul.f32 %v3832_v12, %v3825_v25 }
 0x442   :  { %v3826_v38 = vsel %vm3812_vm6, %v3805_v6, %v3819_v21  ;;  %v3827_v40 = vsel %vm3813_vm7, %v3806_v9, %v3820_v22  ;;  %v3823_v46 = vmul.f32 0.2, %v3809_v34  ;;  %vm3816_vm11 = vcmp.gt.f32.partialorder %v3809_v34, 0.0 }
 0x443   :  { %v3840_v35 = vmul.f32 %v3833_v32, %v3826_v38  ;;  %v3841_v42 = vmul.f32 %v3834_v13, %v3827_v40  ;;  %v3828_v29 = vsel %vm3814_vm8, %v3807_v10, %v3821_v27  ;;  %v3829_v61 = vsel %vm3815_vm9, %v3808_v11, %v3822_v28 }
 0x444   :  { %v5320_v8 = vpack.c.bf16 %v3839_v36, %v3838_v23  ;;  %v3842_v39 = vmul.f32 %v3835_v31, %v3828_v29  ;;  %v3843_v16 = vmul.f32 %v3836_v20, %v3829_v61  ;;  %v3830_v47 = vsel %vm3816_vm11, %v3809_v34, %v3823_v46 }
 0x445   :  { %v5323_v43 = vpack.c.bf16 %v3841_v42, %v3840_v35  ;;  %v3844_v41 = vmul.f32 %v3837_v49, %v3830_v47 }
 0x446   :  { %5321 = vmatpush3.bf16.msra.mxu0 %v5320_v8  ;;  %v5326_v45 = vpack.c.bf16 %v3843_v16, %v3842_v39 }
 0x447   :  { %5322 = vmatprep.subr.bf16.mxu0 %v5543_v0 }
 0x44a   :  { %5324 = vmatpush3.bf16.msra.mxu0 %v5323_v43 }
 0x44b   :  { %5325 = vmatprep.subr.bf16.mxu0 %v5543_v0  ;;  %v15_v0 = vstv %s6898_s9 }
 0x44c   :  { %16 = vst [vmem:[#allocation3] sm:$0x1] %v15_v0 }
 0x44e   :  { %5327 = vmatpush3.bf16.msra.mxu0 %v5326_v45 }
 0x44f   :  { %5185 = vmatprep.subr.mxu0 %v5545_v4 }
 0x452   :  { %5186 = vmatpush3.msk.msra.mxu0 %vm3850_vm12, %v3844_v41 }
 0x453   :  { %5188 = vmatmul.mubr.msk.f32.vlgmr.msra.gmra.mrb[140].mxu0 %vm3846_vm13, %v3845_v44  ;;  %v4205_v4 = vld [vmem:[#allocation3] ss:$0 sm:$0xff] }
 0x526   :  { %v3920_v51 = vpop.f32.mrb[140].mxu0 }
 0x527   :  { %v5189_v37 = vpop.f32.mrb[141].mxu0  ;;  %v3924_v19 = vsel %vm3721_vm0, %v3920_v51, 0.0 }
 0x528   :  { %3925 = vadd.xlane.f32.xlu1 %v3924_v19 }
 0x5b5   :  { %v3926_v14 = vpop.xlane.xlu1 %3925 }
 0x5b6   :  { %v3934_v57 = vadd.f32 %v4205_v4, %v3926_v14 }
 0x5b8   :  { %v4206_v30 = vmul.f32 -1.442695, %v3934_v57 }
 0x5ba   :  { %5539 = vpow2.f32 %v4206_v30 }
 0x5c4   :  { %v5540_v33 = vpop.eup %5539 }
 0x5c5   :  { %v3938_v55 = vadd.f32 1.0, %v5540_v33 }
 0x5c7   :  { %5541 = vrcp.f32 %v3938_v55 }
 0x5d1   :  { %v5542_v52 = vpop.eup %5541 }
 0x5d2   :  { %3942 = vst.msk [vmem:[%s6899_s10] sm:$0x3] %vm3941_vm14, %v5542_v52 }

</bundles_post_ra>
